<compile_context>
chip_gen: v6e
topology: v6e:2x2x1
jax: 0.10.0
libtpu: 0.0.40
codegen_flags: <defaults>
</compile_context>

<pallas_src>
import functools

import jax
import jax.numpy as jnp
from jax import lax
from jax.experimental import pallas as pl
from jax.experimental.pallas import tpu as pltpu


# ----------------------------------------------------------------------------
# Fused Pallas kernel
# ----------------------------------------------------------------------------
def _bilstm_fused_kernel(*refs, num_layers, hidden, seq_len, batch):
    """Fused bidirectional multi-layer LSTM + FC head (all f32, all in VMEM).

    Ref layout:
      refs[0]                 x2      (T*Bp, D0)   time-major, batch padded to Bp
      refs[1 + 4*l + 0]       wih_p   (D_l, 8H)    [W_ih_fwd^T | W_ih_bwd^T]
      refs[1 + 4*l + 1]       bias_p  (1, 8H)      [b_fwd | b_bwd]  (b_ih + b_hh)
      refs[1 + 4*l + 2]       whh_f   (H, 4H)      W_hh_fwd^T
      refs[1 + 4*l + 3]       whh_b   (H, 4H)      W_hh_bwd^T
      refs[1 + 4*L + 0]       fc_wt   (2H, O)      fc.weight^T
      refs[1 + 4*L + 1]       fc_b    (1, O)
      refs[1 + 4*L + 2]       out     (Bp, O)      output
      scratch: gates (T*Bp, 8H), act_f (T*Bp, H), act_b (T*Bp, H),
               h_f, c_f, h_b, c_b (Bp, H)
    """
    H, T, Bp = hidden, seq_len, batch
    x2_ref = refs[0]
    n_w = 4 * num_layers
    layer_refs = refs[1:1 + n_w]
    fc_w_ref = refs[1 + n_w]
    fc_b_ref = refs[2 + n_w]
    out_ref = refs[3 + n_w]
    gates, act_f, act_b, h_f, c_f, h_b, c_b = refs[4 + n_w:]

    for layer in range(num_layers):
        wih_ref, b_ref, whh_f_ref, whh_b_ref = layer_refs[4 * layer:4 * layer + 4]

        # ---- hoisted input projection for BOTH directions: one big matmul ----
        if layer == 0:
            proj = jnp.dot(x2_ref[...], wih_ref[...],
                           preferred_element_type=jnp.float32)
        else:
            # Previous-layer activations live as two (T*Bp, H) buffers
            # (fwd / bwd); split the packed W_ih rows accordingly instead of
            # materialising a concatenated (T*Bp, 2H) input.
            wih = wih_ref[...]                                     # (2H, 8H)
            proj = (jnp.dot(act_f[...], wih[:H, :],
                            preferred_element_type=jnp.float32)
                    + jnp.dot(act_b[...], wih[H:, :],
                              preferred_element_type=jnp.float32))
        gates[...] = proj + b_ref[...]                             # (T*Bp, 8H)

        # ---- recurrent part: only h @ W_hh^T stays inside the time loop ----
        h_f[...] = jnp.zeros_like(h_f)
        c_f[...] = jnp.zeros_like(c_f)
        h_b[...] = jnp.zeros_like(h_b)
        c_b[...] = jnp.zeros_like(c_b)

        whh_f = whh_f_ref[...]                                     # (H, 4H)
        whh_b = whh_b_ref[...]

        def cell(g_in, h_prev, c_prev, whh):
            g = g_in + jnp.dot(h_prev, whh, preferred_element_type=jnp.float32)
            i = jax.nn.sigmoid(g[:, 0 * H:1 * H])                  # PyTorch order i,f,g,o
            f = jax.nn.sigmoid(g[:, 1 * H:2 * H])
            gg = jnp.tanh(g[:, 2 * H:3 * H])
            o = jax.nn.sigmoid(g[:, 3 * H:4 * H])
            c_new = f * c_prev + i * gg
            h_new = o * jnp.tanh(c_new)
            return h_new, c_new

        def step(t, carry):
            # forward direction, position t
            rf = pl.multiple_of(t * Bp, Bp)
            hf, cf = cell(gates[pl.ds(rf, Bp), 0:4 * H],
                          h_f[...], c_f[...], whh_f)
            h_f[...] = hf
            c_f[...] = cf
            act_f[pl.ds(rf, Bp), :] = hf
            # backward direction, position T-1-t (reverse via index arithmetic)
            rb = pl.multiple_of((T - 1 - t) * Bp, Bp)
            hb, cb = cell(gates[pl.ds(rb, Bp), 4 * H:8 * H],
                          h_b[...], c_b[...], whh_b)
            h_b[...] = hb
            c_b[...] = cb
            act_b[pl.ds(rb, Bp), :] = hb
            return carry

        lax.fori_loop(0, T, step, 0, unroll=True)

    # ---- fused FC head: only the last time step is needed ----
    fwd_last = h_f[...]                                # fwd state after step T-1
    bwd_last = act_b[(T - 1) * Bp:T * Bp, :]           # bwd state at position T-1
    fc_w = fc_w_ref[...]                               # (2H, O)
    out = (jnp.dot(fwd_last, fc_w[:H, :], preferred_element_type=jnp.float32)
           + jnp.dot(bwd_last, fc_w[H:, :], preferred_element_type=jnp.float32)
           + fc_b_ref[...])
    out_ref[...] = out.astype(out_ref.dtype)


# ----------------------------------------------------------------------------
# One-time weight packing (PyTorch layout -> kernel layout)
# ----------------------------------------------------------------------------
def pack_params(params):
    packed_layers = []
    for layer in params["layers"]:
        w_ih_f, w_hh_f, b_ih_f, b_hh_f = layer["fwd"]
        w_ih_b, w_hh_b, b_ih_b, b_hh_b = layer["bwd"]
        H4 = w_ih_f.shape[0]                                    # = 4H
        wih_p = jnp.concatenate([w_ih_f.T, w_ih_b.T], axis=1).astype(jnp.float32)
        bias_p = jnp.concatenate([b_ih_f + b_hh_f,
                                  b_ih_b + b_hh_b]).reshape(1, 2 * H4).astype(jnp.float32)
        packed_layers.append((wih_p, bias_p,
                              jnp.asarray(w_hh_f.T, jnp.float32),
                              jnp.asarray(w_hh_b.T, jnp.float32)))
    fc_wt = jnp.asarray(params["fc_w"].T, jnp.float32)          # (2H, O)
    fc_b = params["fc_b"].reshape(1, -1).astype(jnp.float32)    # (1, O)
    return {"layers": packed_layers, "fc_wt": fc_wt, "fc_b": fc_b}


# ----------------------------------------------------------------------------
# Forward wrapper (single pallas_call)
# ----------------------------------------------------------------------------
def bidirectional_lstm_forward(x, packed):
    """x: (B, T, size) batch_first -> (B, output_size), matching the PyTorch module."""
    B, T, D = x.shape
    H = packed["layers"][0][2].shape[0]             # W_hh^T is (H, 4H)
    O = packed["fc_wt"].shape[1]
    num_layers = len(packed["layers"])
    Bp = max(8, ((B + 7) // 8) * 8)                 # pad batch to full sublane tiles

    x_tm = jnp.transpose(x, (1, 0, 2)).astype(jnp.float32)       # (T, B, D)
    if Bp != B:
        x_tm = jnp.pad(x_tm, ((0, 0), (0, Bp - B), (0, 0)))
    x2 = x_tm.reshape(T * Bp, D)                                 # (T*Bp, D)

    flat_w = [w for layer in packed["layers"] for w in layer]
    inputs = [x2] + flat_w + [packed["fc_wt"], packed["fc_b"]]

    kernel = functools.partial(_bilstm_fused_kernel, num_layers=num_layers,
                               hidden=H, seq_len=T, batch=Bp)
    vmem = pltpu.MemorySpace.VMEM
    out = pl.pallas_call(
        kernel,
        out_shape=jax.ShapeDtypeStruct((Bp, O), jnp.float32),
        in_specs=[pl.BlockSpec(memory_space=vmem) for _ in inputs],
        out_specs=pl.BlockSpec(memory_space=vmem),
        scratch_shapes=[
            pltpu.VMEM((T * Bp, 8 * H), jnp.float32),   # packed gate pre-activations
            pltpu.VMEM((T * Bp, H), jnp.float32),       # fwd activations
            pltpu.VMEM((T * Bp, H), jnp.float32),       # bwd activations
            pltpu.VMEM((Bp, H), jnp.float32),           # h fwd
            pltpu.VMEM((Bp, H), jnp.float32),           # c fwd
            pltpu.VMEM((Bp, H), jnp.float32),           # h bwd
            pltpu.VMEM((Bp, H), jnp.float32),           # c bwd
        ],
    )(*inputs)
    return out[:B]


# ----------------------------------------------------------------------------
# Pure-JAX reference (correctness check only)
# ----------------------------------------------------------------------------
def _lstm_layer_ref(x_tm, w_ih, w_hh, b_ih, b_hh):
    T, B, _ = x_tm.shape
    H = w_hh.shape[1]
    h = jnp.zeros((B, H), jnp.float32)
    c = jnp.zeros((B, H), jnp.float32)
    outs = []
    for t in range(T):
        gates = x_tm[t] @ w_ih.T + h @ w_hh.T + b_ih + b_hh
        i = jax.nn.sigmoid(gates[:, :H])
        f = jax.nn.sigmoid(gates[:, H:2 * H])
        g = jnp.tanh(gates[:, 2 * H:3 * H])
        o = jax.nn.sigmoid(gates[:, 3 * H:])
        c = f * c + i * g
        h = o * jnp.tanh(c)
        outs.append(h)
    return jnp.stack(outs)


def _forward_ref(x, params):
    inp = jnp.transpose(x, (1, 0, 2))
    for layer in params["layers"]:
        fwd = _lstm_layer_ref(inp, *layer["fwd"])
        bwd = _lstm_layer_ref(inp[::-1], *layer["bwd"])[::-1]
        inp = jnp.concatenate([fwd, bwd], axis=-1)
    return inp[-1] @ params["fc_w"].T + params["fc_b"]


# ----------------------------------------------------------------------------
# Deterministic parameter init (shapes follow nn.LSTM / nn.Linear)
# ----------------------------------------------------------------------------
def init_params(key, num_layers, size, size_layer, output_size):
    H = size_layer
    k = 1.0 / jnp.sqrt(jnp.float32(H))
    layers = []
    for l in range(num_layers):
        d_in = size if l == 0 else 2 * H
        layer = {}
        for dname in ("fwd", "bwd"):
            key, k1, k2, k3, k4 = jax.random.split(key, 5)
            layer[dname] = (
                jax.random.uniform(k1, (4 * H, d_in), jnp.float32, -k, k),  # W_ih
                jax.random.uniform(k2, (4 * H, H), jnp.float32, -k, k),     # W_hh
                jax.random.uniform(k3, (4 * H,), jnp.float32, -k, k),       # b_ih
                jax.random.uniform(k4, (4 * H,), jnp.float32, -k, k),       # b_hh
            )
        layers.append(layer)
    key, k1, k2 = jax.random.split(key, 3)
    kf = 1.0 / jnp.sqrt(jnp.float32(2 * H))
    fc_w = jax.random.uniform(k1, (output_size, 2 * H), jnp.float32, -kf, kf)
    fc_b = jax.random.uniform(k2, (output_size,), jnp.float32, -kf, kf)
    return {"layers": layers, "fc_w": fc_w, "fc_b": fc_b}


# ----------------------------------------------------------------------------
if __name__ == "__main__":
    num_layers = 2
    size = 4          # input feature dim
    size_layer = 32   # hidden size
    output_size = 1
    batch = 2
    seq = 8

    key = jax.random.PRNGKey(0)
    key, kx = jax.random.split(key)
    x = jax.random.normal(kx, (batch, seq, size), jnp.float32)

    params = init_params(key, num_layers, size, size_layer, output_size)
    packed = pack_params(params)          # one-time transpose / pack / bias-sum

    fwd_fn = jax.jit(bidirectional_lstm_forward)
    out = jax.block_until_ready(fwd_fn(x, packed))

    ref = jax.block_until_ready(_forward_ref(x, params))
    assert out.shape == (batch, output_size)
    assert jnp.allclose(out, ref, atol=1e-4, rtol=1e-4), (out, ref)

    print("KERNEL_OK")
</pallas_src>

<mosaic_0001>
module attributes {stable_mosaic.version = 11 : i64} {
  func.func @_bilstm_fused_kernel(%arg0: memref<64x4xf32, #tpu.memory_space<vmem>>, %arg1: memref<4x256xf32, #tpu.memory_space<vmem>>, %arg2: memref<1x256xf32, #tpu.memory_space<vmem>>, %arg3: memref<32x128xf32, #tpu.memory_space<vmem>>, %arg4: memref<32x128xf32, #tpu.memory_space<vmem>>, %arg5: memref<64x256xf32, #tpu.memory_space<vmem>>, %arg6: memref<1x256xf32, #tpu.memory_space<vmem>>, %arg7: memref<32x128xf32, #tpu.memory_space<vmem>>, %arg8: memref<32x128xf32, #tpu.memory_space<vmem>>, %arg9: memref<64x1xf32, #tpu.memory_space<vmem>>, %arg10: memref<1x1xf32, #tpu.memory_space<vmem>>, %arg11: memref<8x1xf32, #tpu.memory_space<vmem>>, %arg12: memref<64x256xf32, #tpu.memory_space<vmem>>, %arg13: memref<64x32xf32, #tpu.memory_space<vmem>>, %arg14: memref<64x32xf32, #tpu.memory_space<vmem>>, %arg15: memref<8x32xf32, #tpu.memory_space<vmem>>, %arg16: memref<8x32xf32, #tpu.memory_space<vmem>>, %arg17: memref<8x32xf32, #tpu.memory_space<vmem>>, %arg18: memref<8x32xf32, #tpu.memory_space<vmem>>) attributes {dimension_semantics = [], scalar_prefetch = 0 : i64, scratch_operands = 7 : i64, tpu.core_type = #tpu.core_type<tc>} {
    %c0 = arith.constant 0 : index
    %c0_0 = arith.constant 0 : index
    %0 = vector.load %arg0[%c0, %c0_0] : memref<64x4xf32, #tpu.memory_space<vmem>>, vector<64x4xf32>
    %c0_1 = arith.constant 0 : index
    %c0_2 = arith.constant 0 : index
    %1 = vector.load %arg1[%c0_1, %c0_2] : memref<4x256xf32, #tpu.memory_space<vmem>>, vector<4x256xf32>
    %cst = arith.constant dense<0.000000e+00> : vector<64x256xf32>
    %2 = tpu.matmul %0, %1, %cst {dimension_numbers = #tpu.dot_dimension_numbers<[1], [0], [0], [1], [0, 0, 1, 1], [], []>} : vector<64x4xf32>, vector<4x256xf32>, vector<64x256xf32> -> vector<64x256xf32>
    %c0_3 = arith.constant 0 : index
    %c0_4 = arith.constant 0 : index
    %3 = vector.load %arg2[%c0_3, %c0_4] : memref<1x256xf32, #tpu.memory_space<vmem>>, vector<1x256xf32>
    %4 = vector.broadcast %3 : vector<1x256xf32> to vector<64x256xf32>
    %5 = arith.addf %2, %4 : vector<64x256xf32>
    %c0_5 = arith.constant 0 : index
    %c0_6 = arith.constant 0 : index
    %6 = vector.load %arg12[%c0_5, %c0_6] : memref<64x256xf32, #tpu.memory_space<vmem>>, vector<64x256xf32>
    tpu.vector_store %arg12[%c0_5, %c0_6], %5 {strides = array<i32>} : memref<64x256xf32, #tpu.memory_space<vmem>>, vector<64x256xf32>,
    %cst_7 = arith.constant 0.000000e+00 : f32
    %7 = vector.broadcast %cst_7 : f32 to vector<8x32xf32>
    %c0_8 = arith.constant 0 : index
    %c0_9 = arith.constant 0 : index
    %8 = vector.load %arg15[%c0_8, %c0_9] : memref<8x32xf32, #tpu.memory_space<vmem>>, vector<8x32xf32>
    tpu.vector_store %arg15[%c0_8, %c0_9], %7 {strides = array<i32>} : memref<8x32xf32, #tpu.memory_space<vmem>>, vector<8x32xf32>,
    %cst_10 = arith.constant 0.000000e+00 : f32
    %9 = vector.broadcast %cst_10 : f32 to vector<8x32xf32>
    %c0_11 = arith.constant 0 : index
    %c0_12 = arith.constant 0 : index
    %10 = vector.load %arg16[%c0_11, %c0_12] : memref<8x32xf32, #tpu.memory_space<vmem>>, vector<8x32xf32>
    tpu.vector_store %arg16[%c0_11, %c0_12], %9 {strides = array<i32>} : memref<8x32xf32, #tpu.memory_space<vmem>>, vector<8x32xf32>,
    %cst_13 = arith.constant 0.000000e+00 : f32
    %11 = vector.broadcast %cst_13 : f32 to vector<8x32xf32>
    %c0_14 = arith.constant 0 : index
    %c0_15 = arith.constant 0 : index
    %12 = vector.load %arg17[%c0_14, %c0_15] : memref<8x32xf32, #tpu.memory_space<vmem>>, vector<8x32xf32>
    tpu.vector_store %arg17[%c0_14, %c0_15], %11 {strides = array<i32>} : memref<8x32xf32, #tpu.memory_space<vmem>>, vector<8x32xf32>,
    %cst_16 = arith.constant 0.000000e+00 : f32
    %13 = vector.broadcast %cst_16 : f32 to vector<8x32xf32>
    %c0_17 = arith.constant 0 : index
    %c0_18 = arith.constant 0 : index
    %14 = vector.load %arg18[%c0_17, %c0_18] : memref<8x32xf32, #tpu.memory_space<vmem>>, vector<8x32xf32>
    tpu.vector_store %arg18[%c0_17, %c0_18], %13 {strides = array<i32>} : memref<8x32xf32, #tpu.memory_space<vmem>>, vector<8x32xf32>,
    %c0_19 = arith.constant 0 : index
    %c0_20 = arith.constant 0 : index
    %15 = vector.load %arg3[%c0_19, %c0_20] : memref<32x128xf32, #tpu.memory_space<vmem>>, vector<32x128xf32>
    %c0_21 = arith.constant 0 : index
    %c0_22 = arith.constant 0 : index
    %16 = vector.load %arg4[%c0_21, %c0_22] : memref<32x128xf32, #tpu.memory_space<vmem>>, vector<32x128xf32>
    %c0_i32 = arith.constant 0 : i32
    %c8_i32 = arith.constant 8 : i32
    %17 = arith.muli %c0_i32, %c8_i32 : i32
    %18 = tpu.assume_multiple %17, 8 : i32
    %19 = arith.index_cast %18 : i32 to index
    %c0_23 = arith.constant 0 : index
    %20 = vector.load %arg12[%19, %c0_23] : memref<64x256xf32, #tpu.memory_space<vmem>>, vector<8x128xf32>
    %c0_24 = arith.constant 0 : index
    %c0_25 = arith.constant 0 : index
    %21 = vector.load %arg15[%c0_24, %c0_25] : memref<8x32xf32, #tpu.memory_space<vmem>>, vector<8x32xf32>
    %c0_26 = arith.constant 0 : index
    %c0_27 = arith.constant 0 : index
    %22 = vector.load %arg16[%c0_26, %c0_27] : memref<8x32xf32, #tpu.memory_space<vmem>>, vector<8x32xf32>
    %cst_28 = arith.constant dense<0.000000e+00> : vector<8x128xf32>
    %23 = tpu.matmul %21, %15, %cst_28 {dimension_numbers = #tpu.dot_dimension_numbers<[1], [0], [0], [1], [0, 0, 1, 1], [], []>} : vector<8x32xf32>, vector<32x128xf32>, vector<8x128xf32> -> vector<8x128xf32>
    %24 = arith.addf %20, %23 : vector<8x128xf32>
    %25 = vector.extract_strided_slice %24 {offsets = [0, 0], sizes = [8, 32], strides = [1, 1]} : vector<8x128xf32> to vector<8x32xf32>
    %26 = arith.negf %25 : vector<8x32xf32>
    %27 = math.exp %26 : vector<8x32xf32>
    %cst_29 = arith.constant 1.000000e+00 : f32
    %28 = vector.broadcast %cst_29 : f32 to vector<8x32xf32>
    %29 = arith.addf %28, %27 : vector<8x32xf32>
    %30 = arith.divf %28, %29 : vector<8x32xf32>
    %31 = vector.extract_strided_slice %24 {offsets = [0, 32], sizes = [8, 32], strides = [1, 1]} : vector<8x128xf32> to vector<8x32xf32>
    %32 = arith.negf %31 : vector<8x32xf32>
    %33 = math.exp %32 : vector<8x32xf32>
    %cst_30 = arith.constant 1.000000e+00 : f32
    %34 = vector.broadcast %cst_30 : f32 to vector<8x32xf32>
    %35 = arith.addf %34, %33 : vector<8x32xf32>
    %36 = arith.divf %34, %35 : vector<8x32xf32>
    %37 = vector.extract_strided_slice %24 {offsets = [0, 64], sizes = [8, 32], strides = [1, 1]} : vector<8x128xf32> to vector<8x32xf32>
    %38 = math.tanh %37 : vector<8x32xf32>
    %39 = vector.extract_strided_slice %24 {offsets = [0, 96], sizes = [8, 32], strides = [1, 1]} : vector<8x128xf32> to vector<8x32xf32>
    %40 = arith.negf %39 : vector<8x32xf32>
    %41 = math.exp %40 : vector<8x32xf32>
    %cst_31 = arith.constant 1.000000e+00 : f32
    %42 = vector.broadcast %cst_31 : f32 to vector<8x32xf32>
    %43 = arith.addf %42, %41 : vector<8x32xf32>
    %44 = arith.divf %42, %43 : vector<8x32xf32>
    %45 = arith.mulf %36, %22 : vector<8x32xf32>
    %46 = arith.mulf %30, %38 : vector<8x32xf32>
    %47 = arith.addf %45, %46 : vector<8x32xf32>
    %48 = math.tanh %47 : vector<8x32xf32>
    %49 = arith.mulf %44, %48 : vector<8x32xf32>
    %c0_32 = arith.constant 0 : index
    %c0_33 = arith.constant 0 : index
    %50 = vector.load %arg15[%c0_32, %c0_33] : memref<8x32xf32, #tpu.memory_space<vmem>>, vector<8x32xf32>
    tpu.vector_store %arg15[%c0_32, %c0_33], %49 {strides = array<i32>} : memref<8x32xf32, #tpu.memory_space<vmem>>, vector<8x32xf32>,
    %c0_34 = arith.constant 0 : index
    %c0_35 = arith.constant 0 : index
    %51 = vector.load %arg16[%c0_34, %c0_35] : memref<8x32xf32, #tpu.memory_space<vmem>>, vector<8x32xf32>
    tpu.vector_store %arg16[%c0_34, %c0_35], %47 {strides = array<i32>} : memref<8x32xf32, #tpu.memory_space<vmem>>, vector<8x32xf32>,
    %52 = arith.index_cast %18 : i32 to index
    %c0_36 = arith.constant 0 : index
    %53 = vector.load %arg13[%52, %c0_36] : memref<64x32xf32, #tpu.memory_space<vmem>>, vector<8x32xf32>
    tpu.vector_store %arg13[%52, %c0_36], %49 {strides = array<i32>} : memref<64x32xf32, #tpu.memory_space<vmem>>, vector<8x32xf32>,
    %c7_i32 = arith.constant 7 : i32
    %54 = arith.subi %c7_i32, %c0_i32 : i32
    %c8_i32_37 = arith.constant 8 : i32
    %55 = arith.muli %54, %c8_i32_37 : i32
    %56 = tpu.assume_multiple %55, 8 : i32
    %57 = arith.index_cast %56 : i32 to index
    %c128 = arith.constant 128 : index
    %58 = vector.load %arg12[%57, %c128] : memref<64x256xf32, #tpu.memory_space<vmem>>, vector<8x128xf32>
    %c0_38 = arith.constant 0 : index
    %c0_39 = arith.constant 0 : index
    %59 = vector.load %arg17[%c0_38, %c0_39] : memref<8x32xf32, #tpu.memory_space<vmem>>, vector<8x32xf32>
    %c0_40 = arith.constant 0 : index
    %c0_41 = arith.constant 0 : index
    %60 = vector.load %arg18[%c0_40, %c0_41] : memref<8x32xf32, #tpu.memory_space<vmem>>, vector<8x32xf32>
    %cst_42 = arith.constant dense<0.000000e+00> : vector<8x128xf32>
    %61 = tpu.matmul %59, %16, %cst_42 {dimension_numbers = #tpu.dot_dimension_numbers<[1], [0], [0], [1], [0, 0, 1, 1], [], []>} : vector<8x32xf32>, vector<32x128xf32>, vector<8x128xf32> -> vector<8x128xf32>
    %62 = arith.addf %58, %61 : vector<8x128xf32>
    %63 = vector.extract_strided_slice %62 {offsets = [0, 0], sizes = [8, 32], strides = [1, 1]} : vector<8x128xf32> to vector<8x32xf32>
    %64 = arith.negf %63 : vector<8x32xf32>
    %65 = math.exp %64 : vector<8x32xf32>
    %cst_43 = arith.constant 1.000000e+00 : f32
    %66 = vector.broadcast %cst_43 : f32 to vector<8x32xf32>
    %67 = arith.addf %66, %65 : vector<8x32xf32>
    %68 = arith.divf %66, %67 : vector<8x32xf32>
    %69 = vector.extract_strided_slice %62 {offsets = [0, 32], sizes = [8, 32], strides = [1, 1]} : vector<8x128xf32> to vector<8x32xf32>
    %70 = arith.negf %69 : vector<8x32xf32>
    %71 = math.exp %70 : vector<8x32xf32>
    %cst_44 = arith.constant 1.000000e+00 : f32
    %72 = vector.broadcast %cst_44 : f32 to vector<8x32xf32>
    %73 = arith.addf %72, %71 : vector<8x32xf32>
    %74 = arith.divf %72, %73 : vector<8x32xf32>
    %75 = vector.extract_strided_slice %62 {offsets = [0, 64], sizes = [8, 32], strides = [1, 1]} : vector<8x128xf32> to vector<8x32xf32>
    %76 = math.tanh %75 : vector<8x32xf32>
    %77 = vector.extract_strided_slice %62 {offsets = [0, 96], sizes = [8, 32], strides = [1, 1]} : vector<8x128xf32> to vector<8x32xf32>
    %78 = arith.negf %77 : vector<8x32xf32>
    %79 = math.exp %78 : vector<8x32xf32>
    %cst_45 = arith.constant 1.000000e+00 : f32
    %80 = vector.broadcast %cst_45 : f32 to vector<8x32xf32>
    %81 = arith.addf %80, %79 : vector<8x32xf32>
    %82 = arith.divf %80, %81 : vector<8x32xf32>
    %83 = arith.mulf %74, %60 : vector<8x32xf32>
    %84 = arith.mulf %68, %76 : vector<8x32xf32>
    %85 = arith.addf %83, %84 : vector<8x32xf32>
    %86 = math.tanh %85 : vector<8x32xf32>
    %87 = arith.mulf %82, %86 : vector<8x32xf32>
    %c0_46 = arith.constant 0 : index
    %c0_47 = arith.constant 0 : index
    %88 = vector.load %arg17[%c0_46, %c0_47] : memref<8x32xf32, #tpu.memory_space<vmem>>, vector<8x32xf32>
    tpu.vector_store %arg17[%c0_46, %c0_47], %87 {strides = array<i32>} : memref<8x32xf32, #tpu.memory_space<vmem>>, vector<8x32xf32>,
    %c0_48 = arith.constant 0 : index
    %c0_49 = arith.constant 0 : index
    %89 = vector.load %arg18[%c0_48, %c0_49] : memref<8x32xf32, #tpu.memory_space<vmem>>, vector<8x32xf32>
    tpu.vector_store %arg18[%c0_48, %c0_49], %85 {strides = array<i32>} : memref<8x32xf32, #tpu.memory_space<vmem>>, vector<8x32xf32>,
    %90 = arith.index_cast %56 : i32 to index
    %c0_50 = arith.constant 0 : index
    %91 = vector.load %arg14[%90, %c0_50] : memref<64x32xf32, #tpu.memory_space<vmem>>, vector<8x32xf32>
    tpu.vector_store %arg14[%90, %c0_50], %87 {strides = array<i32>} : memref<64x32xf32, #tpu.memory_space<vmem>>, vector<8x32xf32>,
    %c1_i32 = arith.constant 1 : i32
    %c8_i32_51 = arith.constant 8 : i32
    %92 = arith.muli %c1_i32, %c8_i32_51 : i32
    %93 = tpu.assume_multiple %92, 8 : i32
    %94 = arith.index_cast %93 : i32 to index
    %c0_52 = arith.constant 0 : index
    %95 = vector.load %arg12[%94, %c0_52] : memref<64x256xf32, #tpu.memory_space<vmem>>, vector<8x128xf32>
    %c0_53 = arith.constant 0 : index
    %c0_54 = arith.constant 0 : index
    %96 = vector.load %arg15[%c0_53, %c0_54] : memref<8x32xf32, #tpu.memory_space<vmem>>, vector<8x32xf32>
    %c0_55 = arith.constant 0 : index
    %c0_56 = arith.constant 0 : index
    %97 = vector.load %arg16[%c0_55, %c0_56] : memref<8x32xf32, #tpu.memory_space<vmem>>, vector<8x32xf32>
    %cst_57 = arith.constant dense<0.000000e+00> : vector<8x128xf32>
    %98 = tpu.matmul %96, %15, %cst_57 {dimension_numbers = #tpu.dot_dimension_numbers<[1], [0], [0], [1], [0, 0, 1, 1], [], []>} : vector<8x32xf32>, vector<32x128xf32>, vector<8x128xf32> -> vector<8x128xf32>
    %99 = arith.addf %95, %98 : vector<8x128xf32>
    %100 = vector.extract_strided_slice %99 {offsets = [0, 0], sizes = [8, 32], strides = [1, 1]} : vector<8x128xf32> to vector<8x32xf32>
    %101 = arith.negf %100 : vector<8x32xf32>
    %102 = math.exp %101 : vector<8x32xf32>
    %cst_58 = arith.constant 1.000000e+00 : f32
    %103 = vector.broadcast %cst_58 : f32 to vector<8x32xf32>
    %104 = arith.addf %103, %102 : vector<8x32xf32>
    %105 = arith.divf %103, %104 : vector<8x32xf32>
    %106 = vector.extract_strided_slice %99 {offsets = [0, 32], sizes = [8, 32], strides = [1, 1]} : vector<8x128xf32> to vector<8x32xf32>
    %107 = arith.negf %106 : vector<8x32xf32>
    %108 = math.exp %107 : vector<8x32xf32>
    %cst_59 = arith.constant 1.000000e+00 : f32
    %109 = vector.broadcast %cst_59 : f32 to vector<8x32xf32>
    %110 = arith.addf %109, %108 : vector<8x32xf32>
    %111 = arith.divf %109, %110 : vector<8x32xf32>
    %112 = vector.extract_strided_slice %99 {offsets = [0, 64], sizes = [8, 32], strides = [1, 1]} : vector<8x128xf32> to vector<8x32xf32>
    %113 = math.tanh %112 : vector<8x32xf32>
    %114 = vector.extract_strided_slice %99 {offsets = [0, 96], sizes = [8, 32], strides = [1, 1]} : vector<8x128xf32> to vector<8x32xf32>
    %115 = arith.negf %114 : vector<8x32xf32>
    %116 = math.exp %115 : vector<8x32xf32>
    %cst_60 = arith.constant 1.000000e+00 : f32
    %117 = vector.broadcast %cst_60 : f32 to vector<8x32xf32>
    %118 = arith.addf %117, %116 : vector<8x32xf32>
    %119 = arith.divf %117, %118 : vector<8x32xf32>
    %120 = arith.mulf %111, %97 : vector<8x32xf32>
    %121 = arith.mulf %105, %113 : vector<8x32xf32>
    %122 = arith.addf %120, %121 : vector<8x32xf32>
    %123 = math.tanh %122 : vector<8x32xf32>
    %124 = arith.mulf %119, %123 : vector<8x32xf32>
    %c0_61 = arith.constant 0 : index
    %c0_62 = arith.constant 0 : index
    %125 = vector.load %arg15[%c0_61, %c0_62] : memref<8x32xf32, #tpu.memory_space<vmem>>, vector<8x32xf32>
    tpu.vector_store %arg15[%c0_61, %c0_62], %124 {strides = array<i32>} : memref<8x32xf32, #tpu.memory_space<vmem>>, vector<8x32xf32>,
    %c0_63 = arith.constant 0 : index
    %c0_64 = arith.constant 0 : index
    %126 = vector.load %arg16[%c0_63, %c0_64] : memref<8x32xf32, #tpu.memory_space<vmem>>, vector<8x32xf32>
    tpu.vector_store %arg16[%c0_63, %c0_64], %122 {strides = array<i32>} : memref<8x32xf32, #tpu.memory_space<vmem>>, vector<8x32xf32>,
    %127 = arith.index_cast %93 : i32 to index
    %c0_65 = arith.constant 0 : index
    %128 = vector.load %arg13[%127, %c0_65] : memref<64x32xf32, #tpu.memory_space<vmem>>, vector<8x32xf32>
    tpu.vector_store %arg13[%127, %c0_65], %124 {strides = array<i32>} : memref<64x32xf32, #tpu.memory_space<vmem>>, vector<8x32xf32>,
    %c7_i32_66 = arith.constant 7 : i32
    %129 = arith.subi %c7_i32_66, %c1_i32 : i32
    %c8_i32_67 = arith.constant 8 : i32
    %130 = arith.muli %129, %c8_i32_67 : i32
    %131 = tpu.assume_multiple %130, 8 : i32
    %132 = arith.index_cast %131 : i32 to index
    %c128_68 = arith.constant 128 : index
    %133 = vector.load %arg12[%132, %c128_68] : memref<64x256xf32, #tpu.memory_space<vmem>>, vector<8x128xf32>
    %c0_69 = arith.constant 0 : index
    %c0_70 = arith.constant 0 : index
    %134 = vector.load %arg17[%c0_69, %c0_70] : memref<8x32xf32, #tpu.memory_space<vmem>>, vector<8x32xf32>
    %c0_71 = arith.constant 0 : index
    %c0_72 = arith.constant 0 : index
    %135 = vector.load %arg18[%c0_71, %c0_72] : memref<8x32xf32, #tpu.memory_space<vmem>>, vector<8x32xf32>
    %cst_73 = arith.constant dense<0.000000e+00> : vector<8x128xf32>
    %136 = tpu.matmul %134, %16, %cst_73 {dimension_numbers = #tpu.dot_dimension_numbers<[1], [0], [0], [1], [0, 0, 1, 1], [], []>} : vector<8x32xf32>, vector<32x128xf32>, vector<8x128xf32> -> vector<8x128xf32>
    %137 = arith.addf %133, %136 : vector<8x128xf32>
    %138 = vector.extract_strided_slice %137 {offsets = [0, 0], sizes = [8, 32], strides = [1, 1]} : vector<8x128xf32> to vector<8x32xf32>
    %139 = arith.negf %138 : vector<8x32xf32>
    %140 = math.exp %139 : vector<8x32xf32>
    %cst_74 = arith.constant 1.000000e+00 : f32
    %141 = vector.broadcast %cst_74 : f32 to vector<8x32xf32>
    %142 = arith.addf %141, %140 : vector<8x32xf32>
    %143 = arith.divf %141, %142 : vector<8x32xf32>
    %144 = vector.extract_strided_slice %137 {offsets = [0, 32], sizes = [8, 32], strides = [1, 1]} : vector<8x128xf32> to vector<8x32xf32>
    %145 = arith.negf %144 : vector<8x32xf32>
    %146 = math.exp %145 : vector<8x32xf32>
    %cst_75 = arith.constant 1.000000e+00 : f32
    %147 = vector.broadcast %cst_75 : f32 to vector<8x32xf32>
    %148 = arith.addf %147, %146 : vector<8x32xf32>
    %149 = arith.divf %147, %148 : vector<8x32xf32>
    %150 = vector.extract_strided_slice %137 {offsets = [0, 64], sizes = [8, 32], strides = [1, 1]} : vector<8x128xf32> to vector<8x32xf32>
    %151 = math.tanh %150 : vector<8x32xf32>
    %152 = vector.extract_strided_slice %137 {offsets = [0, 96], sizes = [8, 32], strides = [1, 1]} : vector<8x128xf32> to vector<8x32xf32>
    %153 = arith.negf %152 : vector<8x32xf32>
    %154 = math.exp %153 : vector<8x32xf32>
    %cst_76 = arith.constant 1.000000e+00 : f32
    %155 = vector.broadcast %cst_76 : f32 to vector<8x32xf32>
    %156 = arith.addf %155, %154 : vector<8x32xf32>
    %157 = arith.divf %155, %156 : vector<8x32xf32>
    %158 = arith.mulf %149, %135 : vector<8x32xf32>
    %159 = arith.mulf %143, %151 : vector<8x32xf32>
    %160 = arith.addf %158, %159 : vector<8x32xf32>
    %161 = math.tanh %160 : vector<8x32xf32>
    %162 = arith.mulf %157, %161 : vector<8x32xf32>
    %c0_77 = arith.constant 0 : index
    %c0_78 = arith.constant 0 : index
    %163 = vector.load %arg17[%c0_77, %c0_78] : memref<8x32xf32, #tpu.memory_space<vmem>>, vector<8x32xf32>
    tpu.vector_store %arg17[%c0_77, %c0_78], %162 {strides = array<i32>} : memref<8x32xf32, #tpu.memory_space<vmem>>, vector<8x32xf32>,
    %c0_79 = arith.constant 0 : index
    %c0_80 = arith.constant 0 : index
    %164 = vector.load %arg18[%c0_79, %c0_80] : memref<8x32xf32, #tpu.memory_space<vmem>>, vector<8x32xf32>
    tpu.vector_store %arg18[%c0_79, %c0_80], %160 {strides = array<i32>} : memref<8x32xf32, #tpu.memory_space<vmem>>, vector<8x32xf32>,
    %165 = arith.index_cast %131 : i32 to index
    %c0_81 = arith.constant 0 : index
    %166 = vector.load %arg14[%165, %c0_81] : memref<64x32xf32, #tpu.memory_space<vmem>>, vector<8x32xf32>
    tpu.vector_store %arg14[%165, %c0_81], %162 {strides = array<i32>} : memref<64x32xf32, #tpu.memory_space<vmem>>, vector<8x32xf32>,
    %c2_i32 = arith.constant 2 : i32
    %c8_i32_82 = arith.constant 8 : i32
    %167 = arith.muli %c2_i32, %c8_i32_82 : i32
    %168 = tpu.assume_multiple %167, 8 : i32
    %169 = arith.index_cast %168 : i32 to index
    %c0_83 = arith.constant 0 : index
    %170 = vector.load %arg12[%169, %c0_83] : memref<64x256xf32, #tpu.memory_space<vmem>>, vector<8x128xf32>
    %c0_84 = arith.constant 0 : index
    %c0_85 = arith.constant 0 : index
    %171 = vector.load %arg15[%c0_84, %c0_85] : memref<8x32xf32, #tpu.memory_space<vmem>>, vector<8x32xf32>
    %c0_86 = arith.constant 0 : index
    %c0_87 = arith.constant 0 : index
    %172 = vector.load %arg16[%c0_86, %c0_87] : memref<8x32xf32, #tpu.memory_space<vmem>>, vector<8x32xf32>
    %cst_88 = arith.constant dense<0.000000e+00> : vector<8x128xf32>
    %173 = tpu.matmul %171, %15, %cst_88 {dimension_numbers = #tpu.dot_dimension_numbers<[1], [0], [0], [1], [0, 0, 1, 1], [], []>} : vector<8x32xf32>, vector<32x128xf32>, vector<8x128xf32> -> vector<8x128xf32>
    %174 = arith.addf %170, %173 : vector<8x128xf32>
    %175 = vector.extract_strided_slice %174 {offsets = [0, 0], sizes = [8, 32], strides = [1, 1]} : vector<8x128xf32> to vector<8x32xf32>
    %176 = arith.negf %175 : vector<8x32xf32>
    %177 = math.exp %176 : vector<8x32xf32>
    %cst_89 = arith.constant 1.000000e+00 : f32
    %178 = vector.broadcast %cst_89 : f32 to vector<8x32xf32>
    %179 = arith.addf %178, %177 : vector<8x32xf32>
    %180 = arith.divf %178, %179 : vector<8x32xf32>
    %181 = vector.extract_strided_slice %174 {offsets = [0, 32], sizes = [8, 32], strides = [1, 1]} : vector<8x128xf32> to vector<8x32xf32>
    %182 = arith.negf %181 : vector<8x32xf32>
    %183 = math.exp %182 : vector<8x32xf32>
    %cst_90 = arith.constant 1.000000e+00 : f32
    %184 = vector.broadcast %cst_90 : f32 to vector<8x32xf32>
    %185 = arith.addf %184, %183 : vector<8x32xf32>
    %186 = arith.divf %184, %185 : vector<8x32xf32>
    %187 = vector.extract_strided_slice %174 {offsets = [0, 64], sizes = [8, 32], strides = [1, 1]} : vector<8x128xf32> to vector<8x32xf32>
    %188 = math.tanh %187 : vector<8x32xf32>
    %189 = vector.extract_strided_slice %174 {offsets = [0, 96], sizes = [8, 32], strides = [1, 1]} : vector<8x128xf32> to vector<8x32xf32>
    %190 = arith.negf %189 : vector<8x32xf32>
    %191 = math.exp %190 : vector<8x32xf32>
    %cst_91 = arith.constant 1.000000e+00 : f32
    %192 = vector.broadcast %cst_91 : f32 to vector<8x32xf32>
    %193 = arith.addf %192, %191 : vector<8x32xf32>
    %194 = arith.divf %192, %193 : vector<8x32xf32>
    %195 = arith.mulf %186, %172 : vector<8x32xf32>
    %196 = arith.mulf %180, %188 : vector<8x32xf32>
    %197 = arith.addf %195, %196 : vector<8x32xf32>
    %198 = math.tanh %197 : vector<8x32xf32>
    %199 = arith.mulf %194, %198 : vector<8x32xf32>
    %c0_92 = arith.constant 0 : index
    %c0_93 = arith.constant 0 : index
    %200 = vector.load %arg15[%c0_92, %c0_93] : memref<8x32xf32, #tpu.memory_space<vmem>>, vector<8x32xf32>
    tpu.vector_store %arg15[%c0_92, %c0_93], %199 {strides = array<i32>} : memref<8x32xf32, #tpu.memory_space<vmem>>, vector<8x32xf32>,
    %c0_94 = arith.constant 0 : index
    %c0_95 = arith.constant 0 : index
    %201 = vector.load %arg16[%c0_94, %c0_95] : memref<8x32xf32, #tpu.memory_space<vmem>>, vector<8x32xf32>
    tpu.vector_store %arg16[%c0_94, %c0_95], %197 {strides = array<i32>} : memref<8x32xf32, #tpu.memory_space<vmem>>, vector<8x32xf32>,
    %202 = arith.index_cast %168 : i32 to index
    %c0_96 = arith.constant 0 : index
    %203 = vector.load %arg13[%202, %c0_96] : memref<64x32xf32, #tpu.memory_space<vmem>>, vector<8x32xf32>
    tpu.vector_store %arg13[%202, %c0_96], %199 {strides = array<i32>} : memref<64x32xf32, #tpu.memory_space<vmem>>, vector<8x32xf32>,
    %c7_i32_97 = arith.constant 7 : i32
    %204 = arith.subi %c7_i32_97, %c2_i32 : i32
    %c8_i32_98 = arith.constant 8 : i32
    %205 = arith.muli %204, %c8_i32_98 : i32
    %206 = tpu.assume_multiple %205, 8 : i32
    %207 = arith.index_cast %206 : i32 to index
    %c128_99 = arith.constant 128 : index
    %208 = vector.load %arg12[%207, %c128_99] : memref<64x256xf32, #tpu.memory_space<vmem>>, vector<8x128xf32>
    %c0_100 = arith.constant 0 : index
    %c0_101 = arith.constant 0 : index
    %209 = vector.load %arg17[%c0_100, %c0_101] : memref<8x32xf32, #tpu.memory_space<vmem>>, vector<8x32xf32>
    %c0_102 = arith.constant 0 : index
    %c0_103 = arith.constant 0 : index
    %210 = vector.load %arg18[%c0_102, %c0_103] : memref<8x32xf32, #tpu.memory_space<vmem>>, vector<8x32xf32>
    %cst_104 = arith.constant dense<0.000000e+00> : vector<8x128xf32>
    %211 = tpu.matmul %209, %16, %cst_104 {dimension_numbers = #tpu.dot_dimension_numbers<[1], [0], [0], [1], [0, 0, 1, 1], [], []>} : vector<8x32xf32>, vector<32x128xf32>, vector<8x128xf32> -> vector<8x128xf32>
    %212 = arith.addf %208, %211 : vector<8x128xf32>
    %213 = vector.extract_strided_slice %212 {offsets = [0, 0], sizes = [8, 32], strides = [1, 1]} : vector<8x128xf32> to vector<8x32xf32>
    %214 = arith.negf %213 : vector<8x32xf32>
    %215 = math.exp %214 : vector<8x32xf32>
    %cst_105 = arith.constant 1.000000e+00 : f32
    %216 = vector.broadcast %cst_105 : f32 to vector<8x32xf32>
    %217 = arith.addf %216, %215 : vector<8x32xf32>
    %218 = arith.divf %216, %217 : vector<8x32xf32>
    %219 = vector.extract_strided_slice %212 {offsets = [0, 32], sizes = [8, 32], strides = [1, 1]} : vector<8x128xf32> to vector<8x32xf32>
    %220 = arith.negf %219 : vector<8x32xf32>
    %221 = math.exp %220 : vector<8x32xf32>
    %cst_106 = arith.constant 1.000000e+00 : f32
    %222 = vector.broadcast %cst_106 : f32 to vector<8x32xf32>
    %223 = arith.addf %222, %221 : vector<8x32xf32>
    %224 = arith.divf %222, %223 : vector<8x32xf32>
    %225 = vector.extract_strided_slice %212 {offsets = [0, 64], sizes = [8, 32], strides = [1, 1]} : vector<8x128xf32> to vector<8x32xf32>
    %226 = math.tanh %225 : vector<8x32xf32>
    %227 = vector.extract_strided_slice %212 {offsets = [0, 96], sizes = [8, 32], strides = [1, 1]} : vector<8x128xf32> to vector<8x32xf32>
    %228 = arith.negf %227 : vector<8x32xf32>
    %229 = math.exp %228 : vector<8x32xf32>
    %cst_107 = arith.constant 1.000000e+00 : f32
    %230 = vector.broadcast %cst_107 : f32 to vector<8x32xf32>
    %231 = arith.addf %230, %229 : vector<8x32xf32>
    %232 = arith.divf %230, %231 : vector<8x32xf32>
    %233 = arith.mulf %224, %210 : vector<8x32xf32>
    %234 = arith.mulf %218, %226 : vector<8x32xf32>
    %235 = arith.addf %233, %234 : vector<8x32xf32>
    %236 = math.tanh %235 : vector<8x32xf32>
    %237 = arith.mulf %232, %236 : vector<8x32xf32>
    %c0_108 = arith.constant 0 : index
    %c0_109 = arith.constant 0 : index
    %238 = vector.load %arg17[%c0_108, %c0_109] : memref<8x32xf32, #tpu.memory_space<vmem>>, vector<8x32xf32>
    tpu.vector_store %arg17[%c0_108, %c0_109], %237 {strides = array<i32>} : memref<8x32xf32, #tpu.memory_space<vmem>>, vector<8x32xf32>,
    %c0_110 = arith.constant 0 : index
    %c0_111 = arith.constant 0 : index
    %239 = vector.load %arg18[%c0_110, %c0_111] : memref<8x32xf32, #tpu.memory_space<vmem>>, vector<8x32xf32>
    tpu.vector_store %arg18[%c0_110, %c0_111], %235 {strides = array<i32>} : memref<8x32xf32, #tpu.memory_space<vmem>>, vector<8x32xf32>,
    %240 = arith.index_cast %206 : i32 to index
    %c0_112 = arith.constant 0 : index
    %241 = vector.load %arg14[%240, %c0_112] : memref<64x32xf32, #tpu.memory_space<vmem>>, vector<8x32xf32>
    tpu.vector_store %arg14[%240, %c0_112], %237 {strides = array<i32>} : memref<64x32xf32, #tpu.memory_space<vmem>>, vector<8x32xf32>,
    %c3_i32 = arith.constant 3 : i32
    %c8_i32_113 = arith.constant 8 : i32
    %242 = arith.muli %c3_i32, %c8_i32_113 : i32
    %243 = tpu.assume_multiple %242, 8 : i32
    %244 = arith.index_cast %243 : i32 to index
    %c0_114 = arith.constant 0 : index
    %245 = vector.load %arg12[%244, %c0_114] : memref<64x256xf32, #tpu.memory_space<vmem>>, vector<8x128xf32>
    %c0_115 = arith.constant 0 : index
    %c0_116 = arith.constant 0 : index
    %246 = vector.load %arg15[%c0_115, %c0_116] : memref<8x32xf32, #tpu.memory_space<vmem>>, vector<8x32xf32>
    %c0_117 = arith.constant 0 : index
    %c0_118 = arith.constant 0 : index
    %247 = vector.load %arg16[%c0_117, %c0_118] : memref<8x32xf32, #tpu.memory_space<vmem>>, vector<8x32xf32>
    %cst_119 = arith.constant dense<0.000000e+00> : vector<8x128xf32>
    %248 = tpu.matmul %246, %15, %cst_119 {dimension_numbers = #tpu.dot_dimension_numbers<[1], [0], [0], [1], [0, 0, 1, 1], [], []>} : vector<8x32xf32>, vector<32x128xf32>, vector<8x128xf32> -> vector<8x128xf32>
    %249 = arith.addf %245, %248 : vector<8x128xf32>
    %250 = vector.extract_strided_slice %249 {offsets = [0, 0], sizes = [8, 32], strides = [1, 1]} : vector<8x128xf32> to vector<8x32xf32>
    %251 = arith.negf %250 : vector<8x32xf32>
    %252 = math.exp %251 : vector<8x32xf32>
    %cst_120 = arith.constant 1.000000e+00 : f32
    %253 = vector.broadcast %cst_120 : f32 to vector<8x32xf32>
    %254 = arith.addf %253, %252 : vector<8x32xf32>
    %255 = arith.divf %253, %254 : vector<8x32xf32>
    %256 = vector.extract_strided_slice %249 {offsets = [0, 32], sizes = [8, 32], strides = [1, 1]} : vector<8x128xf32> to vector<8x32xf32>
    %257 = arith.negf %256 : vector<8x32xf32>
    %258 = math.exp %257 : vector<8x32xf32>
    %cst_121 = arith.constant 1.000000e+00 : f32
    %259 = vector.broadcast %cst_121 : f32 to vector<8x32xf32>
    %260 = arith.addf %259, %258 : vector<8x32xf32>
    %261 = arith.divf %259, %260 : vector<8x32xf32>
    %262 = vector.extract_strided_slice %249 {offsets = [0, 64], sizes = [8, 32], strides = [1, 1]} : vector<8x128xf32> to vector<8x32xf32>
    %263 = math.tanh %262 : vector<8x32xf32>
    %264 = vector.extract_strided_slice %249 {offsets = [0, 96], sizes = [8, 32], strides = [1, 1]} : vector<8x128xf32> to vector<8x32xf32>
    %265 = arith.negf %264 : vector<8x32xf32>
    %266 = math.exp %265 : vector<8x32xf32>
    %cst_122 = arith.constant 1.000000e+00 : f32
    %267 = vector.broadcast %cst_122 : f32 to vector<8x32xf32>
    %268 = arith.addf %267, %266 : vector<8x32xf32>
    %269 = arith.divf %267, %268 : vector<8x32xf32>
    %270 = arith.mulf %261, %247 : vector<8x32xf32>
    %271 = arith.mulf %255, %263 : vector<8x32xf32>
    %272 = arith.addf %270, %271 : vector<8x32xf32>
    %273 = math.tanh %272 : vector<8x32xf32>
    %274 = arith.mulf %269, %273 : vector<8x32xf32>
    %c0_123 = arith.constant 0 : index
    %c0_124 = arith.constant 0 : index
    %275 = vector.load %arg15[%c0_123, %c0_124] : memref<8x32xf32, #tpu.memory_space<vmem>>, vector<8x32xf32>
    tpu.vector_store %arg15[%c0_123, %c0_124], %274 {strides = array<i32>} : memref<8x32xf32, #tpu.memory_space<vmem>>, vector<8x32xf32>,
    %c0_125 = arith.constant 0 : index
    %c0_126 = arith.constant 0 : index
    %276 = vector.load %arg16[%c0_125, %c0_126] : memref<8x32xf32, #tpu.memory_space<vmem>>, vector<8x32xf32>
    tpu.vector_store %arg16[%c0_125, %c0_126], %272 {strides = array<i32>} : memref<8x32xf32, #tpu.memory_space<vmem>>, vector<8x32xf32>,
    %277 = arith.index_cast %243 : i32 to index
    %c0_127 = arith.constant 0 : index
    %278 = vector.load %arg13[%277, %c0_127] : memref<64x32xf32, #tpu.memory_space<vmem>>, vector<8x32xf32>
    tpu.vector_store %arg13[%277, %c0_127], %274 {strides = array<i32>} : memref<64x32xf32, #tpu.memory_space<vmem>>, vector<8x32xf32>,
    %c7_i32_128 = arith.constant 7 : i32
    %279 = arith.subi %c7_i32_128, %c3_i32 : i32
    %c8_i32_129 = arith.constant 8 : i32
    %280 = arith.muli %279, %c8_i32_129 : i32
    %281 = tpu.assume_multiple %280, 8 : i32
    %282 = arith.index_cast %281 : i32 to index
    %c128_130 = arith.constant 128 : index
    %283 = vector.load %arg12[%282, %c128_130] : memref<64x256xf32, #tpu.memory_space<vmem>>, vector<8x128xf32>
    %c0_131 = arith.constant 0 : index
    %c0_132 = arith.constant 0 : index
    %284 = vector.load %arg17[%c0_131, %c0_132] : memref<8x32xf32, #tpu.memory_space<vmem>>, vector<8x32xf32>
    %c0_133 = arith.constant 0 : index
    %c0_134 = arith.constant 0 : index
    %285 = vector.load %arg18[%c0_133, %c0_134] : memref<8x32xf32, #tpu.memory_space<vmem>>, vector<8x32xf32>
    %cst_135 = arith.constant dense<0.000000e+00> : vector<8x128xf32>
    %286 = tpu.matmul %284, %16, %cst_135 {dimension_numbers = #tpu.dot_dimension_numbers<[1], [0], [0], [1], [0, 0, 1, 1], [], []>} : vector<8x32xf32>, vector<32x128xf32>, vector<8x128xf32> -> vector<8x128xf32>
    %287 = arith.addf %283, %286 : vector<8x128xf32>
    %288 = vector.extract_strided_slice %287 {offsets = [0, 0], sizes = [8, 32], strides = [1, 1]} : vector<8x128xf32> to vector<8x32xf32>
    %289 = arith.negf %288 : vector<8x32xf32>
    %290 = math.exp %289 : vector<8x32xf32>
    %cst_136 = arith.constant 1.000000e+00 : f32
    %291 = vector.broadcast %cst_136 : f32 to vector<8x32xf32>
    %292 = arith.addf %291, %290 : vector<8x32xf32>
    %293 = arith.divf %291, %292 : vector<8x32xf32>
    %294 = vector.extract_strided_slice %287 {offsets = [0, 32], sizes = [8, 32], strides = [1, 1]} : vector<8x128xf32> to vector<8x32xf32>
    %295 = arith.negf %294 : vector<8x32xf32>
    %296 = math.exp %295 : vector<8x32xf32>
    %cst_137 = arith.constant 1.000000e+00 : f32
    %297 = vector.broadcast %cst_137 : f32 to vector<8x32xf32>
    %298 = arith.addf %297, %296 : vector<8x32xf32>
    %299 = arith.divf %297, %298 : vector<8x32xf32>
    %300 = vector.extract_strided_slice %287 {offsets = [0, 64], sizes = [8, 32], strides = [1, 1]} : vector<8x128xf32> to vector<8x32xf32>
    %301 = math.tanh %300 : vector<8x32xf32>
    %302 = vector.extract_strided_slice %287 {offsets = [0, 96], sizes = [8, 32], strides = [1, 1]} : vector<8x128xf32> to vector<8x32xf32>
    %303 = arith.negf %302 : vector<8x32xf32>
    %304 = math.exp %303 : vector<8x32xf32>
    %cst_138 = arith.constant 1.000000e+00 : f32
    %305 = vector.broadcast %cst_138 : f32 to vector<8x32xf32>
    %306 = arith.addf %305, %304 : vector<8x32xf32>
    %307 = arith.divf %305, %306 : vector<8x32xf32>
    %308 = arith.mulf %299, %285 : vector<8x32xf32>
    %309 = arith.mulf %293, %301 : vector<8x32xf32>
    %310 = arith.addf %308, %309 : vector<8x32xf32>
    %311 = math.tanh %310 : vector<8x32xf32>
    %312 = arith.mulf %307, %311 : vector<8x32xf32>
    %c0_139 = arith.constant 0 : index
    %c0_140 = arith.constant 0 : index
    %313 = vector.load %arg17[%c0_139, %c0_140] : memref<8x32xf32, #tpu.memory_space<vmem>>, vector<8x32xf32>
    tpu.vector_store %arg17[%c0_139, %c0_140], %312 {strides = array<i32>} : memref<8x32xf32, #tpu.memory_space<vmem>>, vector<8x32xf32>,
    %c0_141 = arith.constant 0 : index
    %c0_142 = arith.constant 0 : index
    %314 = vector.load %arg18[%c0_141, %c0_142] : memref<8x32xf32, #tpu.memory_space<vmem>>, vector<8x32xf32>
    tpu.vector_store %arg18[%c0_141, %c0_142], %310 {strides = array<i32>} : memref<8x32xf32, #tpu.memory_space<vmem>>, vector<8x32xf32>,
    %315 = arith.index_cast %281 : i32 to index
    %c0_143 = arith.constant 0 : index
    %316 = vector.load %arg14[%315, %c0_143] : memref<64x32xf32, #tpu.memory_space<vmem>>, vector<8x32xf32>
    tpu.vector_store %arg14[%315, %c0_143], %312 {strides = array<i32>} : memref<64x32xf32, #tpu.memory_space<vmem>>, vector<8x32xf32>,
    %c4_i32 = arith.constant 4 : i32
    %c8_i32_144 = arith.constant 8 : i32
    %317 = arith.muli %c4_i32, %c8_i32_144 : i32
    %318 = tpu.assume_multiple %317, 8 : i32
    %319 = arith.index_cast %318 : i32 to index
    %c0_145 = arith.constant 0 : index
    %320 = vector.load %arg12[%319, %c0_145] : memref<64x256xf32, #tpu.memory_space<vmem>>, vector<8x128xf32>
    %c0_146 = arith.constant 0 : index
    %c0_147 = arith.constant 0 : index
    %321 = vector.load %arg15[%c0_146, %c0_147] : memref<8x32xf32, #tpu.memory_space<vmem>>, vector<8x32xf32>
    %c0_148 = arith.constant 0 : index
    %c0_149 = arith.constant 0 : index
    %322 = vector.load %arg16[%c0_148, %c0_149] : memref<8x32xf32, #tpu.memory_space<vmem>>, vector<8x32xf32>
    %cst_150 = arith.constant dense<0.000000e+00> : vector<8x128xf32>
    %323 = tpu.matmul %321, %15, %cst_150 {dimension_numbers = #tpu.dot_dimension_numbers<[1], [0], [0], [1], [0, 0, 1, 1], [], []>} : vector<8x32xf32>, vector<32x128xf32>, vector<8x128xf32> -> vector<8x128xf32>
    %324 = arith.addf %320, %323 : vector<8x128xf32>
    %325 = vector.extract_strided_slice %324 {offsets = [0, 0], sizes = [8, 32], strides = [1, 1]} : vector<8x128xf32> to vector<8x32xf32>
    %326 = arith.negf %325 : vector<8x32xf32>
    %327 = math.exp %326 : vector<8x32xf32>
    %cst_151 = arith.constant 1.000000e+00 : f32
    %328 = vector.broadcast %cst_151 : f32 to vector<8x32xf32>
    %329 = arith.addf %328, %327 : vector<8x32xf32>
    %330 = arith.divf %328, %329 : vector<8x32xf32>
    %331 = vector.extract_strided_slice %324 {offsets = [0, 32], sizes = [8, 32], strides = [1, 1]} : vector<8x128xf32> to vector<8x32xf32>
    %332 = arith.negf %331 : vector<8x32xf32>
    %333 = math.exp %332 : vector<8x32xf32>
    %cst_152 = arith.constant 1.000000e+00 : f32
    %334 = vector.broadcast %cst_152 : f32 to vector<8x32xf32>
    %335 = arith.addf %334, %333 : vector<8x32xf32>
    %336 = arith.divf %334, %335 : vector<8x32xf32>
    %337 = vector.extract_strided_slice %324 {offsets = [0, 64], sizes = [8, 32], strides = [1, 1]} : vector<8x128xf32> to vector<8x32xf32>
    %338 = math.tanh %337 : vector<8x32xf32>
    %339 = vector.extract_strided_slice %324 {offsets = [0, 96], sizes = [8, 32], strides = [1, 1]} : vector<8x128xf32> to vector<8x32xf32>
    %340 = arith.negf %339 : vector<8x32xf32>
    %341 = math.exp %340 : vector<8x32xf32>
    %cst_153 = arith.constant 1.000000e+00 : f32
    %342 = vector.broadcast %cst_153 : f32 to vector<8x32xf32>
    %343 = arith.addf %342, %341 : vector<8x32xf32>
    %344 = arith.divf %342, %343 : vector<8x32xf32>
    %345 = arith.mulf %336, %322 : vector<8x32xf32>
    %346 = arith.mulf %330, %338 : vector<8x32xf32>
    %347 = arith.addf %345, %346 : vector<8x32xf32>
    %348 = math.tanh %347 : vector<8x32xf32>
    %349 = arith.mulf %344, %348 : vector<8x32xf32>
    %c0_154 = arith.constant 0 : index
    %c0_155 = arith.constant 0 : index
    %350 = vector.load %arg15[%c0_154, %c0_155] : memref<8x32xf32, #tpu.memory_space<vmem>>, vector<8x32xf32>
    tpu.vector_store %arg15[%c0_154, %c0_155], %349 {strides = array<i32>} : memref<8x32xf32, #tpu.memory_space<vmem>>, vector<8x32xf32>,
    %c0_156 = arith.constant 0 : index
    %c0_157 = arith.constant 0 : index
    %351 = vector.load %arg16[%c0_156, %c0_157] : memref<8x32xf32, #tpu.memory_space<vmem>>, vector<8x32xf32>
    tpu.vector_store %arg16[%c0_156, %c0_157], %347 {strides = array<i32>} : memref<8x32xf32, #tpu.memory_space<vmem>>, vector<8x32xf32>,
    %352 = arith.index_cast %318 : i32 to index
    %c0_158 = arith.constant 0 : index
    %353 = vector.load %arg13[%352, %c0_158] : memref<64x32xf32, #tpu.memory_space<vmem>>, vector<8x32xf32>
    tpu.vector_store %arg13[%352, %c0_158], %349 {strides = array<i32>} : memref<64x32xf32, #tpu.memory_space<vmem>>, vector<8x32xf32>,
    %c7_i32_159 = arith.constant 7 : i32
    %354 = arith.subi %c7_i32_159, %c4_i32 : i32
    %c8_i32_160 = arith.constant 8 : i32
    %355 = arith.muli %354, %c8_i32_160 : i32
    %356 = tpu.assume_multiple %355, 8 : i32
    %357 = arith.index_cast %356 : i32 to index
    %c128_161 = arith.constant 128 : index
    %358 = vector.load %arg12[%357, %c128_161] : memref<64x256xf32, #tpu.memory_space<vmem>>, vector<8x128xf32>
    %c0_162 = arith.constant 0 : index
    %c0_163 = arith.constant 0 : index
    %359 = vector.load %arg17[%c0_162, %c0_163] : memref<8x32xf32, #tpu.memory_space<vmem>>, vector<8x32xf32>
    %c0_164 = arith.constant 0 : index
    %c0_165 = arith.constant 0 : index
    %360 = vector.load %arg18[%c0_164, %c0_165] : memref<8x32xf32, #tpu.memory_space<vmem>>, vector<8x32xf32>
    %cst_166 = arith.constant dense<0.000000e+00> : vector<8x128xf32>
    %361 = tpu.matmul %359, %16, %cst_166 {dimension_numbers = #tpu.dot_dimension_numbers<[1], [0], [0], [1], [0, 0, 1, 1], [], []>} : vector<8x32xf32>, vector<32x128xf32>, vector<8x128xf32> -> vector<8x128xf32>
    %362 = arith.addf %358, %361 : vector<8x128xf32>
    %363 = vector.extract_strided_slice %362 {offsets = [0, 0], sizes = [8, 32], strides = [1, 1]} : vector<8x128xf32> to vector<8x32xf32>
    %364 = arith.negf %363 : vector<8x32xf32>
    %365 = math.exp %364 : vector<8x32xf32>
    %cst_167 = arith.constant 1.000000e+00 : f32
    %366 = vector.broadcast %cst_167 : f32 to vector<8x32xf32>
    %367 = arith.addf %366, %365 : vector<8x32xf32>
    %368 = arith.divf %366, %367 : vector<8x32xf32>
    %369 = vector.extract_strided_slice %362 {offsets = [0, 32], sizes = [8, 32], strides = [1, 1]} : vector<8x128xf32> to vector<8x32xf32>
    %370 = arith.negf %369 : vector<8x32xf32>
    %371 = math.exp %370 : vector<8x32xf32>
    %cst_168 = arith.constant 1.000000e+00 : f32
    %372 = vector.broadcast %cst_168 : f32 to vector<8x32xf32>
    %373 = arith.addf %372, %371 : vector<8x32xf32>
    %374 = arith.divf %372, %373 : vector<8x32xf32>
    %375 = vector.extract_strided_slice %362 {offsets = [0, 64], sizes = [8, 32], strides = [1, 1]} : vector<8x128xf32> to vector<8x32xf32>
    %376 = math.tanh %375 : vector<8x32xf32>
    %377 = vector.extract_strided_slice %362 {offsets = [0, 96], sizes = [8, 32], strides = [1, 1]} : vector<8x128xf32> to vector<8x32xf32>
    %378 = arith.negf %377 : vector<8x32xf32>
    %379 = math.exp %378 : vector<8x32xf32>
    %cst_169 = arith.constant 1.000000e+00 : f32
    %380 = vector.broadcast %cst_169 : f32 to vector<8x32xf32>
    %381 = arith.addf %380, %379 : vector<8x32xf32>
    %382 = arith.divf %380, %381 : vector<8x32xf32>
    %383 = arith.mulf %374, %360 : vector<8x32xf32>
    %384 = arith.mulf %368, %376 : vector<8x32xf32>
    %385 = arith.addf %383, %384 : vector<8x32xf32>
    %386 = math.tanh %385 : vector<8x32xf32>
    %387 = arith.mulf %382, %386 : vector<8x32xf32>
    %c0_170 = arith.constant 0 : index
    %c0_171 = arith.constant 0 : index
    %388 = vector.load %arg17[%c0_170, %c0_171] : memref<8x32xf32, #tpu.memory_space<vmem>>, vector<8x32xf32>
    tpu.vector_store %arg17[%c0_170, %c0_171], %387 {strides = array<i32>} : memref<8x32xf32, #tpu.memory_space<vmem>>, vector<8x32xf32>,
    %c0_172 = arith.constant 0 : index
    %c0_173 = arith.constant 0 : index
    %389 = vector.load %arg18[%c0_172, %c0_173] : memref<8x32xf32, #tpu.memory_space<vmem>>, vector<8x32xf32>
    tpu.vector_store %arg18[%c0_172, %c0_173], %385 {strides = array<i32>} : memref<8x32xf32, #tpu.memory_space<vmem>>, vector<8x32xf32>,
    %390 = arith.index_cast %356 : i32 to index
    %c0_174 = arith.constant 0 : index
    %391 = vector.load %arg14[%390, %c0_174] : memref<64x32xf32, #tpu.memory_space<vmem>>, vector<8x32xf32>
    tpu.vector_store %arg14[%390, %c0_174], %387 {strides = array<i32>} : memref<64x32xf32, #tpu.memory_space<vmem>>, vector<8x32xf32>,
    %c5_i32 = arith.constant 5 : i32
    %c8_i32_175 = arith.constant 8 : i32
    %392 = arith.muli %c5_i32, %c8_i32_175 : i32
    %393 = tpu.assume_multiple %392, 8 : i32
    %394 = arith.index_cast %393 : i32 to index
    %c0_176 = arith.constant 0 : index
    %395 = vector.load %arg12[%394, %c0_176] : memref<64x256xf32, #tpu.memory_space<vmem>>, vector<8x128xf32>
    %c0_177 = arith.constant 0 : index
    %c0_178 = arith.constant 0 : index
    %396 = vector.load %arg15[%c0_177, %c0_178] : memref<8x32xf32, #tpu.memory_space<vmem>>, vector<8x32xf32>
    %c0_179 = arith.constant 0 : index
    %c0_180 = arith.constant 0 : index
    %397 = vector.load %arg16[%c0_179, %c0_180] : memref<8x32xf32, #tpu.memory_space<vmem>>, vector<8x32xf32>
    %cst_181 = arith.constant dense<0.000000e+00> : vector<8x128xf32>
    %398 = tpu.matmul %396, %15, %cst_181 {dimension_numbers = #tpu.dot_dimension_numbers<[1], [0], [0], [1], [0, 0, 1, 1], [], []>} : vector<8x32xf32>, vector<32x128xf32>, vector<8x128xf32> -> vector<8x128xf32>
    %399 = arith.addf %395, %398 : vector<8x128xf32>
    %400 = vector.extract_strided_slice %399 {offsets = [0, 0], sizes = [8, 32], strides = [1, 1]} : vector<8x128xf32> to vector<8x32xf32>
    %401 = arith.negf %400 : vector<8x32xf32>
    %402 = math.exp %401 : vector<8x32xf32>
    %cst_182 = arith.constant 1.000000e+00 : f32
    %403 = vector.broadcast %cst_182 : f32 to vector<8x32xf32>
    %404 = arith.addf %403, %402 : vector<8x32xf32>
    %405 = arith.divf %403, %404 : vector<8x32xf32>
    %406 = vector.extract_strided_slice %399 {offsets = [0, 32], sizes = [8, 32], strides = [1, 1]} : vector<8x128xf32> to vector<8x32xf32>
    %407 = arith.negf %406 : vector<8x32xf32>
    %408 = math.exp %407 : vector<8x32xf32>
    %cst_183 = arith.constant 1.000000e+00 : f32
    %409 = vector.broadcast %cst_183 : f32 to vector<8x32xf32>
    %410 = arith.addf %409, %408 : vector<8x32xf32>
    %411 = arith.divf %409, %410 : vector<8x32xf32>
    %412 = vector.extract_strided_slice %399 {offsets = [0, 64], sizes = [8, 32], strides = [1, 1]} : vector<8x128xf32> to vector<8x32xf32>
    %413 = math.tanh %412 : vector<8x32xf32>
    %414 = vector.extract_strided_slice %399 {offsets = [0, 96], sizes = [8, 32], strides = [1, 1]} : vector<8x128xf32> to vector<8x32xf32>
    %415 = arith.negf %414 : vector<8x32xf32>
    %416 = math.exp %415 : vector<8x32xf32>
    %cst_184 = arith.constant 1.000000e+00 : f32
    %417 = vector.broadcast %cst_184 : f32 to vector<8x32xf32>
    %418 = arith.addf %417, %416 : vector<8x32xf32>
    %419 = arith.divf %417, %418 : vector<8x32xf32>
    %420 = arith.mulf %411, %397 : vector<8x32xf32>
    %421 = arith.mulf %405, %413 : vector<8x32xf32>
    %422 = arith.addf %420, %421 : vector<8x32xf32>
    %423 = math.tanh %422 : vector<8x32xf32>
    %424 = arith.mulf %419, %423 : vector<8x32xf32>
    %c0_185 = arith.constant 0 : index
    %c0_186 = arith.constant 0 : index
    %425 = vector.load %arg15[%c0_185, %c0_186] : memref<8x32xf32, #tpu.memory_space<vmem>>, vector<8x32xf32>
    tpu.vector_store %arg15[%c0_185, %c0_186], %424 {strides = array<i32>} : memref<8x32xf32, #tpu.memory_space<vmem>>, vector<8x32xf32>,
    %c0_187 = arith.constant 0 : index
    %c0_188 = arith.constant 0 : index
    %426 = vector.load %arg16[%c0_187, %c0_188] : memref<8x32xf32, #tpu.memory_space<vmem>>, vector<8x32xf32>
    tpu.vector_store %arg16[%c0_187, %c0_188], %422 {strides = array<i32>} : memref<8x32xf32, #tpu.memory_space<vmem>>, vector<8x32xf32>,
    %427 = arith.index_cast %393 : i32 to index
    %c0_189 = arith.constant 0 : index
    %428 = vector.load %arg13[%427, %c0_189] : memref<64x32xf32, #tpu.memory_space<vmem>>, vector<8x32xf32>
    tpu.vector_store %arg13[%427, %c0_189], %424 {strides = array<i32>} : memref<64x32xf32, #tpu.memory_space<vmem>>, vector<8x32xf32>,
    %c7_i32_190 = arith.constant 7 : i32
    %429 = arith.subi %c7_i32_190, %c5_i32 : i32
    %c8_i32_191 = arith.constant 8 : i32
    %430 = arith.muli %429, %c8_i32_191 : i32
    %431 = tpu.assume_multiple %430, 8 : i32
    %432 = arith.index_cast %431 : i32 to index
    %c128_192 = arith.constant 128 : index
    %433 = vector.load %arg12[%432, %c128_192] : memref<64x256xf32, #tpu.memory_space<vmem>>, vector<8x128xf32>
    %c0_193 = arith.constant 0 : index
    %c0_194 = arith.constant 0 : index
    %434 = vector.load %arg17[%c0_193, %c0_194] : memref<8x32xf32, #tpu.memory_space<vmem>>, vector<8x32xf32>
    %c0_195 = arith.constant 0 : index
    %c0_196 = arith.constant 0 : index
    %435 = vector.load %arg18[%c0_195, %c0_196] : memref<8x32xf32, #tpu.memory_space<vmem>>, vector<8x32xf32>
    %cst_197 = arith.constant dense<0.000000e+00> : vector<8x128xf32>
    %436 = tpu.matmul %434, %16, %cst_197 {dimension_numbers = #tpu.dot_dimension_numbers<[1], [0], [0], [1], [0, 0, 1, 1], [], []>} : vector<8x32xf32>, vector<32x128xf32>, vector<8x128xf32> -> vector<8x128xf32>
    %437 = arith.addf %433, %436 : vector<8x128xf32>
    %438 = vector.extract_strided_slice %437 {offsets = [0, 0], sizes = [8, 32], strides = [1, 1]} : vector<8x128xf32> to vector<8x32xf32>
    %439 = arith.negf %438 : vector<8x32xf32>
    %440 = math.exp %439 : vector<8x32xf32>
    %cst_198 = arith.constant 1.000000e+00 : f32
    %441 = vector.broadcast %cst_198 : f32 to vector<8x32xf32>
    %442 = arith.addf %441, %440 : vector<8x32xf32>
    %443 = arith.divf %441, %442 : vector<8x32xf32>
    %444 = vector.extract_strided_slice %437 {offsets = [0, 32], sizes = [8, 32], strides = [1, 1]} : vector<8x128xf32> to vector<8x32xf32>
    %445 = arith.negf %444 : vector<8x32xf32>
    %446 = math.exp %445 : vector<8x32xf32>
    %cst_199 = arith.constant 1.000000e+00 : f32
    %447 = vector.broadcast %cst_199 : f32 to vector<8x32xf32>
    %448 = arith.addf %447, %446 : vector<8x32xf32>
    %449 = arith.divf %447, %448 : vector<8x32xf32>
    %450 = vector.extract_strided_slice %437 {offsets = [0, 64], sizes = [8, 32], strides = [1, 1]} : vector<8x128xf32> to vector<8x32xf32>
    %451 = math.tanh %450 : vector<8x32xf32>
    %452 = vector.extract_strided_slice %437 {offsets = [0, 96], sizes = [8, 32], strides = [1, 1]} : vector<8x128xf32> to vector<8x32xf32>
    %453 = arith.negf %452 : vector<8x32xf32>
    %454 = math.exp %453 : vector<8x32xf32>
    %cst_200 = arith.constant 1.000000e+00 : f32
    %455 = vector.broadcast %cst_200 : f32 to vector<8x32xf32>
    %456 = arith.addf %455, %454 : vector<8x32xf32>
    %457 = arith.divf %455, %456 : vector<8x32xf32>
    %458 = arith.mulf %449, %435 : vector<8x32xf32>
    %459 = arith.mulf %443, %451 : vector<8x32xf32>
    %460 = arith.addf %458, %459 : vector<8x32xf32>
    %461 = math.tanh %460 : vector<8x32xf32>
    %462 = arith.mulf %457, %461 : vector<8x32xf32>
    %c0_201 = arith.constant 0 : index
    %c0_202 = arith.constant 0 : index
    %463 = vector.load %arg17[%c0_201, %c0_202] : memref<8x32xf32, #tpu.memory_space<vmem>>, vector<8x32xf32>
    tpu.vector_store %arg17[%c0_201, %c0_202], %462 {strides = array<i32>} : memref<8x32xf32, #tpu.memory_space<vmem>>, vector<8x32xf32>,
    %c0_203 = arith.constant 0 : index
    %c0_204 = arith.constant 0 : index
    %464 = vector.load %arg18[%c0_203, %c0_204] : memref<8x32xf32, #tpu.memory_space<vmem>>, vector<8x32xf32>
    tpu.vector_store %arg18[%c0_203, %c0_204], %460 {strides = array<i32>} : memref<8x32xf32, #tpu.memory_space<vmem>>, vector<8x32xf32>,
    %465 = arith.index_cast %431 : i32 to index
    %c0_205 = arith.constant 0 : index
    %466 = vector.load %arg14[%465, %c0_205] : memref<64x32xf32, #tpu.memory_space<vmem>>, vector<8x32xf32>
    tpu.vector_store %arg14[%465, %c0_205], %462 {strides = array<i32>} : memref<64x32xf32, #tpu.memory_space<vmem>>, vector<8x32xf32>,
    %c6_i32 = arith.constant 6 : i32
    %c8_i32_206 = arith.constant 8 : i32
    %467 = arith.muli %c6_i32, %c8_i32_206 : i32
    %468 = tpu.assume_multiple %467, 8 : i32
    %469 = arith.index_cast %468 : i32 to index
    %c0_207 = arith.constant 0 : index
    %470 = vector.load %arg12[%469, %c0_207] : memref<64x256xf32, #tpu.memory_space<vmem>>, vector<8x128xf32>
    %c0_208 = arith.constant 0 : index
    %c0_209 = arith.constant 0 : index
    %471 = vector.load %arg15[%c0_208, %c0_209] : memref<8x32xf32, #tpu.memory_space<vmem>>, vector<8x32xf32>
    %c0_210 = arith.constant 0 : index
    %c0_211 = arith.constant 0 : index
    %472 = vector.load %arg16[%c0_210, %c0_211] : memref<8x32xf32, #tpu.memory_space<vmem>>, vector<8x32xf32>
    %cst_212 = arith.constant dense<0.000000e+00> : vector<8x128xf32>
    %473 = tpu.matmul %471, %15, %cst_212 {dimension_numbers = #tpu.dot_dimension_numbers<[1], [0], [0], [1], [0, 0, 1, 1], [], []>} : vector<8x32xf32>, vector<32x128xf32>, vector<8x128xf32> -> vector<8x128xf32>
    %474 = arith.addf %470, %473 : vector<8x128xf32>
    %475 = vector.extract_strided_slice %474 {offsets = [0, 0], sizes = [8, 32], strides = [1, 1]} : vector<8x128xf32> to vector<8x32xf32>
    %476 = arith.negf %475 : vector<8x32xf32>
    %477 = math.exp %476 : vector<8x32xf32>
    %cst_213 = arith.constant 1.000000e+00 : f32
    %478 = vector.broadcast %cst_213 : f32 to vector<8x32xf32>
    %479 = arith.addf %478, %477 : vector<8x32xf32>
    %480 = arith.divf %478, %479 : vector<8x32xf32>
    %481 = vector.extract_strided_slice %474 {offsets = [0, 32], sizes = [8, 32], strides = [1, 1]} : vector<8x128xf32> to vector<8x32xf32>
    %482 = arith.negf %481 : vector<8x32xf32>
    %483 = math.exp %482 : vector<8x32xf32>
    %cst_214 = arith.constant 1.000000e+00 : f32
    %484 = vector.broadcast %cst_214 : f32 to vector<8x32xf32>
    %485 = arith.addf %484, %483 : vector<8x32xf32>
    %486 = arith.divf %484, %485 : vector<8x32xf32>
    %487 = vector.extract_strided_slice %474 {offsets = [0, 64], sizes = [8, 32], strides = [1, 1]} : vector<8x128xf32> to vector<8x32xf32>
    %488 = math.tanh %487 : vector<8x32xf32>
    %489 = vector.extract_strided_slice %474 {offsets = [0, 96], sizes = [8, 32], strides = [1, 1]} : vector<8x128xf32> to vector<8x32xf32>
    %490 = arith.negf %489 : vector<8x32xf32>
    %491 = math.exp %490 : vector<8x32xf32>
    %cst_215 = arith.constant 1.000000e+00 : f32
    %492 = vector.broadcast %cst_215 : f32 to vector<8x32xf32>
    %493 = arith.addf %492, %491 : vector<8x32xf32>
    %494 = arith.divf %492, %493 : vector<8x32xf32>
    %495 = arith.mulf %486, %472 : vector<8x32xf32>
    %496 = arith.mulf %480, %488 : vector<8x32xf32>
    %497 = arith.addf %495, %496 : vector<8x32xf32>
    %498 = math.tanh %497 : vector<8x32xf32>
    %499 = arith.mulf %494, %498 : vector<8x32xf32>
    %c0_216 = arith.constant 0 : index
    %c0_217 = arith.constant 0 : index
    %500 = vector.load %arg15[%c0_216, %c0_217] : memref<8x32xf32, #tpu.memory_space<vmem>>, vector<8x32xf32>
    tpu.vector_store %arg15[%c0_216, %c0_217], %499 {strides = array<i32>} : memref<8x32xf32, #tpu.memory_space<vmem>>, vector<8x32xf32>,
    %c0_218 = arith.constant 0 : index
    %c0_219 = arith.constant 0 : index
    %501 = vector.load %arg16[%c0_218, %c0_219] : memref<8x32xf32, #tpu.memory_space<vmem>>, vector<8x32xf32>
    tpu.vector_store %arg16[%c0_218, %c0_219], %497 {strides = array<i32>} : memref<8x32xf32, #tpu.memory_space<vmem>>, vector<8x32xf32>,
    %502 = arith.index_cast %468 : i32 to index
    %c0_220 = arith.constant 0 : index
    %503 = vector.load %arg13[%502, %c0_220] : memref<64x32xf32, #tpu.memory_space<vmem>>, vector<8x32xf32>
    tpu.vector_store %arg13[%502, %c0_220], %499 {strides = array<i32>} : memref<64x32xf32, #tpu.memory_space<vmem>>, vector<8x32xf32>,
    %c7_i32_221 = arith.constant 7 : i32
    %504 = arith.subi %c7_i32_221, %c6_i32 : i32
    %c8_i32_222 = arith.constant 8 : i32
    %505 = arith.muli %504, %c8_i32_222 : i32
    %506 = tpu.assume_multiple %505, 8 : i32
    %507 = arith.index_cast %506 : i32 to index
    %c128_223 = arith.constant 128 : index
    %508 = vector.load %arg12[%507, %c128_223] : memref<64x256xf32, #tpu.memory_space<vmem>>, vector<8x128xf32>
    %c0_224 = arith.constant 0 : index
    %c0_225 = arith.constant 0 : index
    %509 = vector.load %arg17[%c0_224, %c0_225] : memref<8x32xf32, #tpu.memory_space<vmem>>, vector<8x32xf32>
    %c0_226 = arith.constant 0 : index
    %c0_227 = arith.constant 0 : index
    %510 = vector.load %arg18[%c0_226, %c0_227] : memref<8x32xf32, #tpu.memory_space<vmem>>, vector<8x32xf32>
    %cst_228 = arith.constant dense<0.000000e+00> : vector<8x128xf32>
    %511 = tpu.matmul %509, %16, %cst_228 {dimension_numbers = #tpu.dot_dimension_numbers<[1], [0], [0], [1], [0, 0, 1, 1], [], []>} : vector<8x32xf32>, vector<32x128xf32>, vector<8x128xf32> -> vector<8x128xf32>
    %512 = arith.addf %508, %511 : vector<8x128xf32>
    %513 = vector.extract_strided_slice %512 {offsets = [0, 0], sizes = [8, 32], strides = [1, 1]} : vector<8x128xf32> to vector<8x32xf32>
    %514 = arith.negf %513 : vector<8x32xf32>
    %515 = math.exp %514 : vector<8x32xf32>
    %cst_229 = arith.constant 1.000000e+00 : f32
    %516 = vector.broadcast %cst_229 : f32 to vector<8x32xf32>
    %517 = arith.addf %516, %515 : vector<8x32xf32>
    %518 = arith.divf %516, %517 : vector<8x32xf32>
    %519 = vector.extract_strided_slice %512 {offsets = [0, 32], sizes = [8, 32], strides = [1, 1]} : vector<8x128xf32> to vector<8x32xf32>
    %520 = arith.negf %519 : vector<8x32xf32>
    %521 = math.exp %520 : vector<8x32xf32>
    %cst_230 = arith.constant 1.000000e+00 : f32
    %522 = vector.broadcast %cst_230 : f32 to vector<8x32xf32>
    %523 = arith.addf %522, %521 : vector<8x32xf32>
    %524 = arith.divf %522, %523 : vector<8x32xf32>
    %525 = vector.extract_strided_slice %512 {offsets = [0, 64], sizes = [8, 32], strides = [1, 1]} : vector<8x128xf32> to vector<8x32xf32>
    %526 = math.tanh %525 : vector<8x32xf32>
    %527 = vector.extract_strided_slice %512 {offsets = [0, 96], sizes = [8, 32], strides = [1, 1]} : vector<8x128xf32> to vector<8x32xf32>
    %528 = arith.negf %527 : vector<8x32xf32>
    %529 = math.exp %528 : vector<8x32xf32>
    %cst_231 = arith.constant 1.000000e+00 : f32
    %530 = vector.broadcast %cst_231 : f32 to vector<8x32xf32>
    %531 = arith.addf %530, %529 : vector<8x32xf32>
    %532 = arith.divf %530, %531 : vector<8x32xf32>
    %533 = arith.mulf %524, %510 : vector<8x32xf32>
    %534 = arith.mulf %518, %526 : vector<8x32xf32>
    %535 = arith.addf %533, %534 : vector<8x32xf32>
    %536 = math.tanh %535 : vector<8x32xf32>
    %537 = arith.mulf %532, %536 : vector<8x32xf32>
    %c0_232 = arith.constant 0 : index
    %c0_233 = arith.constant 0 : index
    %538 = vector.load %arg17[%c0_232, %c0_233] : memref<8x32xf32, #tpu.memory_space<vmem>>, vector<8x32xf32>
    tpu.vector_store %arg17[%c0_232, %c0_233], %537 {strides = array<i32>} : memref<8x32xf32, #tpu.memory_space<vmem>>, vector<8x32xf32>,
    %c0_234 = arith.constant 0 : index
    %c0_235 = arith.constant 0 : index
    %539 = vector.load %arg18[%c0_234, %c0_235] : memref<8x32xf32, #tpu.memory_space<vmem>>, vector<8x32xf32>
    tpu.vector_store %arg18[%c0_234, %c0_235], %535 {strides = array<i32>} : memref<8x32xf32, #tpu.memory_space<vmem>>, vector<8x32xf32>,
    %540 = arith.index_cast %506 : i32 to index
    %c0_236 = arith.constant 0 : index
    %541 = vector.load %arg14[%540, %c0_236] : memref<64x32xf32, #tpu.memory_space<vmem>>, vector<8x32xf32>
    tpu.vector_store %arg14[%540, %c0_236], %537 {strides = array<i32>} : memref<64x32xf32, #tpu.memory_space<vmem>>, vector<8x32xf32>,
    %c7_i32_237 = arith.constant 7 : i32
    %c8_i32_238 = arith.constant 8 : i32
    %542 = arith.muli %c7_i32_237, %c8_i32_238 : i32
    %543 = tpu.assume_multiple %542, 8 : i32
    %544 = arith.index_cast %543 : i32 to index
    %c0_239 = arith.constant 0 : index
    %545 = vector.load %arg12[%544, %c0_239] : memref<64x256xf32, #tpu.memory_space<vmem>>, vector<8x128xf32>
    %c0_240 = arith.constant 0 : index
    %c0_241 = arith.constant 0 : index
    %546 = vector.load %arg15[%c0_240, %c0_241] : memref<8x32xf32, #tpu.memory_space<vmem>>, vector<8x32xf32>
    %c0_242 = arith.constant 0 : index
    %c0_243 = arith.constant 0 : index
    %547 = vector.load %arg16[%c0_242, %c0_243] : memref<8x32xf32, #tpu.memory_space<vmem>>, vector<8x32xf32>
    %cst_244 = arith.constant dense<0.000000e+00> : vector<8x128xf32>
    %548 = tpu.matmul %546, %15, %cst_244 {dimension_numbers = #tpu.dot_dimension_numbers<[1], [0], [0], [1], [0, 0, 1, 1], [], []>} : vector<8x32xf32>, vector<32x128xf32>, vector<8x128xf32> -> vector<8x128xf32>
    %549 = arith.addf %545, %548 : vector<8x128xf32>
    %550 = vector.extract_strided_slice %549 {offsets = [0, 0], sizes = [8, 32], strides = [1, 1]} : vector<8x128xf32> to vector<8x32xf32>
    %551 = arith.negf %550 : vector<8x32xf32>
    %552 = math.exp %551 : vector<8x32xf32>
    %cst_245 = arith.constant 1.000000e+00 : f32
    %553 = vector.broadcast %cst_245 : f32 to vector<8x32xf32>
    %554 = arith.addf %553, %552 : vector<8x32xf32>
    %555 = arith.divf %553, %554 : vector<8x32xf32>
    %556 = vector.extract_strided_slice %549 {offsets = [0, 32], sizes = [8, 32], strides = [1, 1]} : vector<8x128xf32> to vector<8x32xf32>
    %557 = arith.negf %556 : vector<8x32xf32>
    %558 = math.exp %557 : vector<8x32xf32>
    %cst_246 = arith.constant 1.000000e+00 : f32
    %559 = vector.broadcast %cst_246 : f32 to vector<8x32xf32>
    %560 = arith.addf %559, %558 : vector<8x32xf32>
    %561 = arith.divf %559, %560 : vector<8x32xf32>
    %562 = vector.extract_strided_slice %549 {offsets = [0, 64], sizes = [8, 32], strides = [1, 1]} : vector<8x128xf32> to vector<8x32xf32>
    %563 = math.tanh %562 : vector<8x32xf32>
    %564 = vector.extract_strided_slice %549 {offsets = [0, 96], sizes = [8, 32], strides = [1, 1]} : vector<8x128xf32> to vector<8x32xf32>
    %565 = arith.negf %564 : vector<8x32xf32>
    %566 = math.exp %565 : vector<8x32xf32>
    %cst_247 = arith.constant 1.000000e+00 : f32
    %567 = vector.broadcast %cst_247 : f32 to vector<8x32xf32>
    %568 = arith.addf %567, %566 : vector<8x32xf32>
    %569 = arith.divf %567, %568 : vector<8x32xf32>
    %570 = arith.mulf %561, %547 : vector<8x32xf32>
    %571 = arith.mulf %555, %563 : vector<8x32xf32>
    %572 = arith.addf %570, %571 : vector<8x32xf32>
    %573 = math.tanh %572 : vector<8x32xf32>
    %574 = arith.mulf %569, %573 : vector<8x32xf32>
    %c0_248 = arith.constant 0 : index
    %c0_249 = arith.constant 0 : index
    %575 = vector.load %arg15[%c0_248, %c0_249] : memref<8x32xf32, #tpu.memory_space<vmem>>, vector<8x32xf32>
    tpu.vector_store %arg15[%c0_248, %c0_249], %574 {strides = array<i32>} : memref<8x32xf32, #tpu.memory_space<vmem>>, vector<8x32xf32>,
    %c0_250 = arith.constant 0 : index
    %c0_251 = arith.constant 0 : index
    %576 = vector.load %arg16[%c0_250, %c0_251] : memref<8x32xf32, #tpu.memory_space<vmem>>, vector<8x32xf32>
    tpu.vector_store %arg16[%c0_250, %c0_251], %572 {strides = array<i32>} : memref<8x32xf32, #tpu.memory_space<vmem>>, vector<8x32xf32>,
    %577 = arith.index_cast %543 : i32 to index
    %c0_252 = arith.constant 0 : index
    %578 = vector.load %arg13[%577, %c0_252] : memref<64x32xf32, #tpu.memory_space<vmem>>, vector<8x32xf32>
    tpu.vector_store %arg13[%577, %c0_252], %574 {strides = array<i32>} : memref<64x32xf32, #tpu.memory_space<vmem>>, vector<8x32xf32>,
    %c7_i32_253 = arith.constant 7 : i32
    %579 = arith.subi %c7_i32_253, %c7_i32_237 : i32
    %c8_i32_254 = arith.constant 8 : i32
    %580 = arith.muli %579, %c8_i32_254 : i32
    %581 = tpu.assume_multiple %580, 8 : i32
    %582 = arith.index_cast %581 : i32 to index
    %c128_255 = arith.constant 128 : index
    %583 = vector.load %arg12[%582, %c128_255] : memref<64x256xf32, #tpu.memory_space<vmem>>, vector<8x128xf32>
    %c0_256 = arith.constant 0 : index
    %c0_257 = arith.constant 0 : index
    %584 = vector.load %arg17[%c0_256, %c0_257] : memref<8x32xf32, #tpu.memory_space<vmem>>, vector<8x32xf32>
    %c0_258 = arith.constant 0 : index
    %c0_259 = arith.constant 0 : index
    %585 = vector.load %arg18[%c0_258, %c0_259] : memref<8x32xf32, #tpu.memory_space<vmem>>, vector<8x32xf32>
    %cst_260 = arith.constant dense<0.000000e+00> : vector<8x128xf32>
    %586 = tpu.matmul %584, %16, %cst_260 {dimension_numbers = #tpu.dot_dimension_numbers<[1], [0], [0], [1], [0, 0, 1, 1], [], []>} : vector<8x32xf32>, vector<32x128xf32>, vector<8x128xf32> -> vector<8x128xf32>
    %587 = arith.addf %583, %586 : vector<8x128xf32>
    %588 = vector.extract_strided_slice %587 {offsets = [0, 0], sizes = [8, 32], strides = [1, 1]} : vector<8x128xf32> to vector<8x32xf32>
    %589 = arith.negf %588 : vector<8x32xf32>
    %590 = math.exp %589 : vector<8x32xf32>
    %cst_261 = arith.constant 1.000000e+00 : f32
    %591 = vector.broadcast %cst_261 : f32 to vector<8x32xf32>
    %592 = arith.addf %591, %590 : vector<8x32xf32>
    %593 = arith.divf %591, %592 : vector<8x32xf32>
    %594 = vector.extract_strided_slice %587 {offsets = [0, 32], sizes = [8, 32], strides = [1, 1]} : vector<8x128xf32> to vector<8x32xf32>
    %595 = arith.negf %594 : vector<8x32xf32>
    %596 = math.exp %595 : vector<8x32xf32>
    %cst_262 = arith.constant 1.000000e+00 : f32
    %597 = vector.broadcast %cst_262 : f32 to vector<8x32xf32>
    %598 = arith.addf %597, %596 : vector<8x32xf32>
    %599 = arith.divf %597, %598 : vector<8x32xf32>
    %600 = vector.extract_strided_slice %587 {offsets = [0, 64], sizes = [8, 32], strides = [1, 1]} : vector<8x128xf32> to vector<8x32xf32>
    %601 = math.tanh %600 : vector<8x32xf32>
    %602 = vector.extract_strided_slice %587 {offsets = [0, 96], sizes = [8, 32], strides = [1, 1]} : vector<8x128xf32> to vector<8x32xf32>
    %603 = arith.negf %602 : vector<8x32xf32>
    %604 = math.exp %603 : vector<8x32xf32>
    %cst_263 = arith.constant 1.000000e+00 : f32
    %605 = vector.broadcast %cst_263 : f32 to vector<8x32xf32>
    %606 = arith.addf %605, %604 : vector<8x32xf32>
    %607 = arith.divf %605, %606 : vector<8x32xf32>
    %608 = arith.mulf %599, %585 : vector<8x32xf32>
    %609 = arith.mulf %593, %601 : vector<8x32xf32>
    %610 = arith.addf %608, %609 : vector<8x32xf32>
    %611 = math.tanh %610 : vector<8x32xf32>
    %612 = arith.mulf %607, %611 : vector<8x32xf32>
    %c0_264 = arith.constant 0 : index
    %c0_265 = arith.constant 0 : index
    %613 = vector.load %arg17[%c0_264, %c0_265] : memref<8x32xf32, #tpu.memory_space<vmem>>, vector<8x32xf32>
    tpu.vector_store %arg17[%c0_264, %c0_265], %612 {strides = array<i32>} : memref<8x32xf32, #tpu.memory_space<vmem>>, vector<8x32xf32>,
    %c0_266 = arith.constant 0 : index
    %c0_267 = arith.constant 0 : index
    %614 = vector.load %arg18[%c0_266, %c0_267] : memref<8x32xf32, #tpu.memory_space<vmem>>, vector<8x32xf32>
    tpu.vector_store %arg18[%c0_266, %c0_267], %610 {strides = array<i32>} : memref<8x32xf32, #tpu.memory_space<vmem>>, vector<8x32xf32>,
    %615 = arith.index_cast %581 : i32 to index
    %c0_268 = arith.constant 0 : index
    %616 = vector.load %arg14[%615, %c0_268] : memref<64x32xf32, #tpu.memory_space<vmem>>, vector<8x32xf32>
    tpu.vector_store %arg14[%615, %c0_268], %612 {strides = array<i32>} : memref<64x32xf32, #tpu.memory_space<vmem>>, vector<8x32xf32>,
    %c8_i32_269 = arith.constant 8 : i32
    %c0_270 = arith.constant 0 : index
    %c0_271 = arith.constant 0 : index
    %617 = vector.load %arg5[%c0_270, %c0_271] : memref<64x256xf32, #tpu.memory_space<vmem>>, vector<64x256xf32>
    %c0_272 = arith.constant 0 : index
    %c0_273 = arith.constant 0 : index
    %618 = vector.load %arg13[%c0_272, %c0_273] : memref<64x32xf32, #tpu.memory_space<vmem>>, vector<64x32xf32>
    %619 = vector.extract_strided_slice %617 {offsets = [0, 0], sizes = [32, 256], strides = [1, 1]} : vector<64x256xf32> to vector<32x256xf32>
    %cst_274 = arith.constant dense<0.000000e+00> : vector<64x256xf32>
    %620 = tpu.matmul %618, %619, %cst_274 {dimension_numbers = #tpu.dot_dimension_numbers<[1], [0], [0], [1], [0, 0, 1, 1], [], []>} : vector<64x32xf32>, vector<32x256xf32>, vector<64x256xf32> -> vector<64x256xf32>
    %c0_275 = arith.constant 0 : index
    %c0_276 = arith.constant 0 : index
    %621 = vector.load %arg14[%c0_275, %c0_276] : memref<64x32xf32, #tpu.memory_space<vmem>>, vector<64x32xf32>
    %622 = vector.extract_strided_slice %617 {offsets = [32, 0], sizes = [32, 256], strides = [1, 1]} : vector<64x256xf32> to vector<32x256xf32>
    %cst_277 = arith.constant dense<0.000000e+00> : vector<64x256xf32>
    %623 = tpu.matmul %621, %622, %cst_277 {dimension_numbers = #tpu.dot_dimension_numbers<[1], [0], [0], [1], [0, 0, 1, 1], [], []>} : vector<64x32xf32>, vector<32x256xf32>, vector<64x256xf32> -> vector<64x256xf32>
    %624 = arith.addf %620, %623 : vector<64x256xf32>
    %c0_278 = arith.constant 0 : index
    %c0_279 = arith.constant 0 : index
    %625 = vector.load %arg6[%c0_278, %c0_279] : memref<1x256xf32, #tpu.memory_space<vmem>>, vector<1x256xf32>
    %626 = vector.broadcast %625 : vector<1x256xf32> to vector<64x256xf32>
    %627 = arith.addf %624, %626 : vector<64x256xf32>
    %c0_280 = arith.constant 0 : index
    %c0_281 = arith.constant 0 : index
    %628 = vector.load %arg12[%c0_280, %c0_281] : memref<64x256xf32, #tpu.memory_space<vmem>>, vector<64x256xf32>
    tpu.vector_store %arg12[%c0_280, %c0_281], %627 {strides = array<i32>} : memref<64x256xf32, #tpu.memory_space<vmem>>, vector<64x256xf32>,
    %cst_282 = arith.constant 0.000000e+00 : f32
    %629 = vector.broadcast %cst_282 : f32 to vector<8x32xf32>
    %c0_283 = arith.constant 0 : index
    %c0_284 = arith.constant 0 : index
    %630 = vector.load %arg15[%c0_283, %c0_284] : memref<8x32xf32, #tpu.memory_space<vmem>>, vector<8x32xf32>
    tpu.vector_store %arg15[%c0_283, %c0_284], %629 {strides = array<i32>} : memref<8x32xf32, #tpu.memory_space<vmem>>, vector<8x32xf32>,
    %cst_285 = arith.constant 0.000000e+00 : f32
    %631 = vector.broadcast %cst_285 : f32 to vector<8x32xf32>
    %c0_286 = arith.constant 0 : index
    %c0_287 = arith.constant 0 : index
    %632 = vector.load %arg16[%c0_286, %c0_287] : memref<8x32xf32, #tpu.memory_space<vmem>>, vector<8x32xf32>
    tpu.vector_store %arg16[%c0_286, %c0_287], %631 {strides = array<i32>} : memref<8x32xf32, #tpu.memory_space<vmem>>, vector<8x32xf32>,
    %cst_288 = arith.constant 0.000000e+00 : f32
    %633 = vector.broadcast %cst_288 : f32 to vector<8x32xf32>
    %c0_289 = arith.constant 0 : index
    %c0_290 = arith.constant 0 : index
    %634 = vector.load %arg17[%c0_289, %c0_290] : memref<8x32xf32, #tpu.memory_space<vmem>>, vector<8x32xf32>
    tpu.vector_store %arg17[%c0_289, %c0_290], %633 {strides = array<i32>} : memref<8x32xf32, #tpu.memory_space<vmem>>, vector<8x32xf32>,
    %cst_291 = arith.constant 0.000000e+00 : f32
    %635 = vector.broadcast %cst_291 : f32 to vector<8x32xf32>
    %c0_292 = arith.constant 0 : index
    %c0_293 = arith.constant 0 : index
    %636 = vector.load %arg18[%c0_292, %c0_293] : memref<8x32xf32, #tpu.memory_space<vmem>>, vector<8x32xf32>
    tpu.vector_store %arg18[%c0_292, %c0_293], %635 {strides = array<i32>} : memref<8x32xf32, #tpu.memory_space<vmem>>, vector<8x32xf32>,
    %c0_294 = arith.constant 0 : index
    %c0_295 = arith.constant 0 : index
    %637 = vector.load %arg7[%c0_294, %c0_295] : memref<32x128xf32, #tpu.memory_space<vmem>>, vector<32x128xf32>
    %c0_296 = arith.constant 0 : index
    %c0_297 = arith.constant 0 : index
    %638 = vector.load %arg8[%c0_296, %c0_297] : memref<32x128xf32, #tpu.memory_space<vmem>>, vector<32x128xf32>
    %c0_i32_298 = arith.constant 0 : i32
    %c8_i32_299 = arith.constant 8 : i32
    %639 = arith.muli %c0_i32_298, %c8_i32_299 : i32
    %640 = tpu.assume_multiple %639, 8 : i32
    %641 = arith.index_cast %640 : i32 to index
    %c0_300 = arith.constant 0 : index
    %642 = vector.load %arg12[%641, %c0_300] : memref<64x256xf32, #tpu.memory_space<vmem>>, vector<8x128xf32>
    %c0_301 = arith.constant 0 : index
    %c0_302 = arith.constant 0 : index
    %643 = vector.load %arg15[%c0_301, %c0_302] : memref<8x32xf32, #tpu.memory_space<vmem>>, vector<8x32xf32>
    %c0_303 = arith.constant 0 : index
    %c0_304 = arith.constant 0 : index
    %644 = vector.load %arg16[%c0_303, %c0_304] : memref<8x32xf32, #tpu.memory_space<vmem>>, vector<8x32xf32>
    %cst_305 = arith.constant dense<0.000000e+00> : vector<8x128xf32>
    %645 = tpu.matmul %643, %637, %cst_305 {dimension_numbers = #tpu.dot_dimension_numbers<[1], [0], [0], [1], [0, 0, 1, 1], [], []>} : vector<8x32xf32>, vector<32x128xf32>, vector<8x128xf32> -> vector<8x128xf32>
    %646 = arith.addf %642, %645 : vector<8x128xf32>
    %647 = vector.extract_strided_slice %646 {offsets = [0, 0], sizes = [8, 32], strides = [1, 1]} : vector<8x128xf32> to vector<8x32xf32>
    %648 = arith.negf %647 : vector<8x32xf32>
    %649 = math.exp %648 : vector<8x32xf32>
    %cst_306 = arith.constant 1.000000e+00 : f32
    %650 = vector.broadcast %cst_306 : f32 to vector<8x32xf32>
    %651 = arith.addf %650, %649 : vector<8x32xf32>
    %652 = arith.divf %650, %651 : vector<8x32xf32>
    %653 = vector.extract_strided_slice %646 {offsets = [0, 32], sizes = [8, 32], strides = [1, 1]} : vector<8x128xf32> to vector<8x32xf32>
    %654 = arith.negf %653 : vector<8x32xf32>
    %655 = math.exp %654 : vector<8x32xf32>
    %cst_307 = arith.constant 1.000000e+00 : f32
    %656 = vector.broadcast %cst_307 : f32 to vector<8x32xf32>
    %657 = arith.addf %656, %655 : vector<8x32xf32>
    %658 = arith.divf %656, %657 : vector<8x32xf32>
    %659 = vector.extract_strided_slice %646 {offsets = [0, 64], sizes = [8, 32], strides = [1, 1]} : vector<8x128xf32> to vector<8x32xf32>
    %660 = math.tanh %659 : vector<8x32xf32>
    %661 = vector.extract_strided_slice %646 {offsets = [0, 96], sizes = [8, 32], strides = [1, 1]} : vector<8x128xf32> to vector<8x32xf32>
    %662 = arith.negf %661 : vector<8x32xf32>
    %663 = math.exp %662 : vector<8x32xf32>
    %cst_308 = arith.constant 1.000000e+00 : f32
    %664 = vector.broadcast %cst_308 : f32 to vector<8x32xf32>
    %665 = arith.addf %664, %663 : vector<8x32xf32>
    %666 = arith.divf %664, %665 : vector<8x32xf32>
    %667 = arith.mulf %658, %644 : vector<8x32xf32>
    %668 = arith.mulf %652, %660 : vector<8x32xf32>
    %669 = arith.addf %667, %668 : vector<8x32xf32>
    %670 = math.tanh %669 : vector<8x32xf32>
    %671 = arith.mulf %666, %670 : vector<8x32xf32>
    %c0_309 = arith.constant 0 : index
    %c0_310 = arith.constant 0 : index
    %672 = vector.load %arg15[%c0_309, %c0_310] : memref<8x32xf32, #tpu.memory_space<vmem>>, vector<8x32xf32>
    tpu.vector_store %arg15[%c0_309, %c0_310], %671 {strides = array<i32>} : memref<8x32xf32, #tpu.memory_space<vmem>>, vector<8x32xf32>,
    %c0_311 = arith.constant 0 : index
    %c0_312 = arith.constant 0 : index
    %673 = vector.load %arg16[%c0_311, %c0_312] : memref<8x32xf32, #tpu.memory_space<vmem>>, vector<8x32xf32>
    tpu.vector_store %arg16[%c0_311, %c0_312], %669 {strides = array<i32>} : memref<8x32xf32, #tpu.memory_space<vmem>>, vector<8x32xf32>,
    %674 = arith.index_cast %640 : i32 to index
    %c0_313 = arith.constant 0 : index
    %675 = vector.load %arg13[%674, %c0_313] : memref<64x32xf32, #tpu.memory_space<vmem>>, vector<8x32xf32>
    tpu.vector_store %arg13[%674, %c0_313], %671 {strides = array<i32>} : memref<64x32xf32, #tpu.memory_space<vmem>>, vector<8x32xf32>,
    %c7_i32_314 = arith.constant 7 : i32
    %676 = arith.subi %c7_i32_314, %c0_i32_298 : i32
    %c8_i32_315 = arith.constant 8 : i32
    %677 = arith.muli %676, %c8_i32_315 : i32
    %678 = tpu.assume_multiple %677, 8 : i32
    %679 = arith.index_cast %678 : i32 to index
    %c128_316 = arith.constant 128 : index
    %680 = vector.load %arg12[%679, %c128_316] : memref<64x256xf32, #tpu.memory_space<vmem>>, vector<8x128xf32>
    %c0_317 = arith.constant 0 : index
    %c0_318 = arith.constant 0 : index
    %681 = vector.load %arg17[%c0_317, %c0_318] : memref<8x32xf32, #tpu.memory_space<vmem>>, vector<8x32xf32>
    %c0_319 = arith.constant 0 : index
    %c0_320 = arith.constant 0 : index
    %682 = vector.load %arg18[%c0_319, %c0_320] : memref<8x32xf32, #tpu.memory_space<vmem>>, vector<8x32xf32>
    %cst_321 = arith.constant dense<0.000000e+00> : vector<8x128xf32>
    %683 = tpu.matmul %681, %638, %cst_321 {dimension_numbers = #tpu.dot_dimension_numbers<[1], [0], [0], [1], [0, 0, 1, 1], [], []>} : vector<8x32xf32>, vector<32x128xf32>, vector<8x128xf32> -> vector<8x128xf32>
    %684 = arith.addf %680, %683 : vector<8x128xf32>
    %685 = vector.extract_strided_slice %684 {offsets = [0, 0], sizes = [8, 32], strides = [1, 1]} : vector<8x128xf32> to vector<8x32xf32>
    %686 = arith.negf %685 : vector<8x32xf32>
    %687 = math.exp %686 : vector<8x32xf32>
    %cst_322 = arith.constant 1.000000e+00 : f32
    %688 = vector.broadcast %cst_322 : f32 to vector<8x32xf32>
    %689 = arith.addf %688, %687 : vector<8x32xf32>
    %690 = arith.divf %688, %689 : vector<8x32xf32>
    %691 = vector.extract_strided_slice %684 {offsets = [0, 32], sizes = [8, 32], strides = [1, 1]} : vector<8x128xf32> to vector<8x32xf32>
    %692 = arith.negf %691 : vector<8x32xf32>
    %693 = math.exp %692 : vector<8x32xf32>
    %cst_323 = arith.constant 1.000000e+00 : f32
    %694 = vector.broadcast %cst_323 : f32 to vector<8x32xf32>
    %695 = arith.addf %694, %693 : vector<8x32xf32>
    %696 = arith.divf %694, %695 : vector<8x32xf32>
    %697 = vector.extract_strided_slice %684 {offsets = [0, 64], sizes = [8, 32], strides = [1, 1]} : vector<8x128xf32> to vector<8x32xf32>
    %698 = math.tanh %697 : vector<8x32xf32>
    %699 = vector.extract_strided_slice %684 {offsets = [0, 96], sizes = [8, 32], strides = [1, 1]} : vector<8x128xf32> to vector<8x32xf32>
    %700 = arith.negf %699 : vector<8x32xf32>
    %701 = math.exp %700 : vector<8x32xf32>
    %cst_324 = arith.constant 1.000000e+00 : f32
    %702 = vector.broadcast %cst_324 : f32 to vector<8x32xf32>
    %703 = arith.addf %702, %701 : vector<8x32xf32>
    %704 = arith.divf %702, %703 : vector<8x32xf32>
    %705 = arith.mulf %696, %682 : vector<8x32xf32>
    %706 = arith.mulf %690, %698 : vector<8x32xf32>
    %707 = arith.addf %705, %706 : vector<8x32xf32>
    %708 = math.tanh %707 : vector<8x32xf32>
    %709 = arith.mulf %704, %708 : vector<8x32xf32>
    %c0_325 = arith.constant 0 : index
    %c0_326 = arith.constant 0 : index
    %710 = vector.load %arg17[%c0_325, %c0_326] : memref<8x32xf32, #tpu.memory_space<vmem>>, vector<8x32xf32>
    tpu.vector_store %arg17[%c0_325, %c0_326], %709 {strides = array<i32>} : memref<8x32xf32, #tpu.memory_space<vmem>>, vector<8x32xf32>,
    %c0_327 = arith.constant 0 : index
    %c0_328 = arith.constant 0 : index
    %711 = vector.load %arg18[%c0_327, %c0_328] : memref<8x32xf32, #tpu.memory_space<vmem>>, vector<8x32xf32>
    tpu.vector_store %arg18[%c0_327, %c0_328], %707 {strides = array<i32>} : memref<8x32xf32, #tpu.memory_space<vmem>>, vector<8x32xf32>,
    %712 = arith.index_cast %678 : i32 to index
    %c0_329 = arith.constant 0 : index
    %713 = vector.load %arg14[%712, %c0_329] : memref<64x32xf32, #tpu.memory_space<vmem>>, vector<8x32xf32>
    tpu.vector_store %arg14[%712, %c0_329], %709 {strides = array<i32>} : memref<64x32xf32, #tpu.memory_space<vmem>>, vector<8x32xf32>,
    %c1_i32_330 = arith.constant 1 : i32
    %c8_i32_331 = arith.constant 8 : i32
    %714 = arith.muli %c1_i32_330, %c8_i32_331 : i32
    %715 = tpu.assume_multiple %714, 8 : i32
    %716 = arith.index_cast %715 : i32 to index
    %c0_332 = arith.constant 0 : index
    %717 = vector.load %arg12[%716, %c0_332] : memref<64x256xf32, #tpu.memory_space<vmem>>, vector<8x128xf32>
    %c0_333 = arith.constant 0 : index
    %c0_334 = arith.constant 0 : index
    %718 = vector.load %arg15[%c0_333, %c0_334] : memref<8x32xf32, #tpu.memory_space<vmem>>, vector<8x32xf32>
    %c0_335 = arith.constant 0 : index
    %c0_336 = arith.constant 0 : index
    %719 = vector.load %arg16[%c0_335, %c0_336] : memref<8x32xf32, #tpu.memory_space<vmem>>, vector<8x32xf32>
    %cst_337 = arith.constant dense<0.000000e+00> : vector<8x128xf32>
    %720 = tpu.matmul %718, %637, %cst_337 {dimension_numbers = #tpu.dot_dimension_numbers<[1], [0], [0], [1], [0, 0, 1, 1], [], []>} : vector<8x32xf32>, vector<32x128xf32>, vector<8x128xf32> -> vector<8x128xf32>
    %721 = arith.addf %717, %720 : vector<8x128xf32>
    %722 = vector.extract_strided_slice %721 {offsets = [0, 0], sizes = [8, 32], strides = [1, 1]} : vector<8x128xf32> to vector<8x32xf32>
    %723 = arith.negf %722 : vector<8x32xf32>
    %724 = math.exp %723 : vector<8x32xf32>
    %cst_338 = arith.constant 1.000000e+00 : f32
    %725 = vector.broadcast %cst_338 : f32 to vector<8x32xf32>
    %726 = arith.addf %725, %724 : vector<8x32xf32>
    %727 = arith.divf %725, %726 : vector<8x32xf32>
    %728 = vector.extract_strided_slice %721 {offsets = [0, 32], sizes = [8, 32], strides = [1, 1]} : vector<8x128xf32> to vector<8x32xf32>
    %729 = arith.negf %728 : vector<8x32xf32>
    %730 = math.exp %729 : vector<8x32xf32>
    %cst_339 = arith.constant 1.000000e+00 : f32
    %731 = vector.broadcast %cst_339 : f32 to vector<8x32xf32>
    %732 = arith.addf %731, %730 : vector<8x32xf32>
    %733 = arith.divf %731, %732 : vector<8x32xf32>
    %734 = vector.extract_strided_slice %721 {offsets = [0, 64], sizes = [8, 32], strides = [1, 1]} : vector<8x128xf32> to vector<8x32xf32>
    %735 = math.tanh %734 : vector<8x32xf32>
    %736 = vector.extract_strided_slice %721 {offsets = [0, 96], sizes = [8, 32], strides = [1, 1]} : vector<8x128xf32> to vector<8x32xf32>
    %737 = arith.negf %736 : vector<8x32xf32>
    %738 = math.exp %737 : vector<8x32xf32>
    %cst_340 = arith.constant 1.000000e+00 : f32
    %739 = vector.broadcast %cst_340 : f32 to vector<8x32xf32>
    %740 = arith.addf %739, %738 : vector<8x32xf32>
    %741 = arith.divf %739, %740 : vector<8x32xf32>
    %742 = arith.mulf %733, %719 : vector<8x32xf32>
    %743 = arith.mulf %727, %735 : vector<8x32xf32>
    %744 = arith.addf %742, %743 : vector<8x32xf32>
    %745 = math.tanh %744 : vector<8x32xf32>
    %746 = arith.mulf %741, %745 : vector<8x32xf32>
    %c0_341 = arith.constant 0 : index
    %c0_342 = arith.constant 0 : index
    %747 = vector.load %arg15[%c0_341, %c0_342] : memref<8x32xf32, #tpu.memory_space<vmem>>, vector<8x32xf32>
    tpu.vector_store %arg15[%c0_341, %c0_342], %746 {strides = array<i32>} : memref<8x32xf32, #tpu.memory_space<vmem>>, vector<8x32xf32>,
    %c0_343 = arith.constant 0 : index
    %c0_344 = arith.constant 0 : index
    %748 = vector.load %arg16[%c0_343, %c0_344] : memref<8x32xf32, #tpu.memory_space<vmem>>, vector<8x32xf32>
    tpu.vector_store %arg16[%c0_343, %c0_344], %744 {strides = array<i32>} : memref<8x32xf32, #tpu.memory_space<vmem>>, vector<8x32xf32>,
    %749 = arith.index_cast %715 : i32 to index
    %c0_345 = arith.constant 0 : index
    %750 = vector.load %arg13[%749, %c0_345] : memref<64x32xf32, #tpu.memory_space<vmem>>, vector<8x32xf32>
    tpu.vector_store %arg13[%749, %c0_345], %746 {strides = array<i32>} : memref<64x32xf32, #tpu.memory_space<vmem>>, vector<8x32xf32>,
    %c7_i32_346 = arith.constant 7 : i32
    %751 = arith.subi %c7_i32_346, %c1_i32_330 : i32
    %c8_i32_347 = arith.constant 8 : i32
    %752 = arith.muli %751, %c8_i32_347 : i32
    %753 = tpu.assume_multiple %752, 8 : i32
    %754 = arith.index_cast %753 : i32 to index
    %c128_348 = arith.constant 128 : index
    %755 = vector.load %arg12[%754, %c128_348] : memref<64x256xf32, #tpu.memory_space<vmem>>, vector<8x128xf32>
    %c0_349 = arith.constant 0 : index
    %c0_350 = arith.constant 0 : index
    %756 = vector.load %arg17[%c0_349, %c0_350] : memref<8x32xf32, #tpu.memory_space<vmem>>, vector<8x32xf32>
    %c0_351 = arith.constant 0 : index
    %c0_352 = arith.constant 0 : index
    %757 = vector.load %arg18[%c0_351, %c0_352] : memref<8x32xf32, #tpu.memory_space<vmem>>, vector<8x32xf32>
    %cst_353 = arith.constant dense<0.000000e+00> : vector<8x128xf32>
    %758 = tpu.matmul %756, %638, %cst_353 {dimension_numbers = #tpu.dot_dimension_numbers<[1], [0], [0], [1], [0, 0, 1, 1], [], []>} : vector<8x32xf32>, vector<32x128xf32>, vector<8x128xf32> -> vector<8x128xf32>
    %759 = arith.addf %755, %758 : vector<8x128xf32>
    %760 = vector.extract_strided_slice %759 {offsets = [0, 0], sizes = [8, 32], strides = [1, 1]} : vector<8x128xf32> to vector<8x32xf32>
    %761 = arith.negf %760 : vector<8x32xf32>
    %762 = math.exp %761 : vector<8x32xf32>
    %cst_354 = arith.constant 1.000000e+00 : f32
    %763 = vector.broadcast %cst_354 : f32 to vector<8x32xf32>
    %764 = arith.addf %763, %762 : vector<8x32xf32>
    %765 = arith.divf %763, %764 : vector<8x32xf32>
    %766 = vector.extract_strided_slice %759 {offsets = [0, 32], sizes = [8, 32], strides = [1, 1]} : vector<8x128xf32> to vector<8x32xf32>
    %767 = arith.negf %766 : vector<8x32xf32>
    %768 = math.exp %767 : vector<8x32xf32>
    %cst_355 = arith.constant 1.000000e+00 : f32
    %769 = vector.broadcast %cst_355 : f32 to vector<8x32xf32>
    %770 = arith.addf %769, %768 : vector<8x32xf32>
    %771 = arith.divf %769, %770 : vector<8x32xf32>
    %772 = vector.extract_strided_slice %759 {offsets = [0, 64], sizes = [8, 32], strides = [1, 1]} : vector<8x128xf32> to vector<8x32xf32>
    %773 = math.tanh %772 : vector<8x32xf32>
    %774 = vector.extract_strided_slice %759 {offsets = [0, 96], sizes = [8, 32], strides = [1, 1]} : vector<8x128xf32> to vector<8x32xf32>
    %775 = arith.negf %774 : vector<8x32xf32>
    %776 = math.exp %775 : vector<8x32xf32>
    %cst_356 = arith.constant 1.000000e+00 : f32
    %777 = vector.broadcast %cst_356 : f32 to vector<8x32xf32>
    %778 = arith.addf %777, %776 : vector<8x32xf32>
    %779 = arith.divf %777, %778 : vector<8x32xf32>
    %780 = arith.mulf %771, %757 : vector<8x32xf32>
    %781 = arith.mulf %765, %773 : vector<8x32xf32>
    %782 = arith.addf %780, %781 : vector<8x32xf32>
    %783 = math.tanh %782 : vector<8x32xf32>
    %784 = arith.mulf %779, %783 : vector<8x32xf32>
    %c0_357 = arith.constant 0 : index
    %c0_358 = arith.constant 0 : index
    %785 = vector.load %arg17[%c0_357, %c0_358] : memref<8x32xf32, #tpu.memory_space<vmem>>, vector<8x32xf32>
    tpu.vector_store %arg17[%c0_357, %c0_358], %784 {strides = array<i32>} : memref<8x32xf32, #tpu.memory_space<vmem>>, vector<8x32xf32>,
    %c0_359 = arith.constant 0 : index
    %c0_360 = arith.constant 0 : index
    %786 = vector.load %arg18[%c0_359, %c0_360] : memref<8x32xf32, #tpu.memory_space<vmem>>, vector<8x32xf32>
    tpu.vector_store %arg18[%c0_359, %c0_360], %782 {strides = array<i32>} : memref<8x32xf32, #tpu.memory_space<vmem>>, vector<8x32xf32>,
    %787 = arith.index_cast %753 : i32 to index
    %c0_361 = arith.constant 0 : index
    %788 = vector.load %arg14[%787, %c0_361] : memref<64x32xf32, #tpu.memory_space<vmem>>, vector<8x32xf32>
    tpu.vector_store %arg14[%787, %c0_361], %784 {strides = array<i32>} : memref<64x32xf32, #tpu.memory_space<vmem>>, vector<8x32xf32>,
    %c2_i32_362 = arith.constant 2 : i32
    %c8_i32_363 = arith.constant 8 : i32
    %789 = arith.muli %c2_i32_362, %c8_i32_363 : i32
    %790 = tpu.assume_multiple %789, 8 : i32
    %791 = arith.index_cast %790 : i32 to index
    %c0_364 = arith.constant 0 : index
    %792 = vector.load %arg12[%791, %c0_364] : memref<64x256xf32, #tpu.memory_space<vmem>>, vector<8x128xf32>
    %c0_365 = arith.constant 0 : index
    %c0_366 = arith.constant 0 : index
    %793 = vector.load %arg15[%c0_365, %c0_366] : memref<8x32xf32, #tpu.memory_space<vmem>>, vector<8x32xf32>
    %c0_367 = arith.constant 0 : index
    %c0_368 = arith.constant 0 : index
    %794 = vector.load %arg16[%c0_367, %c0_368] : memref<8x32xf32, #tpu.memory_space<vmem>>, vector<8x32xf32>
    %cst_369 = arith.constant dense<0.000000e+00> : vector<8x128xf32>
    %795 = tpu.matmul %793, %637, %cst_369 {dimension_numbers = #tpu.dot_dimension_numbers<[1], [0], [0], [1], [0, 0, 1, 1], [], []>} : vector<8x32xf32>, vector<32x128xf32>, vector<8x128xf32> -> vector<8x128xf32>
    %796 = arith.addf %792, %795 : vector<8x128xf32>
    %797 = vector.extract_strided_slice %796 {offsets = [0, 0], sizes = [8, 32], strides = [1, 1]} : vector<8x128xf32> to vector<8x32xf32>
    %798 = arith.negf %797 : vector<8x32xf32>
    %799 = math.exp %798 : vector<8x32xf32>
    %cst_370 = arith.constant 1.000000e+00 : f32
    %800 = vector.broadcast %cst_370 : f32 to vector<8x32xf32>
    %801 = arith.addf %800, %799 : vector<8x32xf32>
    %802 = arith.divf %800, %801 : vector<8x32xf32>
    %803 = vector.extract_strided_slice %796 {offsets = [0, 32], sizes = [8, 32], strides = [1, 1]} : vector<8x128xf32> to vector<8x32xf32>
    %804 = arith.negf %803 : vector<8x32xf32>
    %805 = math.exp %804 : vector<8x32xf32>
    %cst_371 = arith.constant 1.000000e+00 : f32
    %806 = vector.broadcast %cst_371 : f32 to vector<8x32xf32>
    %807 = arith.addf %806, %805 : vector<8x32xf32>
    %808 = arith.divf %806, %807 : vector<8x32xf32>
    %809 = vector.extract_strided_slice %796 {offsets = [0, 64], sizes = [8, 32], strides = [1, 1]} : vector<8x128xf32> to vector<8x32xf32>
    %810 = math.tanh %809 : vector<8x32xf32>
    %811 = vector.extract_strided_slice %796 {offsets = [0, 96], sizes = [8, 32], strides = [1, 1]} : vector<8x128xf32> to vector<8x32xf32>
    %812 = arith.negf %811 : vector<8x32xf32>
    %813 = math.exp %812 : vector<8x32xf32>
    %cst_372 = arith.constant 1.000000e+00 : f32
    %814 = vector.broadcast %cst_372 : f32 to vector<8x32xf32>
    %815 = arith.addf %814, %813 : vector<8x32xf32>
    %816 = arith.divf %814, %815 : vector<8x32xf32>
    %817 = arith.mulf %808, %794 : vector<8x32xf32>
    %818 = arith.mulf %802, %810 : vector<8x32xf32>
    %819 = arith.addf %817, %818 : vector<8x32xf32>
    %820 = math.tanh %819 : vector<8x32xf32>
    %821 = arith.mulf %816, %820 : vector<8x32xf32>
    %c0_373 = arith.constant 0 : index
    %c0_374 = arith.constant 0 : index
    %822 = vector.load %arg15[%c0_373, %c0_374] : memref<8x32xf32, #tpu.memory_space<vmem>>, vector<8x32xf32>
    tpu.vector_store %arg15[%c0_373, %c0_374], %821 {strides = array<i32>} : memref<8x32xf32, #tpu.memory_space<vmem>>, vector<8x32xf32>,
    %c0_375 = arith.constant 0 : index
    %c0_376 = arith.constant 0 : index
    %823 = vector.load %arg16[%c0_375, %c0_376] : memref<8x32xf32, #tpu.memory_space<vmem>>, vector<8x32xf32>
    tpu.vector_store %arg16[%c0_375, %c0_376], %819 {strides = array<i32>} : memref<8x32xf32, #tpu.memory_space<vmem>>, vector<8x32xf32>,
    %824 = arith.index_cast %790 : i32 to index
    %c0_377 = arith.constant 0 : index
    %825 = vector.load %arg13[%824, %c0_377] : memref<64x32xf32, #tpu.memory_space<vmem>>, vector<8x32xf32>
    tpu.vector_store %arg13[%824, %c0_377], %821 {strides = array<i32>} : memref<64x32xf32, #tpu.memory_space<vmem>>, vector<8x32xf32>,
    %c7_i32_378 = arith.constant 7 : i32
    %826 = arith.subi %c7_i32_378, %c2_i32_362 : i32
    %c8_i32_379 = arith.constant 8 : i32
    %827 = arith.muli %826, %c8_i32_379 : i32
    %828 = tpu.assume_multiple %827, 8 : i32
    %829 = arith.index_cast %828 : i32 to index
    %c128_380 = arith.constant 128 : index
    %830 = vector.load %arg12[%829, %c128_380] : memref<64x256xf32, #tpu.memory_space<vmem>>, vector<8x128xf32>
    %c0_381 = arith.constant 0 : index
    %c0_382 = arith.constant 0 : index
    %831 = vector.load %arg17[%c0_381, %c0_382] : memref<8x32xf32, #tpu.memory_space<vmem>>, vector<8x32xf32>
    %c0_383 = arith.constant 0 : index
    %c0_384 = arith.constant 0 : index
    %832 = vector.load %arg18[%c0_383, %c0_384] : memref<8x32xf32, #tpu.memory_space<vmem>>, vector<8x32xf32>
    %cst_385 = arith.constant dense<0.000000e+00> : vector<8x128xf32>
    %833 = tpu.matmul %831, %638, %cst_385 {dimension_numbers = #tpu.dot_dimension_numbers<[1], [0], [0], [1], [0, 0, 1, 1], [], []>} : vector<8x32xf32>, vector<32x128xf32>, vector<8x128xf32> -> vector<8x128xf32>
    %834 = arith.addf %830, %833 : vector<8x128xf32>
    %835 = vector.extract_strided_slice %834 {offsets = [0, 0], sizes = [8, 32], strides = [1, 1]} : vector<8x128xf32> to vector<8x32xf32>
    %836 = arith.negf %835 : vector<8x32xf32>
    %837 = math.exp %836 : vector<8x32xf32>
    %cst_386 = arith.constant 1.000000e+00 : f32
    %838 = vector.broadcast %cst_386 : f32 to vector<8x32xf32>
    %839 = arith.addf %838, %837 : vector<8x32xf32>
    %840 = arith.divf %838, %839 : vector<8x32xf32>
    %841 = vector.extract_strided_slice %834 {offsets = [0, 32], sizes = [8, 32], strides = [1, 1]} : vector<8x128xf32> to vector<8x32xf32>
    %842 = arith.negf %841 : vector<8x32xf32>
    %843 = math.exp %842 : vector<8x32xf32>
    %cst_387 = arith.constant 1.000000e+00 : f32
    %844 = vector.broadcast %cst_387 : f32 to vector<8x32xf32>
    %845 = arith.addf %844, %843 : vector<8x32xf32>
    %846 = arith.divf %844, %845 : vector<8x32xf32>
    %847 = vector.extract_strided_slice %834 {offsets = [0, 64], sizes = [8, 32], strides = [1, 1]} : vector<8x128xf32> to vector<8x32xf32>
    %848 = math.tanh %847 : vector<8x32xf32>
    %849 = vector.extract_strided_slice %834 {offsets = [0, 96], sizes = [8, 32], strides = [1, 1]} : vector<8x128xf32> to vector<8x32xf32>
    %850 = arith.negf %849 : vector<8x32xf32>
    %851 = math.exp %850 : vector<8x32xf32>
    %cst_388 = arith.constant 1.000000e+00 : f32
    %852 = vector.broadcast %cst_388 : f32 to vector<8x32xf32>
    %853 = arith.addf %852, %851 : vector<8x32xf32>
    %854 = arith.divf %852, %853 : vector<8x32xf32>
    %855 = arith.mulf %846, %832 : vector<8x32xf32>
    %856 = arith.mulf %840, %848 : vector<8x32xf32>
    %857 = arith.addf %855, %856 : vector<8x32xf32>
    %858 = math.tanh %857 : vector<8x32xf32>
    %859 = arith.mulf %854, %858 : vector<8x32xf32>
    %c0_389 = arith.constant 0 : index
    %c0_390 = arith.constant 0 : index
    %860 = vector.load %arg17[%c0_389, %c0_390] : memref<8x32xf32, #tpu.memory_space<vmem>>, vector<8x32xf32>
    tpu.vector_store %arg17[%c0_389, %c0_390], %859 {strides = array<i32>} : memref<8x32xf32, #tpu.memory_space<vmem>>, vector<8x32xf32>,
    %c0_391 = arith.constant 0 : index
    %c0_392 = arith.constant 0 : index
    %861 = vector.load %arg18[%c0_391, %c0_392] : memref<8x32xf32, #tpu.memory_space<vmem>>, vector<8x32xf32>
    tpu.vector_store %arg18[%c0_391, %c0_392], %857 {strides = array<i32>} : memref<8x32xf32, #tpu.memory_space<vmem>>, vector<8x32xf32>,
    %862 = arith.index_cast %828 : i32 to index
    %c0_393 = arith.constant 0 : index
    %863 = vector.load %arg14[%862, %c0_393] : memref<64x32xf32, #tpu.memory_space<vmem>>, vector<8x32xf32>
    tpu.vector_store %arg14[%862, %c0_393], %859 {strides = array<i32>} : memref<64x32xf32, #tpu.memory_space<vmem>>, vector<8x32xf32>,
    %c3_i32_394 = arith.constant 3 : i32
    %c8_i32_395 = arith.constant 8 : i32
    %864 = arith.muli %c3_i32_394, %c8_i32_395 : i32
    %865 = tpu.assume_multiple %864, 8 : i32
    %866 = arith.index_cast %865 : i32 to index
    %c0_396 = arith.constant 0 : index
    %867 = vector.load %arg12[%866, %c0_396] : memref<64x256xf32, #tpu.memory_space<vmem>>, vector<8x128xf32>
    %c0_397 = arith.constant 0 : index
    %c0_398 = arith.constant 0 : index
    %868 = vector.load %arg15[%c0_397, %c0_398] : memref<8x32xf32, #tpu.memory_space<vmem>>, vector<8x32xf32>
    %c0_399 = arith.constant 0 : index
    %c0_400 = arith.constant 0 : index
    %869 = vector.load %arg16[%c0_399, %c0_400] : memref<8x32xf32, #tpu.memory_space<vmem>>, vector<8x32xf32>
    %cst_401 = arith.constant dense<0.000000e+00> : vector<8x128xf32>
    %870 = tpu.matmul %868, %637, %cst_401 {dimension_numbers = #tpu.dot_dimension_numbers<[1], [0], [0], [1], [0, 0, 1, 1], [], []>} : vector<8x32xf32>, vector<32x128xf32>, vector<8x128xf32> -> vector<8x128xf32>
    %871 = arith.addf %867, %870 : vector<8x128xf32>
    %872 = vector.extract_strided_slice %871 {offsets = [0, 0], sizes = [8, 32], strides = [1, 1]} : vector<8x128xf32> to vector<8x32xf32>
    %873 = arith.negf %872 : vector<8x32xf32>
    %874 = math.exp %873 : vector<8x32xf32>
    %cst_402 = arith.constant 1.000000e+00 : f32
    %875 = vector.broadcast %cst_402 : f32 to vector<8x32xf32>
    %876 = arith.addf %875, %874 : vector<8x32xf32>
    %877 = arith.divf %875, %876 : vector<8x32xf32>
    %878 = vector.extract_strided_slice %871 {offsets = [0, 32], sizes = [8, 32], strides = [1, 1]} : vector<8x128xf32> to vector<8x32xf32>
    %879 = arith.negf %878 : vector<8x32xf32>
    %880 = math.exp %879 : vector<8x32xf32>
    %cst_403 = arith.constant 1.000000e+00 : f32
    %881 = vector.broadcast %cst_403 : f32 to vector<8x32xf32>
    %882 = arith.addf %881, %880 : vector<8x32xf32>
    %883 = arith.divf %881, %882 : vector<8x32xf32>
    %884 = vector.extract_strided_slice %871 {offsets = [0, 64], sizes = [8, 32], strides = [1, 1]} : vector<8x128xf32> to vector<8x32xf32>
    %885 = math.tanh %884 : vector<8x32xf32>
    %886 = vector.extract_strided_slice %871 {offsets = [0, 96], sizes = [8, 32], strides = [1, 1]} : vector<8x128xf32> to vector<8x32xf32>
    %887 = arith.negf %886 : vector<8x32xf32>
    %888 = math.exp %887 : vector<8x32xf32>
    %cst_404 = arith.constant 1.000000e+00 : f32
    %889 = vector.broadcast %cst_404 : f32 to vector<8x32xf32>
    %890 = arith.addf %889, %888 : vector<8x32xf32>
    %891 = arith.divf %889, %890 : vector<8x32xf32>
    %892 = arith.mulf %883, %869 : vector<8x32xf32>
    %893 = arith.mulf %877, %885 : vector<8x32xf32>
    %894 = arith.addf %892, %893 : vector<8x32xf32>
    %895 = math.tanh %894 : vector<8x32xf32>
    %896 = arith.mulf %891, %895 : vector<8x32xf32>
    %c0_405 = arith.constant 0 : index
    %c0_406 = arith.constant 0 : index
    %897 = vector.load %arg15[%c0_405, %c0_406] : memref<8x32xf32, #tpu.memory_space<vmem>>, vector<8x32xf32>
    tpu.vector_store %arg15[%c0_405, %c0_406], %896 {strides = array<i32>} : memref<8x32xf32, #tpu.memory_space<vmem>>, vector<8x32xf32>,
    %c0_407 = arith.constant 0 : index
    %c0_408 = arith.constant 0 : index
    %898 = vector.load %arg16[%c0_407, %c0_408] : memref<8x32xf32, #tpu.memory_space<vmem>>, vector<8x32xf32>
    tpu.vector_store %arg16[%c0_407, %c0_408], %894 {strides = array<i32>} : memref<8x32xf32, #tpu.memory_space<vmem>>, vector<8x32xf32>,
    %899 = arith.index_cast %865 : i32 to index
    %c0_409 = arith.constant 0 : index
    %900 = vector.load %arg13[%899, %c0_409] : memref<64x32xf32, #tpu.memory_space<vmem>>, vector<8x32xf32>
    tpu.vector_store %arg13[%899, %c0_409], %896 {strides = array<i32>} : memref<64x32xf32, #tpu.memory_space<vmem>>, vector<8x32xf32>,
    %c7_i32_410 = arith.constant 7 : i32
    %901 = arith.subi %c7_i32_410, %c3_i32_394 : i32
    %c8_i32_411 = arith.constant 8 : i32
    %902 = arith.muli %901, %c8_i32_411 : i32
    %903 = tpu.assume_multiple %902, 8 : i32
    %904 = arith.index_cast %903 : i32 to index
    %c128_412 = arith.constant 128 : index
    %905 = vector.load %arg12[%904, %c128_412] : memref<64x256xf32, #tpu.memory_space<vmem>>, vector<8x128xf32>
    %c0_413 = arith.constant 0 : index
    %c0_414 = arith.constant 0 : index
    %906 = vector.load %arg17[%c0_413, %c0_414] : memref<8x32xf32, #tpu.memory_space<vmem>>, vector<8x32xf32>
    %c0_415 = arith.constant 0 : index
    %c0_416 = arith.constant 0 : index
    %907 = vector.load %arg18[%c0_415, %c0_416] : memref<8x32xf32, #tpu.memory_space<vmem>>, vector<8x32xf32>
    %cst_417 = arith.constant dense<0.000000e+00> : vector<8x128xf32>
    %908 = tpu.matmul %906, %638, %cst_417 {dimension_numbers = #tpu.dot_dimension_numbers<[1], [0], [0], [1], [0, 0, 1, 1], [], []>} : vector<8x32xf32>, vector<32x128xf32>, vector<8x128xf32> -> vector<8x128xf32>
    %909 = arith.addf %905, %908 : vector<8x128xf32>
    %910 = vector.extract_strided_slice %909 {offsets = [0, 0], sizes = [8, 32], strides = [1, 1]} : vector<8x128xf32> to vector<8x32xf32>
    %911 = arith.negf %910 : vector<8x32xf32>
    %912 = math.exp %911 : vector<8x32xf32>
    %cst_418 = arith.constant 1.000000e+00 : f32
    %913 = vector.broadcast %cst_418 : f32 to vector<8x32xf32>
    %914 = arith.addf %913, %912 : vector<8x32xf32>
    %915 = arith.divf %913, %914 : vector<8x32xf32>
    %916 = vector.extract_strided_slice %909 {offsets = [0, 32], sizes = [8, 32], strides = [1, 1]} : vector<8x128xf32> to vector<8x32xf32>
    %917 = arith.negf %916 : vector<8x32xf32>
    %918 = math.exp %917 : vector<8x32xf32>
    %cst_419 = arith.constant 1.000000e+00 : f32
    %919 = vector.broadcast %cst_419 : f32 to vector<8x32xf32>
    %920 = arith.addf %919, %918 : vector<8x32xf32>
    %921 = arith.divf %919, %920 : vector<8x32xf32>
    %922 = vector.extract_strided_slice %909 {offsets = [0, 64], sizes = [8, 32], strides = [1, 1]} : vector<8x128xf32> to vector<8x32xf32>
    %923 = math.tanh %922 : vector<8x32xf32>
    %924 = vector.extract_strided_slice %909 {offsets = [0, 96], sizes = [8, 32], strides = [1, 1]} : vector<8x128xf32> to vector<8x32xf32>
    %925 = arith.negf %924 : vector<8x32xf32>
    %926 = math.exp %925 : vector<8x32xf32>
    %cst_420 = arith.constant 1.000000e+00 : f32
    %927 = vector.broadcast %cst_420 : f32 to vector<8x32xf32>
    %928 = arith.addf %927, %926 : vector<8x32xf32>
    %929 = arith.divf %927, %928 : vector<8x32xf32>
    %930 = arith.mulf %921, %907 : vector<8x32xf32>
    %931 = arith.mulf %915, %923 : vector<8x32xf32>
    %932 = arith.addf %930, %931 : vector<8x32xf32>
    %933 = math.tanh %932 : vector<8x32xf32>
    %934 = arith.mulf %929, %933 : vector<8x32xf32>
    %c0_421 = arith.constant 0 : index
    %c0_422 = arith.constant 0 : index
    %935 = vector.load %arg17[%c0_421, %c0_422] : memref<8x32xf32, #tpu.memory_space<vmem>>, vector<8x32xf32>
    tpu.vector_store %arg17[%c0_421, %c0_422], %934 {strides = array<i32>} : memref<8x32xf32, #tpu.memory_space<vmem>>, vector<8x32xf32>,
    %c0_423 = arith.constant 0 : index
    %c0_424 = arith.constant 0 : index
    %936 = vector.load %arg18[%c0_423, %c0_424] : memref<8x32xf32, #tpu.memory_space<vmem>>, vector<8x32xf32>
    tpu.vector_store %arg18[%c0_423, %c0_424], %932 {strides = array<i32>} : memref<8x32xf32, #tpu.memory_space<vmem>>, vector<8x32xf32>,
    %937 = arith.index_cast %903 : i32 to index
    %c0_425 = arith.constant 0 : index
    %938 = vector.load %arg14[%937, %c0_425] : memref<64x32xf32, #tpu.memory_space<vmem>>, vector<8x32xf32>
    tpu.vector_store %arg14[%937, %c0_425], %934 {strides = array<i32>} : memref<64x32xf32, #tpu.memory_space<vmem>>, vector<8x32xf32>,
    %c4_i32_426 = arith.constant 4 : i32
    %c8_i32_427 = arith.constant 8 : i32
    %939 = arith.muli %c4_i32_426, %c8_i32_427 : i32
    %940 = tpu.assume_multiple %939, 8 : i32
    %941 = arith.index_cast %940 : i32 to index
    %c0_428 = arith.constant 0 : index
    %942 = vector.load %arg12[%941, %c0_428] : memref<64x256xf32, #tpu.memory_space<vmem>>, vector<8x128xf32>
    %c0_429 = arith.constant 0 : index
    %c0_430 = arith.constant 0 : index
    %943 = vector.load %arg15[%c0_429, %c0_430] : memref<8x32xf32, #tpu.memory_space<vmem>>, vector<8x32xf32>
    %c0_431 = arith.constant 0 : index
    %c0_432 = arith.constant 0 : index
    %944 = vector.load %arg16[%c0_431, %c0_432] : memref<8x32xf32, #tpu.memory_space<vmem>>, vector<8x32xf32>
    %cst_433 = arith.constant dense<0.000000e+00> : vector<8x128xf32>
    %945 = tpu.matmul %943, %637, %cst_433 {dimension_numbers = #tpu.dot_dimension_numbers<[1], [0], [0], [1], [0, 0, 1, 1], [], []>} : vector<8x32xf32>, vector<32x128xf32>, vector<8x128xf32> -> vector<8x128xf32>
    %946 = arith.addf %942, %945 : vector<8x128xf32>
    %947 = vector.extract_strided_slice %946 {offsets = [0, 0], sizes = [8, 32], strides = [1, 1]} : vector<8x128xf32> to vector<8x32xf32>
    %948 = arith.negf %947 : vector<8x32xf32>
    %949 = math.exp %948 : vector<8x32xf32>
    %cst_434 = arith.constant 1.000000e+00 : f32
    %950 = vector.broadcast %cst_434 : f32 to vector<8x32xf32>
    %951 = arith.addf %950, %949 : vector<8x32xf32>
    %952 = arith.divf %950, %951 : vector<8x32xf32>
    %953 = vector.extract_strided_slice %946 {offsets = [0, 32], sizes = [8, 32], strides = [1, 1]} : vector<8x128xf32> to vector<8x32xf32>
    %954 = arith.negf %953 : vector<8x32xf32>
    %955 = math.exp %954 : vector<8x32xf32>
    %cst_435 = arith.constant 1.000000e+00 : f32
    %956 = vector.broadcast %cst_435 : f32 to vector<8x32xf32>
    %957 = arith.addf %956, %955 : vector<8x32xf32>
    %958 = arith.divf %956, %957 : vector<8x32xf32>
    %959 = vector.extract_strided_slice %946 {offsets = [0, 64], sizes = [8, 32], strides = [1, 1]} : vector<8x128xf32> to vector<8x32xf32>
    %960 = math.tanh %959 : vector<8x32xf32>
    %961 = vector.extract_strided_slice %946 {offsets = [0, 96], sizes = [8, 32], strides = [1, 1]} : vector<8x128xf32> to vector<8x32xf32>
    %962 = arith.negf %961 : vector<8x32xf32>
    %963 = math.exp %962 : vector<8x32xf32>
    %cst_436 = arith.constant 1.000000e+00 : f32
    %964 = vector.broadcast %cst_436 : f32 to vector<8x32xf32>
    %965 = arith.addf %964, %963 : vector<8x32xf32>
    %966 = arith.divf %964, %965 : vector<8x32xf32>
    %967 = arith.mulf %958, %944 : vector<8x32xf32>
    %968 = arith.mulf %952, %960 : vector<8x32xf32>
    %969 = arith.addf %967, %968 : vector<8x32xf32>
    %970 = math.tanh %969 : vector<8x32xf32>
    %971 = arith.mulf %966, %970 : vector<8x32xf32>
    %c0_437 = arith.constant 0 : index
    %c0_438 = arith.constant 0 : index
    %972 = vector.load %arg15[%c0_437, %c0_438] : memref<8x32xf32, #tpu.memory_space<vmem>>, vector<8x32xf32>
    tpu.vector_store %arg15[%c0_437, %c0_438], %971 {strides = array<i32>} : memref<8x32xf32, #tpu.memory_space<vmem>>, vector<8x32xf32>,
    %c0_439 = arith.constant 0 : index
    %c0_440 = arith.constant 0 : index
    %973 = vector.load %arg16[%c0_439, %c0_440] : memref<8x32xf32, #tpu.memory_space<vmem>>, vector<8x32xf32>
    tpu.vector_store %arg16[%c0_439, %c0_440], %969 {strides = array<i32>} : memref<8x32xf32, #tpu.memory_space<vmem>>, vector<8x32xf32>,
    %974 = arith.index_cast %940 : i32 to index
    %c0_441 = arith.constant 0 : index
    %975 = vector.load %arg13[%974, %c0_441] : memref<64x32xf32, #tpu.memory_space<vmem>>, vector<8x32xf32>
    tpu.vector_store %arg13[%974, %c0_441], %971 {strides = array<i32>} : memref<64x32xf32, #tpu.memory_space<vmem>>, vector<8x32xf32>,
    %c7_i32_442 = arith.constant 7 : i32
    %976 = arith.subi %c7_i32_442, %c4_i32_426 : i32
    %c8_i32_443 = arith.constant 8 : i32
    %977 = arith.muli %976, %c8_i32_443 : i32
    %978 = tpu.assume_multiple %977, 8 : i32
    %979 = arith.index_cast %978 : i32 to index
    %c128_444 = arith.constant 128 : index
    %980 = vector.load %arg12[%979, %c128_444] : memref<64x256xf32, #tpu.memory_space<vmem>>, vector<8x128xf32>
    %c0_445 = arith.constant 0 : index
    %c0_446 = arith.constant 0 : index
    %981 = vector.load %arg17[%c0_445, %c0_446] : memref<8x32xf32, #tpu.memory_space<vmem>>, vector<8x32xf32>
    %c0_447 = arith.constant 0 : index
    %c0_448 = arith.constant 0 : index
    %982 = vector.load %arg18[%c0_447, %c0_448] : memref<8x32xf32, #tpu.memory_space<vmem>>, vector<8x32xf32>
    %cst_449 = arith.constant dense<0.000000e+00> : vector<8x128xf32>
    %983 = tpu.matmul %981, %638, %cst_449 {dimension_numbers = #tpu.dot_dimension_numbers<[1], [0], [0], [1], [0, 0, 1, 1], [], []>} : vector<8x32xf32>, vector<32x128xf32>, vector<8x128xf32> -> vector<8x128xf32>
    %984 = arith.addf %980, %983 : vector<8x128xf32>
    %985 = vector.extract_strided_slice %984 {offsets = [0, 0], sizes = [8, 32], strides = [1, 1]} : vector<8x128xf32> to vector<8x32xf32>
    %986 = arith.negf %985 : vector<8x32xf32>
    %987 = math.exp %986 : vector<8x32xf32>
    %cst_450 = arith.constant 1.000000e+00 : f32
    %988 = vector.broadcast %cst_450 : f32 to vector<8x32xf32>
    %989 = arith.addf %988, %987 : vector<8x32xf32>
    %990 = arith.divf %988, %989 : vector<8x32xf32>
    %991 = vector.extract_strided_slice %984 {offsets = [0, 32], sizes = [8, 32], strides = [1, 1]} : vector<8x128xf32> to vector<8x32xf32>
    %992 = arith.negf %991 : vector<8x32xf32>
    %993 = math.exp %992 : vector<8x32xf32>
    %cst_451 = arith.constant 1.000000e+00 : f32
    %994 = vector.broadcast %cst_451 : f32 to vector<8x32xf32>
    %995 = arith.addf %994, %993 : vector<8x32xf32>
    %996 = arith.divf %994, %995 : vector<8x32xf32>
    %997 = vector.extract_strided_slice %984 {offsets = [0, 64], sizes = [8, 32], strides = [1, 1]} : vector<8x128xf32> to vector<8x32xf32>
    %998 = math.tanh %997 : vector<8x32xf32>
    %999 = vector.extract_strided_slice %984 {offsets = [0, 96], sizes = [8, 32], strides = [1, 1]} : vector<8x128xf32> to vector<8x32xf32>
    %1000 = arith.negf %999 : vector<8x32xf32>
    %1001 = math.exp %1000 : vector<8x32xf32>
    %cst_452 = arith.constant 1.000000e+00 : f32
    %1002 = vector.broadcast %cst_452 : f32 to vector<8x32xf32>
    %1003 = arith.addf %1002, %1001 : vector<8x32xf32>
    %1004 = arith.divf %1002, %1003 : vector<8x32xf32>
    %1005 = arith.mulf %996, %982 : vector<8x32xf32>
    %1006 = arith.mulf %990, %998 : vector<8x32xf32>
    %1007 = arith.addf %1005, %1006 : vector<8x32xf32>
    %1008 = math.tanh %1007 : vector<8x32xf32>
    %1009 = arith.mulf %1004, %1008 : vector<8x32xf32>
    %c0_453 = arith.constant 0 : index
    %c0_454 = arith.constant 0 : index
    %1010 = vector.load %arg17[%c0_453, %c0_454] : memref<8x32xf32, #tpu.memory_space<vmem>>, vector<8x32xf32>
    tpu.vector_store %arg17[%c0_453, %c0_454], %1009 {strides = array<i32>} : memref<8x32xf32, #tpu.memory_space<vmem>>, vector<8x32xf32>,
    %c0_455 = arith.constant 0 : index
    %c0_456 = arith.constant 0 : index
    %1011 = vector.load %arg18[%c0_455, %c0_456] : memref<8x32xf32, #tpu.memory_space<vmem>>, vector<8x32xf32>
    tpu.vector_store %arg18[%c0_455, %c0_456], %1007 {strides = array<i32>} : memref<8x32xf32, #tpu.memory_space<vmem>>, vector<8x32xf32>,
    %1012 = arith.index_cast %978 : i32 to index
    %c0_457 = arith.constant 0 : index
    %1013 = vector.load %arg14[%1012, %c0_457] : memref<64x32xf32, #tpu.memory_space<vmem>>, vector<8x32xf32>
    tpu.vector_store %arg14[%1012, %c0_457], %1009 {strides = array<i32>} : memref<64x32xf32, #tpu.memory_space<vmem>>, vector<8x32xf32>,
    %c5_i32_458 = arith.constant 5 : i32
    %c8_i32_459 = arith.constant 8 : i32
    %1014 = arith.muli %c5_i32_458, %c8_i32_459 : i32
    %1015 = tpu.assume_multiple %1014, 8 : i32
    %1016 = arith.index_cast %1015 : i32 to index
    %c0_460 = arith.constant 0 : index
    %1017 = vector.load %arg12[%1016, %c0_460] : memref<64x256xf32, #tpu.memory_space<vmem>>, vector<8x128xf32>
    %c0_461 = arith.constant 0 : index
    %c0_462 = arith.constant 0 : index
    %1018 = vector.load %arg15[%c0_461, %c0_462] : memref<8x32xf32, #tpu.memory_space<vmem>>, vector<8x32xf32>
    %c0_463 = arith.constant 0 : index
    %c0_464 = arith.constant 0 : index
    %1019 = vector.load %arg16[%c0_463, %c0_464] : memref<8x32xf32, #tpu.memory_space<vmem>>, vector<8x32xf32>
    %cst_465 = arith.constant dense<0.000000e+00> : vector<8x128xf32>
    %1020 = tpu.matmul %1018, %637, %cst_465 {dimension_numbers = #tpu.dot_dimension_numbers<[1], [0], [0], [1], [0, 0, 1, 1], [], []>} : vector<8x32xf32>, vector<32x128xf32>, vector<8x128xf32> -> vector<8x128xf32>
    %1021 = arith.addf %1017, %1020 : vector<8x128xf32>
    %1022 = vector.extract_strided_slice %1021 {offsets = [0, 0], sizes = [8, 32], strides = [1, 1]} : vector<8x128xf32> to vector<8x32xf32>
    %1023 = arith.negf %1022 : vector<8x32xf32>
    %1024 = math.exp %1023 : vector<8x32xf32>
    %cst_466 = arith.constant 1.000000e+00 : f32
    %1025 = vector.broadcast %cst_466 : f32 to vector<8x32xf32>
    %1026 = arith.addf %1025, %1024 : vector<8x32xf32>
    %1027 = arith.divf %1025, %1026 : vector<8x32xf32>
    %1028 = vector.extract_strided_slice %1021 {offsets = [0, 32], sizes = [8, 32], strides = [1, 1]} : vector<8x128xf32> to vector<8x32xf32>
    %1029 = arith.negf %1028 : vector<8x32xf32>
    %1030 = math.exp %1029 : vector<8x32xf32>
    %cst_467 = arith.constant 1.000000e+00 : f32
    %1031 = vector.broadcast %cst_467 : f32 to vector<8x32xf32>
    %1032 = arith.addf %1031, %1030 : vector<8x32xf32>
    %1033 = arith.divf %1031, %1032 : vector<8x32xf32>
    %1034 = vector.extract_strided_slice %1021 {offsets = [0, 64], sizes = [8, 32], strides = [1, 1]} : vector<8x128xf32> to vector<8x32xf32>
    %1035 = math.tanh %1034 : vector<8x32xf32>
    %1036 = vector.extract_strided_slice %1021 {offsets = [0, 96], sizes = [8, 32], strides = [1, 1]} : vector<8x128xf32> to vector<8x32xf32>
    %1037 = arith.negf %1036 : vector<8x32xf32>
    %1038 = math.exp %1037 : vector<8x32xf32>
    %cst_468 = arith.constant 1.000000e+00 : f32
    %1039 = vector.broadcast %cst_468 : f32 to vector<8x32xf32>
    %1040 = arith.addf %1039, %1038 : vector<8x32xf32>
    %1041 = arith.divf %1039, %1040 : vector<8x32xf32>
    %1042 = arith.mulf %1033, %1019 : vector<8x32xf32>
    %1043 = arith.mulf %1027, %1035 : vector<8x32xf32>
    %1044 = arith.addf %1042, %1043 : vector<8x32xf32>
    %1045 = math.tanh %1044 : vector<8x32xf32>
    %1046 = arith.mulf %1041, %1045 : vector<8x32xf32>
    %c0_469 = arith.constant 0 : index
    %c0_470 = arith.constant 0 : index
    %1047 = vector.load %arg15[%c0_469, %c0_470] : memref<8x32xf32, #tpu.memory_space<vmem>>, vector<8x32xf32>
    tpu.vector_store %arg15[%c0_469, %c0_470], %1046 {strides = array<i32>} : memref<8x32xf32, #tpu.memory_space<vmem>>, vector<8x32xf32>,
    %c0_471 = arith.constant 0 : index
    %c0_472 = arith.constant 0 : index
    %1048 = vector.load %arg16[%c0_471, %c0_472] : memref<8x32xf32, #tpu.memory_space<vmem>>, vector<8x32xf32>
    tpu.vector_store %arg16[%c0_471, %c0_472], %1044 {strides = array<i32>} : memref<8x32xf32, #tpu.memory_space<vmem>>, vector<8x32xf32>,
    %1049 = arith.index_cast %1015 : i32 to index
    %c0_473 = arith.constant 0 : index
    %1050 = vector.load %arg13[%1049, %c0_473] : memref<64x32xf32, #tpu.memory_space<vmem>>, vector<8x32xf32>
    tpu.vector_store %arg13[%1049, %c0_473], %1046 {strides = array<i32>} : memref<64x32xf32, #tpu.memory_space<vmem>>, vector<8x32xf32>,
    %c7_i32_474 = arith.constant 7 : i32
    %1051 = arith.subi %c7_i32_474, %c5_i32_458 : i32
    %c8_i32_475 = arith.constant 8 : i32
    %1052 = arith.muli %1051, %c8_i32_475 : i32
    %1053 = tpu.assume_multiple %1052, 8 : i32
    %1054 = arith.index_cast %1053 : i32 to index
    %c128_476 = arith.constant 128 : index
    %1055 = vector.load %arg12[%1054, %c128_476] : memref<64x256xf32, #tpu.memory_space<vmem>>, vector<8x128xf32>
    %c0_477 = arith.constant 0 : index
    %c0_478 = arith.constant 0 : index
    %1056 = vector.load %arg17[%c0_477, %c0_478] : memref<8x32xf32, #tpu.memory_space<vmem>>, vector<8x32xf32>
    %c0_479 = arith.constant 0 : index
    %c0_480 = arith.constant 0 : index
    %1057 = vector.load %arg18[%c0_479, %c0_480] : memref<8x32xf32, #tpu.memory_space<vmem>>, vector<8x32xf32>
    %cst_481 = arith.constant dense<0.000000e+00> : vector<8x128xf32>
    %1058 = tpu.matmul %1056, %638, %cst_481 {dimension_numbers = #tpu.dot_dimension_numbers<[1], [0], [0], [1], [0, 0, 1, 1], [], []>} : vector<8x32xf32>, vector<32x128xf32>, vector<8x128xf32> -> vector<8x128xf32>
    %1059 = arith.addf %1055, %1058 : vector<8x128xf32>
    %1060 = vector.extract_strided_slice %1059 {offsets = [0, 0], sizes = [8, 32], strides = [1, 1]} : vector<8x128xf32> to vector<8x32xf32>
    %1061 = arith.negf %1060 : vector<8x32xf32>
    %1062 = math.exp %1061 : vector<8x32xf32>
    %cst_482 = arith.constant 1.000000e+00 : f32
    %1063 = vector.broadcast %cst_482 : f32 to vector<8x32xf32>
    %1064 = arith.addf %1063, %1062 : vector<8x32xf32>
    %1065 = arith.divf %1063, %1064 : vector<8x32xf32>
    %1066 = vector.extract_strided_slice %1059 {offsets = [0, 32], sizes = [8, 32], strides = [1, 1]} : vector<8x128xf32> to vector<8x32xf32>
    %1067 = arith.negf %1066 : vector<8x32xf32>
    %1068 = math.exp %1067 : vector<8x32xf32>
    %cst_483 = arith.constant 1.000000e+00 : f32
    %1069 = vector.broadcast %cst_483 : f32 to vector<8x32xf32>
    %1070 = arith.addf %1069, %1068 : vector<8x32xf32>
    %1071 = arith.divf %1069, %1070 : vector<8x32xf32>
    %1072 = vector.extract_strided_slice %1059 {offsets = [0, 64], sizes = [8, 32], strides = [1, 1]} : vector<8x128xf32> to vector<8x32xf32>
    %1073 = math.tanh %1072 : vector<8x32xf32>
    %1074 = vector.extract_strided_slice %1059 {offsets = [0, 96], sizes = [8, 32], strides = [1, 1]} : vector<8x128xf32> to vector<8x32xf32>
    %1075 = arith.negf %1074 : vector<8x32xf32>
    %1076 = math.exp %1075 : vector<8x32xf32>
    %cst_484 = arith.constant 1.000000e+00 : f32
    %1077 = vector.broadcast %cst_484 : f32 to vector<8x32xf32>
    %1078 = arith.addf %1077, %1076 : vector<8x32xf32>
    %1079 = arith.divf %1077, %1078 : vector<8x32xf32>
    %1080 = arith.mulf %1071, %1057 : vector<8x32xf32>
    %1081 = arith.mulf %1065, %1073 : vector<8x32xf32>
    %1082 = arith.addf %1080, %1081 : vector<8x32xf32>
    %1083 = math.tanh %1082 : vector<8x32xf32>
    %1084 = arith.mulf %1079, %1083 : vector<8x32xf32>
    %c0_485 = arith.constant 0 : index
    %c0_486 = arith.constant 0 : index
    %1085 = vector.load %arg17[%c0_485, %c0_486] : memref<8x32xf32, #tpu.memory_space<vmem>>, vector<8x32xf32>
    tpu.vector_store %arg17[%c0_485, %c0_486], %1084 {strides = array<i32>} : memref<8x32xf32, #tpu.memory_space<vmem>>, vector<8x32xf32>,
    %c0_487 = arith.constant 0 : index
    %c0_488 = arith.constant 0 : index
    %1086 = vector.load %arg18[%c0_487, %c0_488] : memref<8x32xf32, #tpu.memory_space<vmem>>, vector<8x32xf32>
    tpu.vector_store %arg18[%c0_487, %c0_488], %1082 {strides = array<i32>} : memref<8x32xf32, #tpu.memory_space<vmem>>, vector<8x32xf32>,
    %1087 = arith.index_cast %1053 : i32 to index
    %c0_489 = arith.constant 0 : index
    %1088 = vector.load %arg14[%1087, %c0_489] : memref<64x32xf32, #tpu.memory_space<vmem>>, vector<8x32xf32>
    tpu.vector_store %arg14[%1087, %c0_489], %1084 {strides = array<i32>} : memref<64x32xf32, #tpu.memory_space<vmem>>, vector<8x32xf32>,
    %c6_i32_490 = arith.constant 6 : i32
    %c8_i32_491 = arith.constant 8 : i32
    %1089 = arith.muli %c6_i32_490, %c8_i32_491 : i32
    %1090 = tpu.assume_multiple %1089, 8 : i32
    %1091 = arith.index_cast %1090 : i32 to index
    %c0_492 = arith.constant 0 : index
    %1092 = vector.load %arg12[%1091, %c0_492] : memref<64x256xf32, #tpu.memory_space<vmem>>, vector<8x128xf32>
    %c0_493 = arith.constant 0 : index
    %c0_494 = arith.constant 0 : index
    %1093 = vector.load %arg15[%c0_493, %c0_494] : memref<8x32xf32, #tpu.memory_space<vmem>>, vector<8x32xf32>
    %c0_495 = arith.constant 0 : index
    %c0_496 = arith.constant 0 : index
    %1094 = vector.load %arg16[%c0_495, %c0_496] : memref<8x32xf32, #tpu.memory_space<vmem>>, vector<8x32xf32>
    %cst_497 = arith.constant dense<0.000000e+00> : vector<8x128xf32>
    %1095 = tpu.matmul %1093, %637, %cst_497 {dimension_numbers = #tpu.dot_dimension_numbers<[1], [0], [0], [1], [0, 0, 1, 1], [], []>} : vector<8x32xf32>, vector<32x128xf32>, vector<8x128xf32> -> vector<8x128xf32>
    %1096 = arith.addf %1092, %1095 : vector<8x128xf32>
    %1097 = vector.extract_strided_slice %1096 {offsets = [0, 0], sizes = [8, 32], strides = [1, 1]} : vector<8x128xf32> to vector<8x32xf32>
    %1098 = arith.negf %1097 : vector<8x32xf32>
    %1099 = math.exp %1098 : vector<8x32xf32>
    %cst_498 = arith.constant 1.000000e+00 : f32
    %1100 = vector.broadcast %cst_498 : f32 to vector<8x32xf32>
    %1101 = arith.addf %1100, %1099 : vector<8x32xf32>
    %1102 = arith.divf %1100, %1101 : vector<8x32xf32>
    %1103 = vector.extract_strided_slice %1096 {offsets = [0, 32], sizes = [8, 32], strides = [1, 1]} : vector<8x128xf32> to vector<8x32xf32>
    %1104 = arith.negf %1103 : vector<8x32xf32>
    %1105 = math.exp %1104 : vector<8x32xf32>
    %cst_499 = arith.constant 1.000000e+00 : f32
    %1106 = vector.broadcast %cst_499 : f32 to vector<8x32xf32>
    %1107 = arith.addf %1106, %1105 : vector<8x32xf32>
    %1108 = arith.divf %1106, %1107 : vector<8x32xf32>
    %1109 = vector.extract_strided_slice %1096 {offsets = [0, 64], sizes = [8, 32], strides = [1, 1]} : vector<8x128xf32> to vector<8x32xf32>
    %1110 = math.tanh %1109 : vector<8x32xf32>
    %1111 = vector.extract_strided_slice %1096 {offsets = [0, 96], sizes = [8, 32], strides = [1, 1]} : vector<8x128xf32> to vector<8x32xf32>
    %1112 = arith.negf %1111 : vector<8x32xf32>
    %1113 = math.exp %1112 : vector<8x32xf32>
    %cst_500 = arith.constant 1.000000e+00 : f32
    %1114 = vector.broadcast %cst_500 : f32 to vector<8x32xf32>
    %1115 = arith.addf %1114, %1113 : vector<8x32xf32>
    %1116 = arith.divf %1114, %1115 : vector<8x32xf32>
    %1117 = arith.mulf %1108, %1094 : vector<8x32xf32>
    %1118 = arith.mulf %1102, %1110 : vector<8x32xf32>
    %1119 = arith.addf %1117, %1118 : vector<8x32xf32>
    %1120 = math.tanh %1119 : vector<8x32xf32>
    %1121 = arith.mulf %1116, %1120 : vector<8x32xf32>
    %c0_501 = arith.constant 0 : index
    %c0_502 = arith.constant 0 : index
    %1122 = vector.load %arg15[%c0_501, %c0_502] : memref<8x32xf32, #tpu.memory_space<vmem>>, vector<8x32xf32>
    tpu.vector_store %arg15[%c0_501, %c0_502], %1121 {strides = array<i32>} : memref<8x32xf32, #tpu.memory_space<vmem>>, vector<8x32xf32>,
    %c0_503 = arith.constant 0 : index
    %c0_504 = arith.constant 0 : index
    %1123 = vector.load %arg16[%c0_503, %c0_504] : memref<8x32xf32, #tpu.memory_space<vmem>>, vector<8x32xf32>
    tpu.vector_store %arg16[%c0_503, %c0_504], %1119 {strides = array<i32>} : memref<8x32xf32, #tpu.memory_space<vmem>>, vector<8x32xf32>,
    %1124 = arith.index_cast %1090 : i32 to index
    %c0_505 = arith.constant 0 : index
    %1125 = vector.load %arg13[%1124, %c0_505] : memref<64x32xf32, #tpu.memory_space<vmem>>, vector<8x32xf32>
    tpu.vector_store %arg13[%1124, %c0_505], %1121 {strides = array<i32>} : memref<64x32xf32, #tpu.memory_space<vmem>>, vector<8x32xf32>,
    %c7_i32_506 = arith.constant 7 : i32
    %1126 = arith.subi %c7_i32_506, %c6_i32_490 : i32
    %c8_i32_507 = arith.constant 8 : i32
    %1127 = arith.muli %1126, %c8_i32_507 : i32
    %1128 = tpu.assume_multiple %1127, 8 : i32
    %1129 = arith.index_cast %1128 : i32 to index
    %c128_508 = arith.constant 128 : index
    %1130 = vector.load %arg12[%1129, %c128_508] : memref<64x256xf32, #tpu.memory_space<vmem>>, vector<8x128xf32>
    %c0_509 = arith.constant 0 : index
    %c0_510 = arith.constant 0 : index
    %1131 = vector.load %arg17[%c0_509, %c0_510] : memref<8x32xf32, #tpu.memory_space<vmem>>, vector<8x32xf32>
    %c0_511 = arith.constant 0 : index
    %c0_512 = arith.constant 0 : index
    %1132 = vector.load %arg18[%c0_511, %c0_512] : memref<8x32xf32, #tpu.memory_space<vmem>>, vector<8x32xf32>
    %cst_513 = arith.constant dense<0.000000e+00> : vector<8x128xf32>
    %1133 = tpu.matmul %1131, %638, %cst_513 {dimension_numbers = #tpu.dot_dimension_numbers<[1], [0], [0], [1], [0, 0, 1, 1], [], []>} : vector<8x32xf32>, vector<32x128xf32>, vector<8x128xf32> -> vector<8x128xf32>
    %1134 = arith.addf %1130, %1133 : vector<8x128xf32>
    %1135 = vector.extract_strided_slice %1134 {offsets = [0, 0], sizes = [8, 32], strides = [1, 1]} : vector<8x128xf32> to vector<8x32xf32>
    %1136 = arith.negf %1135 : vector<8x32xf32>
    %1137 = math.exp %1136 : vector<8x32xf32>
    %cst_514 = arith.constant 1.000000e+00 : f32
    %1138 = vector.broadcast %cst_514 : f32 to vector<8x32xf32>
    %1139 = arith.addf %1138, %1137 : vector<8x32xf32>
    %1140 = arith.divf %1138, %1139 : vector<8x32xf32>
    %1141 = vector.extract_strided_slice %1134 {offsets = [0, 32], sizes = [8, 32], strides = [1, 1]} : vector<8x128xf32> to vector<8x32xf32>
    %1142 = arith.negf %1141 : vector<8x32xf32>
    %1143 = math.exp %1142 : vector<8x32xf32>
    %cst_515 = arith.constant 1.000000e+00 : f32
    %1144 = vector.broadcast %cst_515 : f32 to vector<8x32xf32>
    %1145 = arith.addf %1144, %1143 : vector<8x32xf32>
    %1146 = arith.divf %1144, %1145 : vector<8x32xf32>
    %1147 = vector.extract_strided_slice %1134 {offsets = [0, 64], sizes = [8, 32], strides = [1, 1]} : vector<8x128xf32> to vector<8x32xf32>
    %1148 = math.tanh %1147 : vector<8x32xf32>
    %1149 = vector.extract_strided_slice %1134 {offsets = [0, 96], sizes = [8, 32], strides = [1, 1]} : vector<8x128xf32> to vector<8x32xf32>
    %1150 = arith.negf %1149 : vector<8x32xf32>
    %1151 = math.exp %1150 : vector<8x32xf32>
    %cst_516 = arith.constant 1.000000e+00 : f32
    %1152 = vector.broadcast %cst_516 : f32 to vector<8x32xf32>
    %1153 = arith.addf %1152, %1151 : vector<8x32xf32>
    %1154 = arith.divf %1152, %1153 : vector<8x32xf32>
    %1155 = arith.mulf %1146, %1132 : vector<8x32xf32>
    %1156 = arith.mulf %1140, %1148 : vector<8x32xf32>
    %1157 = arith.addf %1155, %1156 : vector<8x32xf32>
    %1158 = math.tanh %1157 : vector<8x32xf32>
    %1159 = arith.mulf %1154, %1158 : vector<8x32xf32>
    %c0_517 = arith.constant 0 : index
    %c0_518 = arith.constant 0 : index
    %1160 = vector.load %arg17[%c0_517, %c0_518] : memref<8x32xf32, #tpu.memory_space<vmem>>, vector<8x32xf32>
    tpu.vector_store %arg17[%c0_517, %c0_518], %1159 {strides = array<i32>} : memref<8x32xf32, #tpu.memory_space<vmem>>, vector<8x32xf32>,
    %c0_519 = arith.constant 0 : index
    %c0_520 = arith.constant 0 : index
    %1161 = vector.load %arg18[%c0_519, %c0_520] : memref<8x32xf32, #tpu.memory_space<vmem>>, vector<8x32xf32>
    tpu.vector_store %arg18[%c0_519, %c0_520], %1157 {strides = array<i32>} : memref<8x32xf32, #tpu.memory_space<vmem>>, vector<8x32xf32>,
    %1162 = arith.index_cast %1128 : i32 to index
    %c0_521 = arith.constant 0 : index
    %1163 = vector.load %arg14[%1162, %c0_521] : memref<64x32xf32, #tpu.memory_space<vmem>>, vector<8x32xf32>
    tpu.vector_store %arg14[%1162, %c0_521], %1159 {strides = array<i32>} : memref<64x32xf32, #tpu.memory_space<vmem>>, vector<8x32xf32>,
    %c7_i32_522 = arith.constant 7 : i32
    %c8_i32_523 = arith.constant 8 : i32
    %1164 = arith.muli %c7_i32_522, %c8_i32_523 : i32
    %1165 = tpu.assume_multiple %1164, 8 : i32
    %1166 = arith.index_cast %1165 : i32 to index
    %c0_524 = arith.constant 0 : index
    %1167 = vector.load %arg12[%1166, %c0_524] : memref<64x256xf32, #tpu.memory_space<vmem>>, vector<8x128xf32>
    %c0_525 = arith.constant 0 : index
    %c0_526 = arith.constant 0 : index
    %1168 = vector.load %arg15[%c0_525, %c0_526] : memref<8x32xf32, #tpu.memory_space<vmem>>, vector<8x32xf32>
    %c0_527 = arith.constant 0 : index
    %c0_528 = arith.constant 0 : index
    %1169 = vector.load %arg16[%c0_527, %c0_528] : memref<8x32xf32, #tpu.memory_space<vmem>>, vector<8x32xf32>
    %cst_529 = arith.constant dense<0.000000e+00> : vector<8x128xf32>
    %1170 = tpu.matmul %1168, %637, %cst_529 {dimension_numbers = #tpu.dot_dimension_numbers<[1], [0], [0], [1], [0, 0, 1, 1], [], []>} : vector<8x32xf32>, vector<32x128xf32>, vector<8x128xf32> -> vector<8x128xf32>
    %1171 = arith.addf %1167, %1170 : vector<8x128xf32>
    %1172 = vector.extract_strided_slice %1171 {offsets = [0, 0], sizes = [8, 32], strides = [1, 1]} : vector<8x128xf32> to vector<8x32xf32>
    %1173 = arith.negf %1172 : vector<8x32xf32>
    %1174 = math.exp %1173 : vector<8x32xf32>
    %cst_530 = arith.constant 1.000000e+00 : f32
    %1175 = vector.broadcast %cst_530 : f32 to vector<8x32xf32>
    %1176 = arith.addf %1175, %1174 : vector<8x32xf32>
    %1177 = arith.divf %1175, %1176 : vector<8x32xf32>
    %1178 = vector.extract_strided_slice %1171 {offsets = [0, 32], sizes = [8, 32], strides = [1, 1]} : vector<8x128xf32> to vector<8x32xf32>
    %1179 = arith.negf %1178 : vector<8x32xf32>
    %1180 = math.exp %1179 : vector<8x32xf32>
    %cst_531 = arith.constant 1.000000e+00 : f32
    %1181 = vector.broadcast %cst_531 : f32 to vector<8x32xf32>
    %1182 = arith.addf %1181, %1180 : vector<8x32xf32>
    %1183 = arith.divf %1181, %1182 : vector<8x32xf32>
    %1184 = vector.extract_strided_slice %1171 {offsets = [0, 64], sizes = [8, 32], strides = [1, 1]} : vector<8x128xf32> to vector<8x32xf32>
    %1185 = math.tanh %1184 : vector<8x32xf32>
    %1186 = vector.extract_strided_slice %1171 {offsets = [0, 96], sizes = [8, 32], strides = [1, 1]} : vector<8x128xf32> to vector<8x32xf32>
    %1187 = arith.negf %1186 : vector<8x32xf32>
    %1188 = math.exp %1187 : vector<8x32xf32>
    %cst_532 = arith.constant 1.000000e+00 : f32
    %1189 = vector.broadcast %cst_532 : f32 to vector<8x32xf32>
    %1190 = arith.addf %1189, %1188 : vector<8x32xf32>
    %1191 = arith.divf %1189, %1190 : vector<8x32xf32>
    %1192 = arith.mulf %1183, %1169 : vector<8x32xf32>
    %1193 = arith.mulf %1177, %1185 : vector<8x32xf32>
    %1194 = arith.addf %1192, %1193 : vector<8x32xf32>
    %1195 = math.tanh %1194 : vector<8x32xf32>
    %1196 = arith.mulf %1191, %1195 : vector<8x32xf32>
    %c0_533 = arith.constant 0 : index
    %c0_534 = arith.constant 0 : index
    %1197 = vector.load %arg15[%c0_533, %c0_534] : memref<8x32xf32, #tpu.memory_space<vmem>>, vector<8x32xf32>
    tpu.vector_store %arg15[%c0_533, %c0_534], %1196 {strides = array<i32>} : memref<8x32xf32, #tpu.memory_space<vmem>>, vector<8x32xf32>,
    %c0_535 = arith.constant 0 : index
    %c0_536 = arith.constant 0 : index
    %1198 = vector.load %arg16[%c0_535, %c0_536] : memref<8x32xf32, #tpu.memory_space<vmem>>, vector<8x32xf32>
    tpu.vector_store %arg16[%c0_535, %c0_536], %1194 {strides = array<i32>} : memref<8x32xf32, #tpu.memory_space<vmem>>, vector<8x32xf32>,
    %1199 = arith.index_cast %1165 : i32 to index
    %c0_537 = arith.constant 0 : index
    %1200 = vector.load %arg13[%1199, %c0_537] : memref<64x32xf32, #tpu.memory_space<vmem>>, vector<8x32xf32>
    tpu.vector_store %arg13[%1199, %c0_537], %1196 {strides = array<i32>} : memref<64x32xf32, #tpu.memory_space<vmem>>, vector<8x32xf32>,
    %c7_i32_538 = arith.constant 7 : i32
    %1201 = arith.subi %c7_i32_538, %c7_i32_522 : i32
    %c8_i32_539 = arith.constant 8 : i32
    %1202 = arith.muli %1201, %c8_i32_539 : i32
    %1203 = tpu.assume_multiple %1202, 8 : i32
    %1204 = arith.index_cast %1203 : i32 to index
    %c128_540 = arith.constant 128 : index
    %1205 = vector.load %arg12[%1204, %c128_540] : memref<64x256xf32, #tpu.memory_space<vmem>>, vector<8x128xf32>
    %c0_541 = arith.constant 0 : index
    %c0_542 = arith.constant 0 : index
    %1206 = vector.load %arg17[%c0_541, %c0_542] : memref<8x32xf32, #tpu.memory_space<vmem>>, vector<8x32xf32>
    %c0_543 = arith.constant 0 : index
    %c0_544 = arith.constant 0 : index
    %1207 = vector.load %arg18[%c0_543, %c0_544] : memref<8x32xf32, #tpu.memory_space<vmem>>, vector<8x32xf32>
    %cst_545 = arith.constant dense<0.000000e+00> : vector<8x128xf32>
    %1208 = tpu.matmul %1206, %638, %cst_545 {dimension_numbers = #tpu.dot_dimension_numbers<[1], [0], [0], [1], [0, 0, 1, 1], [], []>} : vector<8x32xf32>, vector<32x128xf32>, vector<8x128xf32> -> vector<8x128xf32>
    %1209 = arith.addf %1205, %1208 : vector<8x128xf32>
    %1210 = vector.extract_strided_slice %1209 {offsets = [0, 0], sizes = [8, 32], strides = [1, 1]} : vector<8x128xf32> to vector<8x32xf32>
    %1211 = arith.negf %1210 : vector<8x32xf32>
    %1212 = math.exp %1211 : vector<8x32xf32>
    %cst_546 = arith.constant 1.000000e+00 : f32
    %1213 = vector.broadcast %cst_546 : f32 to vector<8x32xf32>
    %1214 = arith.addf %1213, %1212 : vector<8x32xf32>
    %1215 = arith.divf %1213, %1214 : vector<8x32xf32>
    %1216 = vector.extract_strided_slice %1209 {offsets = [0, 32], sizes = [8, 32], strides = [1, 1]} : vector<8x128xf32> to vector<8x32xf32>
    %1217 = arith.negf %1216 : vector<8x32xf32>
    %1218 = math.exp %1217 : vector<8x32xf32>
    %cst_547 = arith.constant 1.000000e+00 : f32
    %1219 = vector.broadcast %cst_547 : f32 to vector<8x32xf32>
    %1220 = arith.addf %1219, %1218 : vector<8x32xf32>
    %1221 = arith.divf %1219, %1220 : vector<8x32xf32>
    %1222 = vector.extract_strided_slice %1209 {offsets = [0, 64], sizes = [8, 32], strides = [1, 1]} : vector<8x128xf32> to vector<8x32xf32>
    %1223 = math.tanh %1222 : vector<8x32xf32>
    %1224 = vector.extract_strided_slice %1209 {offsets = [0, 96], sizes = [8, 32], strides = [1, 1]} : vector<8x128xf32> to vector<8x32xf32>
    %1225 = arith.negf %1224 : vector<8x32xf32>
    %1226 = math.exp %1225 : vector<8x32xf32>
    %cst_548 = arith.constant 1.000000e+00 : f32
    %1227 = vector.broadcast %cst_548 : f32 to vector<8x32xf32>
    %1228 = arith.addf %1227, %1226 : vector<8x32xf32>
    %1229 = arith.divf %1227, %1228 : vector<8x32xf32>
    %1230 = arith.mulf %1221, %1207 : vector<8x32xf32>
    %1231 = arith.mulf %1215, %1223 : vector<8x32xf32>
    %1232 = arith.addf %1230, %1231 : vector<8x32xf32>
    %1233 = math.tanh %1232 : vector<8x32xf32>
    %1234 = arith.mulf %1229, %1233 : vector<8x32xf32>
    %c0_549 = arith.constant 0 : index
    %c0_550 = arith.constant 0 : index
    %1235 = vector.load %arg17[%c0_549, %c0_550] : memref<8x32xf32, #tpu.memory_space<vmem>>, vector<8x32xf32>
    tpu.vector_store %arg17[%c0_549, %c0_550], %1234 {strides = array<i32>} : memref<8x32xf32, #tpu.memory_space<vmem>>, vector<8x32xf32>,
    %c0_551 = arith.constant 0 : index
    %c0_552 = arith.constant 0 : index
    %1236 = vector.load %arg18[%c0_551, %c0_552] : memref<8x32xf32, #tpu.memory_space<vmem>>, vector<8x32xf32>
    tpu.vector_store %arg18[%c0_551, %c0_552], %1232 {strides = array<i32>} : memref<8x32xf32, #tpu.memory_space<vmem>>, vector<8x32xf32>,
    %1237 = arith.index_cast %1203 : i32 to index
    %c0_553 = arith.constant 0 : index
    %1238 = vector.load %arg14[%1237, %c0_553] : memref<64x32xf32, #tpu.memory_space<vmem>>, vector<8x32xf32>
    tpu.vector_store %arg14[%1237, %c0_553], %1234 {strides = array<i32>} : memref<64x32xf32, #tpu.memory_space<vmem>>, vector<8x32xf32>,
    %c8_i32_554 = arith.constant 8 : i32
    %c0_555 = arith.constant 0 : index
    %c0_556 = arith.constant 0 : index
    %1239 = vector.load %arg15[%c0_555, %c0_556] : memref<8x32xf32, #tpu.memory_space<vmem>>, vector<8x32xf32>
    %c56 = arith.constant 56 : index
    %c0_557 = arith.constant 0 : index
    %1240 = vector.load %arg14[%c56, %c0_557] : memref<64x32xf32, #tpu.memory_space<vmem>>, vector<8x32xf32>
    %c0_558 = arith.constant 0 : index
    %c0_559 = arith.constant 0 : index
    %1241 = vector.load %arg9[%c0_558, %c0_559] : memref<64x1xf32, #tpu.memory_space<vmem>>, vector<64x1xf32>
    %1242 = vector.extract_strided_slice %1241 {offsets = [0, 0], sizes = [32, 1], strides = [1, 1]} : vector<64x1xf32> to vector<32x1xf32>
    %cst_560 = arith.constant dense<0.000000e+00> : vector<8x1xf32>
    %1243 = tpu.matmul %1239, %1242, %cst_560 {dimension_numbers = #tpu.dot_dimension_numbers<[1], [0], [0], [1], [0, 0, 1, 1], [], []>} : vector<8x32xf32>, vector<32x1xf32>, vector<8x1xf32> -> vector<8x1xf32>
    %1244 = vector.extract_strided_slice %1241 {offsets = [32, 0], sizes = [32, 1], strides = [1, 1]} : vector<64x1xf32> to vector<32x1xf32>
    %cst_561 = arith.constant dense<0.000000e+00> : vector<8x1xf32>
    %1245 = tpu.matmul %1240, %1244, %cst_561 {dimension_numbers = #tpu.dot_dimension_numbers<[1], [0], [0], [1], [0, 0, 1, 1], [], []>} : vector<8x32xf32>, vector<32x1xf32>, vector<8x1xf32> -> vector<8x1xf32>
    %1246 = arith.addf %1243, %1245 : vector<8x1xf32>
    %c0_562 = arith.constant 0 : index
    %c0_563 = arith.constant 0 : index
    %1247 = vector.load %arg10[%c0_562, %c0_563] : memref<1x1xf32, #tpu.memory_space<vmem>>, vector<1x1xf32>
    %1248 = vector.broadcast %1247 : vector<1x1xf32> to vector<8x1xf32>
    %1249 = arith.addf %1246, %1248 : vector<8x1xf32>
    %c0_564 = arith.constant 0 : index
    %c0_565 = arith.constant 0 : index
    %1250 = vector.load %arg11[%c0_564, %c0_565] : memref<8x1xf32, #tpu.memory_space<vmem>>, vector<8x1xf32>
    tpu.vector_store %arg11[%c0_564, %c0_565], %1249 {strides = array<i32>} : memref<8x1xf32, #tpu.memory_space<vmem>>, vector<8x1xf32>,
    return
  }
}

</mosaic_0001>

<bundles_post_ra>
// kernel: bidirectional_lstm_forward.1
= control target key start
LH: loop header
LB: loop body
LE: loop exit
PB: predicated region body
PF: predicated region fallthrough
CT: control target
= control target key end

     0   :  { %s6650_s0 = inlined_call_operand.vmem [shape: f32[64,4], index: 0, kind: input, shape index: {}]   ;;  %s6651_s1 = inlined_call_operand.vmem [shape: f32[4,256], index: 1, kind: input, shape index: {}]   ;;  %s6652_s2 = inlined_call_operand.vmem [shape: f32[1,256], index: 2, kind: input, shape index: {}]   ;;  %s6653_s3 = inlined_call_operand.vmem [shape: f32[32,128], index: 3, kind: input, shape index: {}]   ;;  %s6654_s4 = inlined_call_operand.hbm [shape: f32[32,128], index: 4, kind: input, shape index: {}]   ;;  %s6655_s5 = inlined_call_operand.vmem [shape: f32[64,256], index: 5, kind: input, shape index: {}]   ;;  %s6656_s6 = inlined_call_operand.vmem [shape: f32[1,256], index: 6, kind: input, shape index: {}]   ;;  %s6657_s7 = inlined_call_operand.hbm [shape: f32[32,128], index: 7, kind: input, shape index: {}]   ;;  %s6658_s8 = inlined_call_operand.hbm [shape: f32[32,128], index: 8, kind: input, shape index: {}]   ;;  %s6659_s9 = inlined_call_operand.vmem [shape: f32[64,1], index: 9, kind: input, shape index: {}]   ;;  %s6660_s10 = inlined_call_operand.<no memory space> [shape: f32[1,1], index: 10, kind: input, shape index: {}]   ;;  %s6661_s11 = inlined_call_operand.vmem [shape: f32[8,1], index: 11, kind: output, shape index: {}]  }
   0x1   :  { %v16_v0 = vstv %s6660_s10 }
   0x2   :  { %17 = vst [vmem:[#allocation9] sm:$0x1] %v16_v0 }
   0x3   :  { %18 = vsyncpa [#allocation11], 0 }
   0x4   :  { %19 = vsyncpa [#allocation13], 0  ;;  %s5551_s19 = smov [#allocation12]   ;;  %s5552_s21 = smov [#allocation10]  }
   0x5   :  { %s49_s20 = sshll.u32 %s5551_s19, 4  ;;  %s33_s22 = sshll.u32 %s5552_s21, 4  ;;  %s50_s20 = int_to_ptr.vmem [resolvable:$true] %s49_s20  ;;  %s34_s22 = int_to_ptr.vmem [resolvable:$true] %s33_s22 }
   0x6   :  { %s5495_s23 = scalar_lea.vmem %s50_s20, 512  ;;  %p5500_p1 = scmp.lt.s32.totalorder %s50_s20, %s50_s20 }
   0x7   :  { %p5496_p0 = scmp.ne.s32.totalorder %s50_s20, %s5495_s23  ;;  %p5501_p2 = scmp.lt.s32.totalorder %s5495_s23, %s5495_s23 }
   0x9   :  { %p5502_p3 = por %p5501_p2, %p5500_p1 }
   0xb   :  { %p5503_p4 = pnand %p5502_p3, %p5496_p0 }
   0xd   :  { %5506 = shalt.err (!%p5503_p4)
}
   0xe   :  { %s5553_s24 = smov 128   ;;  %s5554_s25 = smov 8  }
   0xf   :  { %55 = dma.hbm_to_vmem [thread:$0]  %s6657_s7, 512, %s50_s20, [#allocation13], %s5553_s24, %s5553_s24, %s5554_s25  }
  0x10   :  { %s5515_s27 = scalar_lea.vmem %s34_s22, 512  ;;  %p5520_p6 = scmp.lt.s32.totalorder %s34_s22, %s34_s22 }
  0x11   :  { %p5516_p5 = scmp.ne.s32.totalorder %s34_s22, %s5515_s27  ;;  %p5521_p7 = scmp.lt.s32.totalorder %s5515_s27, %s5515_s27 }
  0x13   :  { %p5522_p8 = por %p5521_p7, %p5520_p6 }
  0x15   :  { %p5523_p9 = pnand %p5522_p8, %p5516_p5 }
  0x17   :  { %5526 = shalt.err (!%p5523_p9)
}
  0x18   :  { %39 = dma.hbm_to_vmem [thread:$0]  %s6654_s4, 512, %s34_s22, [#allocation11], %s5553_s24, %s5553_s24, %s5554_s25  }
  0x19   :  { %s5555_s30 = smov [#allocation14]  }
  0x1a   :  { %s61_s12 = sshll.u32 %s5555_s30, 4  ;;  %s62_s12 = int_to_ptr.vmem [resolvable:$true] %s61_s12 }
  0x1b   :  { %s5535_s13 = scalar_lea.vmem %s62_s12, 512  ;;  %p5540_p11 = scmp.lt.s32.totalorder %s62_s12, %s62_s12 }
  0x1c   :  { %p5536_p10 = scmp.ne.s32.totalorder %s62_s12, %s5535_s13  ;;  %p5541_p12 = scmp.lt.s32.totalorder %s5535_s13, %s5535_s13 }
  0x1e   :  { %p5542_p13 = por %p5541_p12, %p5540_p11 }
  0x20   :  { %p5543_p0 = pnand %p5542_p13, %p5536_p10 }
  0x22   :  { %5546 = shalt.err (!%p5543_p0)
}
  0x23   :  { %67 = dma.hbm_to_vmem [thread:$0]  %s6658_s8, 512, %s62_s12, [#allocation13], %s5553_s24, %s5553_s24, %s5554_s25  }
  0x24   :  { %5547 = dma.done.wait [#allocation11], 512  }
  0x25   :  { %5548 = vsyncadd [#allocation11], 4294966784 }
  0x26   :  { %5549 = dma.done.wait [#allocation13], 1024  }
  0x27   :  { %5550 = vsyncadd [#allocation13], 4294966272  ;;  %v5556_v1 = vmov 0.0   ;;  %vm263_vm0 = vcmask 261120   ;;  %vm5557_vm1 = vmmov 0   ;;  %v5648_v2 = vld [vmem:[%s6653_s3 + $0x18] sm:$0xff]  ;;  %v92_v23 = vlaneseq }
  0x28   :  { %4830 = vmatprep.subr.mxu1 %v5556_v1  ;;  %198 = vmatprep.mubr.f32.mxu0 %v5556_v1  ;;  %264 = vst.msk [vmem:[#allocation5] sm:$0xff] %vm263_vm0, %v5556_v1  ;;  %265 = vst.msk [vmem:[#allocation6] sm:$0xff] %vm263_vm0, %v5556_v1  ;;  %v89_v3 = vld [vmem:[%s6651_s1] sm:$0xff]  ;;  %vm129_vm2 = vcmask 1043456   ;;  %v5656_v4 = vld [vmem:[%s6653_s3 + $0x10] sm:$0xff]  ;;  %vm104_vm3 = vcmask 31744  }
  0x29   :  { %4838 = vmatprep.mubr.msk.f32.mxu1 %vm5557_vm1, %v5556_v1  ;;  %266 = vst.msk [vmem:[#allocation7] sm:$0xff] %vm263_vm0, %v5556_v1  ;;  %267 = vst.msk [vmem:[#allocation8] sm:$0xff] %vm263_vm0, %v5556_v1  ;;  %4831 = vmatpush3.msra.mxu1 %v5648_v2  ;;  %v103_v5 = vcombine.high %v89_v3, %v89_v3  ;;  %v81_v6 = vld [vmem:[%s6650_s0] sm:$0xff]  ;;  %v5666_v7 = vld [vmem:[%s6653_s3 + $0x8] sm:$0xff]  ;;  %s5558_s26 = smov 32   ;;  %v5757_v24 = vshrl.u32 %v92_v23, 7 }
  0x2a   :  { %4832 = vmatprep.subr.mxu1 %v5556_v1  ;;  %v5673_v8 = vld [vmem:[%s6653_s3] sm:$0xff]  ;;  %v82_v10 = vld [vmem:[%s6650_s0 + $0x8] sm:$0xff]  ;;  %v5688_v13 = vld [vmem:[#allocation10 + $0x10] sm:$0xff]  ;;  %vm4552_vm4 = vcmask 7168  }
  0x2b   :  { %4567 = vmatprep.subr.msk.mxu0 %vm129_vm2, %v103_v5  ;;  %4833 = vmatpush3.msra.mxu1 %v5656_v4  ;;  %v5682_v11 = vld [vmem:[#allocation10 + $0x18] sm:$0xff]  ;;  %v83_v14 = vld [vmem:[%s6650_s0 + $0x10] sm:$0xff]  ;;  %v5703_v16 = vld [vmem:[#allocation10] sm:$0xff]  ;;  %v94_v25 = vsub.s32 0, %v5757_v24  ;;  %v98_v27 = vsub.s32 1, %v5757_v24 }
  0x2c   :  { %4568 = vmatpush1.msk.msra.mxu0 %vm129_vm2, %v89_v3  ;;  %4834 = vmatprep.subr.mxu1 %v5556_v1  ;;  %v5697_v15 = vld [vmem:[#allocation10 + $0x8] sm:$0xff]  ;;  %v84_v18 = vld [vmem:[%s6650_s0 + $0x18] sm:$0xff]  ;;  %v85_v19 = vld [vmem:[%s6650_s0 + $0x20] sm:$0xff] }
  0x2d   :  { %4569 = vmatmul.mubr.msk.f32.vlgmr.msra.gmra.mxu0 %vm104_vm3, %v81_v6  ;;  %4835 = vmatpush3.msra.mxu1 %v5666_v7  ;;  %v86_v20 = vld [vmem:[%s6650_s0 + $0x28] sm:$0xff]  ;;  %v87_v21 = vld [vmem:[%s6650_s0 + $0x30] sm:$0xff]  ;;  %v88_v22 = vld [vmem:[%s6650_s0 + $0x38] sm:$0xff]  ;;  %s5559_s0 = smov 64  }
  0x2e   :  { %4836 = vmatprep.subr.mxu1 %v5556_v1  ;;  %204 = vmatprep.mubr.f32.mxu0 %v5556_v1  ;;  %v90_v26 = vld [vmem:[%s6652_s2] sm:$0x3]  ;;  %s5560_s2 = smov 96  }
  0x2f   :  { %v280_v9 = vld [vmem:[#allocation5] sm:$0xff]  ;;  %v281_v12 = vld [vmem:[#allocation6] sm:$0xff]  ;;  %4837 = vmatpush3.msra.mxu1 %v5673_v8  ;;  %4874 = vmatprep.subr.mxu0 %v5556_v1  ;;  %v95_v28 = vrot.slane %v90_v26, %v94_v25  ;;  %v99_v29 = vrot.slane %v90_v26, %v98_v27 }
  0x30   :  { %364 = vrot.lane.b32.xlu1 %v281_v12, %s5558_s26  ;;  %4839 = vmatmul.mubr.msk.f32.vlgmr.msra.gmra.mxu1 %vm263_vm0, %v280_v9  ;;  %v399_v17 = vld [vmem:[#allocation7] sm:$0xff]  ;;  %v400_v12 = vld [vmem:[#allocation8] sm:$0xff] }
  0x31   :  { %4841 = vmatprep.subr.mxu1 %v5556_v1  ;;  %4570 = vmatmul.mubr.msk.f32.gmra.mxu0 %vm104_vm3, %v82_v10 }
  0x32   :  { %4842 = vmatpush3.msra.mxu1 %v5682_v11  ;;  %210 = vmatprep.mubr.f32.mxu0 %v5556_v1 }
  0x33   :  { %4843 = vmatprep.subr.mxu1 %v5556_v1  ;;  %4849 = vmatprep.mubr.msk.f32.mxu1 %vm5557_vm1, %v5556_v1 }
  0x34   :  { %4844 = vmatpush3.msra.mxu1 %v5688_v13  ;;  %4875 = vmatpush3.msra.mxu0 %v5648_v2 }
  0x35   :  { %4845 = vmatprep.subr.mxu1 %v5556_v1  ;;  %4571 = vmatmul.mubr.msk.f32.gmra.mxu0 %vm104_vm3, %v83_v14 }
  0x36   :  { %4846 = vmatpush3.msra.mxu1 %v5697_v15  ;;  %216 = vmatprep.mubr.f32.mxu0 %v5556_v1 }
  0x37   :  { %4847 = vmatprep.subr.mxu1 %v5556_v1  ;;  %4876 = vmatprep.subr.mxu0 %v5556_v1 }
  0x38   :  { %4848 = vmatpush3.msra.mxu1 %v5703_v16  ;;  %4877 = vmatpush3.msra.mxu0 %v5656_v4 }
  0x39   :  { %4850 = vmatmul.mubr.msk.f32.vlgmr.msra.gmra.mxu1 %vm263_vm0, %v399_v17  ;;  %4852 = vmatprep.subr.mxu1 %v5556_v1 }
  0x3a   :  { %4572 = vmatmul.mubr.msk.f32.gmra.mxu0 %vm104_vm3, %v84_v18  ;;  %4853 = vmatpush3.msra.mxu1 %v5648_v2 }
  0x3b   :  { %222 = vmatprep.mubr.f32.mxu0 %v5556_v1  ;;  %4854 = vmatprep.subr.mxu1 %v5556_v1 }
  0x3c   :  { %4855 = vmatpush3.msra.mxu1 %v5656_v4  ;;  %4860 = vmatprep.mubr.msk.f32.mxu1 %vm5557_vm1, %v5556_v1 }
  0x3d   :  { %4856 = vmatprep.subr.mxu1 %v5556_v1  ;;  %4878 = vmatprep.subr.mxu0 %v5556_v1 }
  0x3e   :  { %4573 = vmatmul.mubr.msk.f32.gmra.mxu0 %vm104_vm3, %v85_v19  ;;  %4857 = vmatpush3.msra.mxu1 %v5666_v7 }
  0x3f   :  { %228 = vmatprep.mubr.f32.mxu0 %v5556_v1  ;;  %4858 = vmatprep.subr.mxu1 %v5556_v1 }
  0x40   :  { %4859 = vmatpush3.msra.mxu1 %v5673_v8  ;;  %4879 = vmatpush3.msra.mxu0 %v5666_v7 }
  0x41   :  { %4863 = vmatprep.subr.mxu1 %v5556_v1  ;;  %4880 = vmatprep.subr.mxu0 %v5556_v1 }
  0x42   :  { %4574 = vmatmul.mubr.msk.f32.gmra.mxu0 %vm104_vm3, %v86_v20 }
  0x43   :  { %234 = vmatprep.mubr.f32.mxu0 %v5556_v1  ;;  %4881 = vmatpush3.msra.mxu0 %v5673_v8 }
  0x44   :  { %4896 = vmatprep.subr.mxu0 %v5556_v1 }
  0x46   :  { %4575 = vmatmul.mubr.msk.f32.gmra.mxu0 %vm104_vm3, %v87_v21 }
  0x47   :  { %240 = vmatprep.mubr.f32.mxu0 %v5556_v1 }
  0x4a   :  { %4576 = vmatmul.mubr.msk.f32.gmra.mxu0 %vm104_vm3, %v88_v22 }
  0x4b   :  { %4882 = vmatprep.mubr.msk.f32.mxu0 %vm5557_vm1, %v5556_v1 }
  0xed   :  { %v200_v30 = vpop.f32.mrf.mxu0 }
  0xee   :  { %v201_v31 = vadd.f32 %v200_v30, %v95_v28 }
  0xef   :  { %v202_v32 = vpop.f32.mrf.mxu0 }
  0xf0   :  { %v5768_v33 = vadd.f32 %v202_v32, %v99_v29  ;;  %v351_v34 = vpop.f32.mrf.mxu1 }
  0xf1   :  { %v355_v35 = vadd.f32 %v351_v34, %v201_v31  ;;  %v206_v36 = vpop.f32.mrf.mxu0  ;;  %v365_v31 = vpop.permute.xlu1 %364 }
  0xf2   :  { %v5770_v37 = vadd.f32 %v206_v36, %v95_v28  ;;  %v4840_v38 = vpop.f32.mrf.mxu1 }
  0xf3   :  { %5215 = vtanh.f32 %v355_v35  ;;  %v208_v39 = vpop.f32.mrf.mxu0  ;;  %v4578_v14 = vmul.f32 -1.442695, %v355_v35 }
  0xf4   :  { %v5772_v40 = vadd.f32 %v208_v39, %v99_v29 }
  0xf5   :  { %v212_v41 = vpop.f32.mrf.mxu0 }
  0xf6   :  { %v5774_v42 = vadd.f32 %v212_v41, %v95_v28 }
  0xf7   :  { %v214_v43 = vpop.f32.mrf.mxu0 }
  0xf8   :  { %v5776_v44 = vadd.f32 %v214_v43, %v99_v29 }
  0xf9   :  { %v470_v45 = vpop.f32.mrf.mxu1 }
  0xfa   :  { %v218_v46 = vpop.f32.mrf.mxu0 }
  0xfb   :  { %v5778_v47 = vadd.f32 %v218_v46, %v95_v28  ;;  %v4851_v48 = vpop.f32.mrf.mxu1 }
  0xfc   :  { %v220_v49 = vpop.f32.mrf.mxu0 }
  0xfd   :  { %v5780_v50 = vadd.f32 %v220_v49, %v99_v29 }
  0xfe   :  { %v224_v51 = vpop.f32.mrf.mxu0 }
  0xff   :  { %v5782_v52 = vadd.f32 %v224_v51, %v95_v28 }
 0x100   :  { %v226_v53 = vpop.f32.mrf.mxu0  ;;  %v5216_v54 = vpop.eup %5215 }
 0x101   :  { %v5784_v55 = vadd.f32 %v226_v53, %v99_v29  ;;  %369 = vrot.lane.b32.xlu0 %v5216_v54, %s5559_s0 }
 0x102   :  { %v230_v56 = vpop.f32.mrf.mxu0 }
 0x103   :  { %v5787_v57 = vadd.f32 %v230_v56, %v95_v28 }
 0x104   :  { %v232_v58 = vpop.f32.mrf.mxu0 }
 0x105   :  { %v5789_v59 = vadd.f32 %v232_v58, %v99_v29 }
 0x106   :  { %v236_v60 = vpop.f32.mrf.mxu0 }
 0x107   :  { %v5791_v61 = vadd.f32 %v236_v60, %v95_v28 }
 0x108   :  { %v238_v62 = vpop.f32.mrf.mxu0 }
 0x109   :  { %v5793_v63 = vadd.f32 %v238_v62, %v99_v29 }
 0x10a   :  { %v242_v0 = vpop.f32.mrf.mxu0 }
 0x10b   :  { %v5795_v3 = vadd.f32 %v242_v0, %v95_v28 }
 0x10c   :  { %v244_v5 = vpop.f32.mrf.mxu0 }
 0x10d   :  { %v245_v6 = vadd.f32 %v244_v5, %v99_v29 }
 0x10f   :  { %v474_v9 = vadd.f32 %v470_v45, %v245_v6 }
 0x111   :  { %5217 = vtanh.f32 %v474_v9  ;;  %v4580_v19 = vmul.f32 -1.442695, %v474_v9 }
 0x112   :  { %5219 = vpow2.f32 %v4578_v14 }
 0x11e   :  { %v5218_v10 = vpop.eup %5217 }
 0x11f   :  { %488 = vrot.lane.b32.xlu0 %v5218_v10, %s5559_s0  ;;  %v5220_v17 = vpop.eup %5219 }
 0x120   :  { %v359_v18 = vadd.f32 1.0, %v5220_v17 }
 0x122   :  { %5221 = vrcp.f32 %v359_v18 }
 0x123   :  { %483 = vrot.lane.b32.xlu0 %v400_v12, %s5558_s26  ;;  %5223 = vpow2.f32 %v4580_v19 }
 0x12f   :  { %v5222_v20 = vpop.eup %5221 }
 0x130   :  { %v5224_v23 = vpop.eup %5223  ;;  %v367_v32 = vmul.f32 %v5222_v20, %v365_v31 }
 0x131   :  { %v478_v26 = vadd.f32 1.0, %v5224_v23 }
 0x133   :  { %5225 = vrcp.f32 %v478_v26 }
 0x140   :  { %v5226_v28 = vpop.eup %5225 }
 0x173   :  { %v370_v21 = vpop.permute.xlu0 %369 }
 0x174   :  { %v372_v22 = vmul.f32 %v5222_v20, %v370_v21 }
 0x176   :  { %374 = vrot.lane.b32.xlu1 %v372_v22, %s5558_s26 }
 0x191   :  { %v489_v29 = vpop.permute.xlu0 %488 }
 0x192   :  { %v491_v30 = vmul.f32 %v5226_v28, %v489_v29 }
 0x194   :  { %493 = vrot.lane.b32.xlu1 %v491_v30, %s5558_s26 }
 0x195   :  { %v484_v38 = vpop.permute.xlu0 %483 }
 0x196   :  { %v486_v39 = vmul.f32 %v5226_v28, %v484_v38 }
 0x1e8   :  { %v375_v34 = vpop.permute.xlu1 %374 }
 0x1e9   :  { %v377_v35 = vadd.f32 %v375_v34, %v367_v32 }
 0x1eb   :  { %5227 = vtanh.f32 %v377_v35 }
 0x1f8   :  { %v5228_v36 = vpop.eup %5227 }
 0x1f9   :  { %380 = vrot.lane.b32.xlu0 %v5228_v36, %s5559_s0 }
 0x206   :  { %v494_v41 = vpop.permute.xlu1 %493 }
 0x207   :  { %v496_v43 = vadd.f32 %v494_v41, %v486_v39 }
 0x209   :  { %5229 = vtanh.f32 %v496_v43 }
 0x216   :  { %v5230_v45 = vpop.eup %5229 }
 0x217   :  { %499 = vrot.lane.b32.xlu1 %v5230_v45, %s5559_s0 }
 0x26b   :  { %v381_v46 = vpop.permute.xlu0 %380 }
 0x26c   :  { %v383_v48 = vmul.f32 %v5222_v20, %v381_v46 }
 0x26e   :  { %385 = vrot.lane.b32.xlu0 %v383_v48, %s5558_s26 }
 0x272   :  { %509 = vrot.lane.b32.xlu0 %v496_v43, %s5560_s2 }
 0x276   :  { %390 = vrot.lane.b32.xlu0 %v377_v35, %s5560_s2 }
 0x289   :  { %v500_v49 = vpop.permute.xlu1 %499 }
 0x28a   :  { %v502_v51 = vmul.f32 %v5226_v28, %v500_v49 }
 0x28c   :  { %504 = vrot.lane.b32.xlu1 %v502_v51, %s5558_s26 }
 0x2e0   :  { %v386_v53 = vpop.permute.xlu0 %385 }
 0x2e1   :  { %388 = vst.msk [vmem:[#allocation5] sm:$0xff] %vm263_vm0, %v386_v53  ;;  %394 = vst.msk [vmem:[#allocation3] sm:$0xff] %vm263_vm0, %v386_v53 }
 0x2e4   :  { %v510_v54 = vpop.permute.xlu0 %509 }
 0x2e5   :  { %512 = vst.msk [vmem:[#allocation8] sm:$0xff] %vm263_vm0, %v510_v54 }
 0x2e8   :  { %v391_v56 = vpop.permute.xlu0 %390  ;;  %v519_v58 = vld [vmem:[#allocation5] sm:$0xff] }
 0x2e9   :  { %393 = vst.msk [vmem:[#allocation6] sm:$0xff] %vm263_vm0, %v391_v56  ;;  %4861 = vmatmul.mubr.msk.f32.vlgmr.msra.gmra.mxu1 %vm263_vm0, %v519_v58 }
 0x2ea   :  { %4864 = vmatpush3.msra.mxu1 %v5682_v11  ;;  %4871 = vmatprep.mubr.msk.f32.mxu1 %vm5557_vm1, %v5556_v1 }
 0x2eb   :  { %4865 = vmatprep.subr.mxu1 %v5556_v1 }
 0x2ec   :  { %v640_v60 = vld [vmem:[#allocation8] sm:$0xff]  ;;  %4866 = vmatpush3.msra.mxu1 %v5688_v13 }
 0x2ed   :  { %723 = vrot.lane.b32.xlu0 %v640_v60, %s5558_s26  ;;  %4867 = vmatprep.subr.mxu1 %v5556_v1 }
 0x2ee   :  { %4868 = vmatpush3.msra.mxu1 %v5697_v15 }
 0x2ef   :  { %4869 = vmatprep.subr.mxu1 %v5556_v1 }
 0x2f0   :  { %v520_v62 = vld [vmem:[#allocation6] sm:$0xff]  ;;  %4870 = vmatpush3.msra.mxu1 %v5703_v16 }
 0x2f1   :  { %603 = vrot.lane.b32.xlu0 %v520_v62, %s5558_s26  ;;  %4885 = vmatprep.subr.mxu1 %v5556_v1 }
 0x2fe   :  { %v505_v0 = vpop.permute.xlu1 %504 }
 0x2ff   :  { %507 = vst.msk [vmem:[#allocation7] sm:$0xff] %vm263_vm0, %v505_v0  ;;  %514 = vst.msk [vmem:[#allocation4 + $0x38] sm:$0xff] %vm263_vm0, %v505_v0 }
 0x306   :  { %v639_v5 = vld [vmem:[#allocation7] sm:$0xff] }
 0x307   :  { %4872 = vmatmul.mubr.msk.f32.vlgmr.msra.gmra.mxu1 %vm263_vm0, %v639_v5 }
 0x308   :  { %4886 = vmatpush3.msra.mxu1 %v5682_v11  ;;  %4893 = vmatprep.mubr.msk.f32.mxu1 %vm5557_vm1, %v5556_v1 }
 0x309   :  { %4887 = vmatprep.subr.mxu1 %v5556_v1 }
 0x30a   :  { %4888 = vmatpush3.msra.mxu1 %v5688_v13 }
 0x30b   :  { %4889 = vmatprep.subr.mxu1 %v5556_v1 }
 0x30c   :  { %4890 = vmatpush3.msra.mxu1 %v5697_v15 }
 0x30d   :  { %4891 = vmatprep.subr.mxu1 %v5556_v1 }
 0x30e   :  { %4892 = vmatpush3.msra.mxu1 %v5703_v16 }
 0x30f   :  { %4907 = vmatprep.subr.mxu1 %v5556_v1 }
 0x35f   :  { %v724_v34 = vpop.permute.xlu0 %723 }
 0x363   :  { %v604_v39 = vpop.permute.xlu0 %603 }
 0x3a9   :  { %v590_v6 = vpop.f32.mrf.mxu1 }
 0x3aa   :  { %v594_v17 = vadd.f32 %v590_v6, %v5770_v37 }
 0x3ab   :  { %v4862_v9 = vpop.f32.mrf.mxu1 }
 0x3ac   :  { %v4582_v21 = vmul.f32 -1.442695, %v594_v17 }
 0x3c7   :  { %v710_v10 = vpop.f32.mrf.mxu1 }
 0x3c8   :  { %v714_v12 = vadd.f32 %v710_v10, %v5793_v63 }
 0x3c9   :  { %v4873_v14 = vpop.f32.mrf.mxu1 }
 0x3ca   :  { %5231 = vtanh.f32 %v714_v12  ;;  %v4584_v20 = vmul.f32 -1.442695, %v714_v12 }
 0x3cb   :  { %5233 = vtanh.f32 %v594_v17 }
 0x3cc   :  { %5235 = vpow2.f32 %v4584_v20 }
 0x3cd   :  { %5237 = vpow2.f32 %v4582_v21 }
 0x3d7   :  { %v5232_v18 = vpop.eup %5231 }
 0x3d8   :  { %728 = vrot.lane.b32.xlu1 %v5232_v18, %s5559_s0  ;;  %v5234_v19 = vpop.eup %5233 }
 0x3d9   :  { %v5236_v22 = vpop.eup %5235 }
 0x3da   :  { %v718_v23 = vadd.f32 1.0, %v5236_v22  ;;  %v5238_v26 = vpop.eup %5237 }
 0x3db   :  { %v598_v28 = vadd.f32 1.0, %v5238_v26 }
 0x3dc   :  { %608 = vrot.lane.b32.xlu1 %v5234_v19, %s5559_s0  ;;  %5239 = vrcp.f32 %v718_v23 }
 0x3dd   :  { %5241 = vrcp.f32 %v598_v28 }
 0x3e9   :  { %v5240_v63 = vpop.eup %5239 }
 0x3ea   :  { %v5242_v30 = vpop.eup %5241  ;;  %v726_v35 = vmul.f32 %v5240_v63, %v724_v34 }
 0x3eb   :  { %v606_v41 = vmul.f32 %v5242_v30, %v604_v39 }
 0x44a   :  { %v729_v37 = vpop.permute.xlu1 %728 }
 0x44b   :  { %v731_v29 = vmul.f32 %v5240_v63, %v729_v37 }
 0x44d   :  { %733 = vrot.lane.b32.xlu1 %v731_v29, %s5558_s26 }
 0x44e   :  { %v609_v31 = vpop.permute.xlu1 %608 }
 0x44f   :  { %v611_v32 = vmul.f32 %v5242_v30, %v609_v31 }
 0x451   :  { %613 = vrot.lane.b32.xlu1 %v611_v32, %s5558_s26 }
 0x4bf   :  { %v734_v36 = vpop.permute.xlu1 %733 }
 0x4c0   :  { %v736_v38 = vadd.f32 %v734_v36, %v726_v35 }
 0x4c2   :  { %5243 = vtanh.f32 %v736_v38 }
 0x4c3   :  { %v614_v43 = vpop.permute.xlu1 %613 }
 0x4c4   :  { %v616_v45 = vadd.f32 %v614_v43, %v606_v41 }
 0x4c6   :  { %5245 = vtanh.f32 %v616_v45 }
 0x4cf   :  { %v5244_v46 = vpop.eup %5243 }
 0x4d0   :  { %739 = vrot.lane.b32.xlu0 %v5244_v46, %s5559_s0 }
 0x4d3   :  { %v5246_v48 = vpop.eup %5245 }
 0x4d4   :  { %619 = vrot.lane.b32.xlu1 %v5246_v48, %s5559_s0 }
 0x542   :  { %v740_v49 = vpop.permute.xlu0 %739 }
 0x543   :  { %v742_v51 = vmul.f32 %v5240_v63, %v740_v49 }
 0x545   :  { %744 = vrot.lane.b32.xlu0 %v742_v51, %s5558_s26 }
 0x546   :  { %v620_v53 = vpop.permute.xlu1 %619 }
 0x547   :  { %v622_v54 = vmul.f32 %v5242_v30, %v620_v53 }
 0x549   :  { %624 = vrot.lane.b32.xlu1 %v622_v54, %s5558_s26  ;;  %749 = vrot.lane.b32.xlu0 %v736_v38, %s5560_s2 }
 0x54d   :  { %629 = vrot.lane.b32.xlu0 %v616_v45, %s5560_s2 }
 0x5b7   :  { %v745_v56 = vpop.permute.xlu0 %744 }
 0x5b8   :  { %747 = vst.msk [vmem:[#allocation7] sm:$0xff] %vm263_vm0, %v745_v56  ;;  %754 = vst.msk [vmem:[#allocation4 + $0x30] sm:$0xff] %vm263_vm0, %v745_v56 }
 0x5bb   :  { %v625_v58 = vpop.permute.xlu1 %624  ;;  %v750_v60 = vpop.permute.xlu0 %749 }
 0x5bc   :  { %627 = vst.msk [vmem:[#allocation5] sm:$0xff] %vm263_vm0, %v625_v58  ;;  %634 = vst.msk [vmem:[#allocation3 + $0x8] sm:$0xff] %vm263_vm0, %v625_v58 }
 0x5bd   :  { %752 = vst.msk [vmem:[#allocation8] sm:$0xff] %vm263_vm0, %v750_v60 }
 0x5bf   :  { %v630_v62 = vpop.permute.xlu0 %629  ;;  %v879_v0 = vld [vmem:[#allocation7] sm:$0xff] }
 0x5c0   :  { %632 = vst.msk [vmem:[#allocation6] sm:$0xff] %vm263_vm0, %v630_v62  ;;  %4894 = vmatmul.mubr.msk.f32.vlgmr.msra.gmra.mxu1 %vm263_vm0, %v879_v0 }
 0x5c1   :  { %4908 = vmatpush3.msra.mxu1 %v5682_v11  ;;  %4915 = vmatprep.mubr.msk.f32.mxu1 %vm5557_vm1, %v5556_v1 }
 0x5c2   :  { %4909 = vmatprep.subr.mxu1 %v5556_v1 }
 0x5c3   :  { %v759_v5 = vld [vmem:[#allocation5] sm:$0xff]  ;;  %4910 = vmatpush3.msra.mxu1 %v5688_v13 }
 0x5c4   :  { %v880_v6 = vld [vmem:[#allocation8] sm:$0xff]  ;;  %4883 = vmatmul.mubr.msk.f32.vlgmr.msra.gmra.mxu0 %vm263_vm0, %v759_v5  ;;  %4911 = vmatprep.subr.mxu1 %v5556_v1 }
 0x5c5   :  { %963 = vrot.lane.b32.xlu0 %v880_v6, %s5558_s26  ;;  %4897 = vmatpush3.msra.mxu0 %v5648_v2 }
 0x5c6   :  { %4912 = vmatpush3.msra.mxu1 %v5697_v15  ;;  %4898 = vmatprep.subr.mxu0 %v5556_v1 }
 0x5c7   :  { %v760_v9 = vld [vmem:[#allocation6] sm:$0xff]  ;;  %4913 = vmatprep.subr.mxu1 %v5556_v1  ;;  %4899 = vmatpush3.msra.mxu0 %v5656_v4 }
 0x5c8   :  { %4914 = vmatpush3.msra.mxu1 %v5703_v16  ;;  %4900 = vmatprep.subr.mxu0 %v5556_v1 }
 0x5c9   :  { %843 = vrot.lane.b32.xlu0 %v760_v9, %s5558_s26  ;;  %4904 = vmatprep.mubr.msk.f32.mxu0 %vm5557_vm1, %v5556_v1 }
 0x5ca   :  { %4901 = vmatpush3.msra.mxu0 %v5666_v7  ;;  %4929 = vmatprep.subr.mxu1 %v5556_v1 }
 0x5cb   :  { %4902 = vmatprep.subr.mxu0 %v5556_v1 }
 0x5cc   :  { %4903 = vmatpush3.msra.mxu0 %v5673_v8 }
 0x5cd   :  { %4918 = vmatprep.subr.mxu0 %v5556_v1 }
 0x637   :  { %v964_v34 = vpop.permute.xlu0 %963 }
 0x63b   :  { %v844_v39 = vpop.permute.xlu0 %843 }
 0x680   :  { %v950_v10 = vpop.f32.mrf.mxu1 }
 0x681   :  { %v954_v12 = vadd.f32 %v950_v10, %v5789_v59 }
 0x682   :  { %v4895_v14 = vpop.f32.mrf.mxu1 }
 0x683   :  { %5247 = vtanh.f32 %v954_v12  ;;  %v4588_v22 = vmul.f32 -1.442695, %v954_v12 }
 0x684   :  { %v830_v17 = vpop.f32.mrf.mxu0 }
 0x685   :  { %v834_v18 = vadd.f32 %v830_v17, %v5774_v42 }
 0x686   :  { %v4884_v19 = vpop.f32.mrf.mxu0 }
 0x687   :  { %5249 = vtanh.f32 %v834_v18  ;;  %v4586_v23 = vmul.f32 -1.442695, %v834_v18 }
 0x688   :  { %5251 = vpow2.f32 %v4588_v22 }
 0x689   :  { %5253 = vpow2.f32 %v4586_v23 }
 0x690   :  { %v5248_v20 = vpop.eup %5247 }
 0x691   :  { %968 = vrot.lane.b32.xlu1 %v5248_v20, %s5559_s0 }
 0x694   :  { %v5250_v21 = vpop.eup %5249 }
 0x695   :  { %848 = vrot.lane.b32.xlu1 %v5250_v21, %s5559_s0  ;;  %v5252_v26 = vpop.eup %5251 }
 0x696   :  { %v958_v28 = vadd.f32 1.0, %v5252_v26  ;;  %v5254_v59 = vpop.eup %5253 }
 0x697   :  { %v838_v63 = vadd.f32 1.0, %v5254_v59 }
 0x698   :  { %5255 = vrcp.f32 %v958_v28 }
 0x699   :  { %5257 = vrcp.f32 %v838_v63 }
 0x6a5   :  { %v5256_v37 = vpop.eup %5255 }
 0x6a6   :  { %v5258_v30 = vpop.eup %5257  ;;  %v966_v35 = vmul.f32 %v5256_v37, %v964_v34 }
 0x6a7   :  { %v846_v41 = vmul.f32 %v5258_v30, %v844_v39 }
 0x703   :  { %v969_v42 = vpop.permute.xlu1 %968 }
 0x704   :  { %v971_v29 = vmul.f32 %v5256_v37, %v969_v42 }
 0x706   :  { %973 = vrot.lane.b32.xlu1 %v971_v29, %s5558_s26 }
 0x707   :  { %v849_v31 = vpop.permute.xlu1 %848 }
 0x708   :  { %v851_v32 = vmul.f32 %v5258_v30, %v849_v31 }
 0x70a   :  { %853 = vrot.lane.b32.xlu1 %v851_v32, %s5558_s26 }
 0x778   :  { %v974_v36 = vpop.permute.xlu1 %973 }
 0x779   :  { %v976_v38 = vadd.f32 %v974_v36, %v966_v35 }
 0x77b   :  { %5259 = vtanh.f32 %v976_v38 }
 0x77c   :  { %v854_v43 = vpop.permute.xlu1 %853 }
 0x77d   :  { %v856_v45 = vadd.f32 %v854_v43, %v846_v41 }
 0x77f   :  { %5261 = vtanh.f32 %v856_v45 }
 0x788   :  { %v5260_v46 = vpop.eup %5259 }
 0x789   :  { %979 = vrot.lane.b32.xlu0 %v5260_v46, %s5559_s0 }
 0x78c   :  { %v5262_v48 = vpop.eup %5261 }
 0x78d   :  { %859 = vrot.lane.b32.xlu1 %v5262_v48, %s5559_s0 }
 0x7fb   :  { %v980_v49 = vpop.permute.xlu0 %979 }
 0x7fc   :  { %v982_v51 = vmul.f32 %v5256_v37, %v980_v49 }
 0x7fe   :  { %984 = vrot.lane.b32.xlu0 %v982_v51, %s5558_s26 }
 0x7ff   :  { %v860_v53 = vpop.permute.xlu1 %859 }
 0x800   :  { %v862_v54 = vmul.f32 %v5258_v30, %v860_v53 }
 0x802   :  { %864 = vrot.lane.b32.xlu1 %v862_v54, %s5558_s26  ;;  %989 = vrot.lane.b32.xlu0 %v976_v38, %s5560_s2 }
 0x806   :  { %869 = vrot.lane.b32.xlu0 %v856_v45, %s5560_s2 }
 0x870   :  { %v985_v56 = vpop.permute.xlu0 %984 }
 0x871   :  { %987 = vst.msk [vmem:[#allocation7] sm:$0xff] %vm263_vm0, %v985_v56  ;;  %994 = vst.msk [vmem:[#allocation4 + $0x28] sm:$0xff] %vm263_vm0, %v985_v56 }
 0x874   :  { %v865_v58 = vpop.permute.xlu1 %864  ;;  %v990_v60 = vpop.permute.xlu0 %989 }
 0x875   :  { %867 = vst.msk [vmem:[#allocation5] sm:$0xff] %vm263_vm0, %v865_v58  ;;  %874 = vst.msk [vmem:[#allocation3 + $0x10] sm:$0xff] %vm263_vm0, %v865_v58 }
 0x876   :  { %992 = vst.msk [vmem:[#allocation8] sm:$0xff] %vm263_vm0, %v990_v60 }
 0x878   :  { %v870_v62 = vpop.permute.xlu0 %869  ;;  %v1119_v0 = vld [vmem:[#allocation7] sm:$0xff] }
 0x879   :  { %872 = vst.msk [vmem:[#allocation6] sm:$0xff] %vm263_vm0, %v870_v62  ;;  %4916 = vmatmul.mubr.msk.f32.vlgmr.msra.gmra.mxu1 %vm263_vm0, %v1119_v0 }
 0x87a   :  { %4930 = vmatpush3.msra.mxu1 %v5682_v11  ;;  %4937 = vmatprep.mubr.msk.f32.mxu1 %vm5557_vm1, %v5556_v1 }
 0x87b   :  { %4931 = vmatprep.subr.mxu1 %v5556_v1 }
 0x87c   :  { %v999_v5 = vld [vmem:[#allocation5] sm:$0xff]  ;;  %4932 = vmatpush3.msra.mxu1 %v5688_v13 }
 0x87d   :  { %v1120_v6 = vld [vmem:[#allocation8] sm:$0xff]  ;;  %4905 = vmatmul.mubr.msk.f32.vlgmr.msra.gmra.mxu0 %vm263_vm0, %v999_v5  ;;  %4933 = vmatprep.subr.mxu1 %v5556_v1 }
 0x87e   :  { %1203 = vrot.lane.b32.xlu0 %v1120_v6, %s5558_s26  ;;  %4919 = vmatpush3.msra.mxu0 %v5648_v2 }
 0x87f   :  { %4934 = vmatpush3.msra.mxu1 %v5697_v15  ;;  %4920 = vmatprep.subr.mxu0 %v5556_v1 }
 0x880   :  { %v1000_v9 = vld [vmem:[#allocation6] sm:$0xff]  ;;  %4935 = vmatprep.subr.mxu1 %v5556_v1  ;;  %4921 = vmatpush3.msra.mxu0 %v5656_v4 }
 0x881   :  { %4936 = vmatpush3.msra.mxu1 %v5703_v16  ;;  %4922 = vmatprep.subr.mxu0 %v5556_v1 }
 0x882   :  { %1083 = vrot.lane.b32.xlu0 %v1000_v9, %s5558_s26  ;;  %4926 = vmatprep.mubr.msk.f32.mxu0 %vm5557_vm1, %v5556_v1 }
 0x883   :  { %4923 = vmatpush3.msra.mxu0 %v5666_v7  ;;  %4951 = vmatprep.subr.mxu1 %v5556_v1 }
 0x884   :  { %4924 = vmatprep.subr.mxu0 %v5556_v1 }
 0x885   :  { %4925 = vmatpush3.msra.mxu0 %v5673_v8 }
 0x886   :  { %4940 = vmatprep.subr.mxu0 %v5556_v1 }
 0x8f0   :  { %v1204_v31 = vpop.permute.xlu0 %1203 }
 0x8f4   :  { %v1084_v36 = vpop.permute.xlu0 %1083 }
 0x939   :  { %v1190_v10 = vpop.f32.mrf.mxu1 }
 0x93a   :  { %v1194_v12 = vadd.f32 %v1190_v10, %v5784_v55 }
 0x93b   :  { %v4917_v14 = vpop.f32.mrf.mxu1 }
 0x93c   :  { %5263 = vtanh.f32 %v1194_v12  ;;  %v4592_v22 = vmul.f32 -1.442695, %v1194_v12 }
 0x93d   :  { %v1070_v17 = vpop.f32.mrf.mxu0 }
 0x93e   :  { %v1074_v18 = vadd.f32 %v1070_v17, %v5778_v47 }
 0x93f   :  { %v4906_v19 = vpop.f32.mrf.mxu0 }
 0x940   :  { %5265 = vtanh.f32 %v1074_v18  ;;  %v4590_v23 = vmul.f32 -1.442695, %v1074_v18 }
 0x941   :  { %5267 = vpow2.f32 %v4592_v22 }
 0x942   :  { %5269 = vpow2.f32 %v4590_v23 }
 0x949   :  { %v5264_v20 = vpop.eup %5263 }
 0x94a   :  { %1208 = vrot.lane.b32.xlu1 %v5264_v20, %s5559_s0 }
 0x94d   :  { %v5266_v21 = vpop.eup %5265 }
 0x94e   :  { %1088 = vrot.lane.b32.xlu1 %v5266_v21, %s5559_s0  ;;  %v5268_v26 = vpop.eup %5267 }
 0x94f   :  { %v1198_v28 = vadd.f32 1.0, %v5268_v26  ;;  %v5270_v55 = vpop.eup %5269 }
 0x950   :  { %v1078_v59 = vadd.f32 1.0, %v5270_v55 }
 0x951   :  { %5271 = vrcp.f32 %v1198_v28 }
 0x952   :  { %5273 = vrcp.f32 %v1078_v59 }
 0x95e   :  { %v5272_v63 = vpop.eup %5271 }
 0x95f   :  { %v5274_v42 = vpop.eup %5273  ;;  %v1206_v32 = vmul.f32 %v5272_v63, %v1204_v31 }
 0x960   :  { %v1086_v38 = vmul.f32 %v5274_v42, %v1084_v36 }
 0x9bc   :  { %v1209_v47 = vpop.permute.xlu1 %1208 }
 0x9bd   :  { %v1211_v37 = vmul.f32 %v5272_v63, %v1209_v47 }
 0x9bf   :  { %1213 = vrot.lane.b32.xlu1 %v1211_v37, %s5558_s26 }
 0x9c0   :  { %v1089_v29 = vpop.permute.xlu1 %1088 }
 0x9c1   :  { %v1091_v30 = vmul.f32 %v5274_v42, %v1089_v29 }
 0x9c3   :  { %1093 = vrot.lane.b32.xlu1 %v1091_v30, %s5558_s26 }
 0xa31   :  { %v1214_v34 = vpop.permute.xlu1 %1213 }
 0xa32   :  { %v1216_v35 = vadd.f32 %v1214_v34, %v1206_v32 }
 0xa34   :  { %5275 = vtanh.f32 %v1216_v35 }
 0xa35   :  { %v1094_v39 = vpop.permute.xlu1 %1093 }
 0xa36   :  { %v1096_v41 = vadd.f32 %v1094_v39, %v1086_v38 }
 0xa38   :  { %5277 = vtanh.f32 %v1096_v41 }
 0xa41   :  { %v5276_v43 = vpop.eup %5275 }
 0xa42   :  { %1219 = vrot.lane.b32.xlu0 %v5276_v43, %s5559_s0 }
 0xa45   :  { %v5278_v45 = vpop.eup %5277 }
 0xa46   :  { %1099 = vrot.lane.b32.xlu1 %v5278_v45, %s5559_s0 }
 0xab4   :  { %v1220_v46 = vpop.permute.xlu0 %1219 }
 0xab5   :  { %v1222_v48 = vmul.f32 %v5272_v63, %v1220_v46  ;;  %v5988_v46 = vld [vmem:[#allocation10 + $0x10] sm:$0xff] }
 0xab7   :  { %1224 = vrot.lane.b32.xlu0 %v1222_v48, %s5558_s26  ;;  %v5997_v48 = vld [vmem:[%s6653_s3 + $0x18] sm:$0xff] }
 0xab8   :  { %v1100_v49 = vpop.permute.xlu1 %1099 }
 0xab9   :  { %v1102_v51 = vmul.f32 %v5274_v42, %v1100_v49  ;;  %v6000_v49 = vld [vmem:[#allocation10 + $0x8] sm:$0xff] }
 0xabb   :  { %1104 = vrot.lane.b32.xlu1 %v1102_v51, %s5558_s26  ;;  %1229 = vrot.lane.b32.xlu0 %v1216_v35, %s5560_s2 }
 0xabf   :  { %1109 = vrot.lane.b32.xlu0 %v1096_v41, %s5560_s2  ;;  %v5982_v41 = vld [vmem:[#allocation10 + $0x18] sm:$0xff] }
 0xb29   :  { %v1225_v53 = vpop.permute.xlu0 %1224 }
 0xb2a   :  { %1227 = vst.msk [vmem:[#allocation7] sm:$0xff] %vm263_vm0, %v1225_v53  ;;  %1234 = vst.msk [vmem:[#allocation4 + $0x20] sm:$0xff] %vm263_vm0, %v1225_v53  ;;  %v6008_v53 = vld [vmem:[%s6653_s3 + $0x10] sm:$0xff] }
 0xb2d   :  { %v1105_v54 = vpop.permute.xlu1 %1104  ;;  %v1230_v56 = vpop.permute.xlu0 %1229 }
 0xb2e   :  { %1107 = vst.msk [vmem:[#allocation5] sm:$0xff] %vm263_vm0, %v1105_v54  ;;  %1114 = vst.msk [vmem:[#allocation3 + $0x18] sm:$0xff] %vm263_vm0, %v1105_v54  ;;  %v6012_v54 = vld [vmem:[#allocation10] sm:$0xff] }
 0xb2f   :  { %1232 = vst.msk [vmem:[#allocation8] sm:$0xff] %vm263_vm0, %v1230_v56  ;;  %v6021_v56 = vld [vmem:[%s6653_s3 + $0x8] sm:$0xff] }
 0xb31   :  { %v1110_v58 = vpop.permute.xlu0 %1109  ;;  %v1353_v60 = vld [vmem:[#allocation7] sm:$0xff] }
 0xb32   :  { %1112 = vst.msk [vmem:[#allocation6] sm:$0xff] %vm263_vm0, %v1110_v58  ;;  %4938 = vmatmul.mubr.msk.f32.vlgmr.msra.gmra.mxu1 %vm263_vm0, %v1353_v60  ;;  %v6029_v58 = vld [vmem:[%s6653_s3] sm:$0xff] }
 0xb33   :  { %4952 = vmatpush3.msra.mxu1 %v5682_v11  ;;  %4959 = vmatprep.mubr.msk.f32.mxu1 %vm5557_vm1, %v5556_v1 }
 0xb34   :  { %4953 = vmatprep.subr.mxu1 %v5556_v1 }
 0xb35   :  { %v1236_v62 = vld [vmem:[#allocation5] sm:$0xff]  ;;  %4954 = vmatpush3.msra.mxu1 %v5688_v13 }
 0xb36   :  { %v1354_v0 = vld [vmem:[#allocation8] sm:$0xff]  ;;  %4927 = vmatmul.mubr.msk.f32.vlgmr.msra.gmra.mxu0 %vm263_vm0, %v1236_v62  ;;  %4955 = vmatprep.subr.mxu1 %v5556_v1 }
 0xb37   :  { %1437 = vrot.lane.b32.xlu0 %v1354_v0, %s5558_s26  ;;  %4941 = vmatpush3.msra.mxu0 %v5648_v2 }
 0xb38   :  { %4956 = vmatpush3.msra.mxu1 %v5697_v15  ;;  %4942 = vmatprep.subr.mxu0 %v5556_v1 }
 0xb39   :  { %v1237_v11 = vld [vmem:[#allocation6] sm:$0xff]  ;;  %4957 = vmatprep.subr.mxu1 %v5556_v1  ;;  %4943 = vmatpush3.msra.mxu0 %v5656_v4 }
 0xb3a   :  { %4958 = vmatpush3.msra.mxu1 %v5703_v16  ;;  %4944 = vmatprep.subr.mxu0 %v5556_v1 }
 0xb3b   :  { %1320 = vrot.lane.b32.xlu0 %v1237_v11, %s5558_s26  ;;  %4948 = vmatprep.mubr.msk.f32.mxu0 %vm5557_vm1, %v5556_v1 }
 0xb3c   :  { %4945 = vmatpush3.msra.mxu0 %v5666_v7  ;;  %4973 = vmatprep.subr.mxu1 %v5556_v1 }
 0xb3d   :  { %4946 = vmatprep.subr.mxu0 %v5556_v1 }
 0xb3e   :  { %4947 = vmatpush3.msra.mxu0 %v5673_v8 }
 0xb3f   :  { %4962 = vmatprep.subr.mxu0 %v5556_v1 }
 0xba9   :  { %v1438_v22 = vpop.permute.xlu0 %1437 }
 0xbad   :  { %v1321_v55 = vpop.permute.xlu0 %1320 }
 0xbf2   :  { %v1424_v2 = vpop.f32.mrf.mxu1 }
 0xbf3   :  { %v1428_v4 = vadd.f32 %v1424_v2, %v5780_v50 }
 0xbf4   :  { %v4939_v13 = vpop.f32.mrf.mxu1 }
 0xbf5   :  { %5279 = vtanh.f32 %v1428_v4  ;;  %v4596_v9 = vmul.f32 -1.442695, %v1428_v4 }
 0xbf6   :  { %v1307_v15 = vpop.f32.mrf.mxu0 }
 0xbf7   :  { %v1311_v16 = vadd.f32 %v1307_v15, %v5782_v52 }
 0xbf8   :  { %v4928_v5 = vpop.f32.mrf.mxu0 }
 0xbf9   :  { %5281 = vtanh.f32 %v1311_v16  ;;  %v4594_v8 = vmul.f32 -1.442695, %v1311_v16 }
 0xbfa   :  { %5283 = vpow2.f32 %v4596_v9 }
 0xbfb   :  { %5285 = vpow2.f32 %v4594_v8 }
 0xc02   :  { %v5280_v6 = vpop.eup %5279 }
 0xc03   :  { %1442 = vrot.lane.b32.xlu1 %v5280_v6, %s5559_s0 }
 0xc06   :  { %v5282_v7 = vpop.eup %5281 }
 0xc07   :  { %1325 = vrot.lane.b32.xlu1 %v5282_v7, %s5559_s0  ;;  %v5284_v10 = vpop.eup %5283 }
 0xc08   :  { %v1432_v12 = vadd.f32 1.0, %v5284_v10  ;;  %v5286_v50 = vpop.eup %5285 }
 0xc09   :  { %v1315_v14 = vadd.f32 1.0, %v5286_v50 }
 0xc0a   :  { %5287 = vrcp.f32 %v1432_v12 }
 0xc0b   :  { %5289 = vrcp.f32 %v1315_v14 }
 0xc17   :  { %v5288_v17 = vpop.eup %5287 }
 0xc18   :  { %v5290_v19 = vpop.eup %5289  ;;  %v1440_v23 = vmul.f32 %v5288_v17, %v1438_v22 }
 0xc19   :  { %v1323_v59 = vmul.f32 %v5290_v19, %v1321_v55 }
 0xc75   :  { %v1443_v52 = vpop.permute.xlu1 %1442 }
 0xc76   :  { %v1445_v18 = vmul.f32 %v5288_v17, %v1443_v52 }
 0xc78   :  { %1447 = vrot.lane.b32.xlu1 %v1445_v18, %s5558_s26 }
 0xc79   :  { %v1326_v20 = vpop.permute.xlu1 %1325 }
 0xc7a   :  { %v1328_v21 = vmul.f32 %v5290_v19, %v1326_v20 }
 0xc7c   :  { %1330 = vrot.lane.b32.xlu1 %v1328_v21, %s5558_s26 }
 0xcea   :  { %v1448_v26 = vpop.permute.xlu1 %1447 }
 0xceb   :  { %v1450_v28 = vadd.f32 %v1448_v26, %v1440_v23 }
 0xced   :  { %5291 = vtanh.f32 %v1450_v28 }
 0xcee   :  { %v1331_v63 = vpop.permute.xlu1 %1330 }
 0xcef   :  { %v1333_v47 = vadd.f32 %v1331_v63, %v1323_v59 }
 0xcf1   :  { %5293 = vtanh.f32 %v1333_v47 }
 0xcfa   :  { %v5292_v37 = vpop.eup %5291 }
 0xcfb   :  { %1453 = vrot.lane.b32.xlu0 %v5292_v37, %s5559_s0 }
 0xcfe   :  { %v5294_v42 = vpop.eup %5293 }
 0xcff   :  { %1336 = vrot.lane.b32.xlu1 %v5294_v42, %s5559_s0 }
 0xd6d   :  { %v1454_v29 = vpop.permute.xlu0 %1453 }
 0xd6e   :  { %v1456_v30 = vmul.f32 %v5288_v17, %v1454_v29 }
 0xd70   :  { %1458 = vrot.lane.b32.xlu0 %v1456_v30, %s5558_s26 }
 0xd71   :  { %v1337_v31 = vpop.permute.xlu1 %1336 }
 0xd72   :  { %v1339_v32 = vmul.f32 %v5290_v19, %v1337_v31 }
 0xd74   :  { %1341 = vrot.lane.b32.xlu1 %v1339_v32, %s5558_s26  ;;  %1463 = vrot.lane.b32.xlu0 %v1450_v28, %s5560_s2 }
 0xd78   :  { %1346 = vrot.lane.b32.xlu0 %v1333_v47, %s5560_s2 }
 0xde2   :  { %v1459_v34 = vpop.permute.xlu0 %1458 }
 0xde3   :  { %1461 = vst.msk [vmem:[#allocation7] sm:$0xff] %vm263_vm0, %v1459_v34  ;;  %1468 = vst.msk [vmem:[#allocation4 + $0x18] sm:$0xff] %vm263_vm0, %v1459_v34 }
 0xde6   :  { %v1342_v35 = vpop.permute.xlu1 %1341  ;;  %v1464_v36 = vpop.permute.xlu0 %1463 }
 0xde7   :  { %1344 = vst.msk [vmem:[#allocation5] sm:$0xff] %vm263_vm0, %v1342_v35  ;;  %1351 = vst.msk [vmem:[#allocation3 + $0x20] sm:$0xff] %vm263_vm0, %v1342_v35 }
 0xde8   :  { %1466 = vst.msk [vmem:[#allocation8] sm:$0xff] %vm263_vm0, %v1464_v36 }
 0xdea   :  { %v1347_v38 = vpop.permute.xlu0 %1346  ;;  %v1587_v39 = vld [vmem:[#allocation7] sm:$0xff] }
 0xdeb   :  { %1349 = vst.msk [vmem:[#allocation6] sm:$0xff] %vm263_vm0, %v1347_v38  ;;  %4960 = vmatmul.mubr.msk.f32.vlgmr.msra.gmra.mxu1 %vm263_vm0, %v1587_v39 }
 0xdec   :  { %4974 = vmatpush3.msra.mxu1 %v5982_v41  ;;  %4981 = vmatprep.mubr.msk.f32.mxu1 %vm5557_vm1, %v5556_v1 }
 0xded   :  { %4975 = vmatprep.subr.mxu1 %v5556_v1 }
 0xdee   :  { %v1470_v43 = vld [vmem:[#allocation5] sm:$0xff]  ;;  %4976 = vmatpush3.msra.mxu1 %v5988_v46 }
 0xdef   :  { %v1588_v45 = vld [vmem:[#allocation8] sm:$0xff]  ;;  %4949 = vmatmul.mubr.msk.f32.vlgmr.msra.gmra.mxu0 %vm263_vm0, %v1470_v43  ;;  %4977 = vmatprep.subr.mxu1 %v5556_v1 }
 0xdf0   :  { %1671 = vrot.lane.b32.xlu0 %v1588_v45, %s5558_s26  ;;  %4963 = vmatpush3.msra.mxu0 %v5997_v48 }
 0xdf1   :  { %4978 = vmatpush3.msra.mxu1 %v6000_v49  ;;  %4964 = vmatprep.subr.mxu0 %v5556_v1 }
 0xdf2   :  { %v1471_v51 = vld [vmem:[#allocation6] sm:$0xff]  ;;  %4979 = vmatprep.subr.mxu1 %v5556_v1  ;;  %4965 = vmatpush3.msra.mxu0 %v6008_v53 }
 0xdf3   :  { %4980 = vmatpush3.msra.mxu1 %v6012_v54  ;;  %4966 = vmatprep.subr.mxu0 %v5556_v1 }
 0xdf4   :  { %1554 = vrot.lane.b32.xlu0 %v1471_v51, %s5558_s26  ;;  %4970 = vmatprep.mubr.msk.f32.mxu0 %vm5557_vm1, %v5556_v1 }
 0xdf5   :  { %4967 = vmatpush3.msra.mxu0 %v6021_v56  ;;  %4995 = vmatprep.subr.mxu1 %v5556_v1 }
 0xdf6   :  { %4968 = vmatprep.subr.mxu0 %v5556_v1 }
 0xdf7   :  { %4969 = vmatpush3.msra.mxu0 %v6029_v58 }
 0xdf8   :  { %4984 = vmatprep.subr.mxu0 %v5556_v1 }
 0xe62   :  { %v1672_v17 = vpop.permute.xlu0 %1671 }
 0xe66   :  { %v1555_v20 = vpop.permute.xlu0 %1554 }
 0xeab   :  { %v1658_v60 = vpop.f32.mrf.mxu1 }
 0xeac   :  { %v1662_v62 = vadd.f32 %v1658_v60, %v5776_v44 }
 0xead   :  { %v4961_v0 = vpop.f32.mrf.mxu1 }
 0xeae   :  { %5295 = vtanh.f32 %v1662_v62  ;;  %v4600_v16 = vmul.f32 -1.442695, %v1662_v62 }
 0xeaf   :  { %v1541_v11 = vpop.f32.mrf.mxu0 }
 0xeb0   :  { %v1545_v2 = vadd.f32 %v1541_v11, %v5787_v57 }
 0xeb1   :  { %v4950_v4 = vpop.f32.mrf.mxu0 }
 0xeb2   :  { %5297 = vtanh.f32 %v1545_v2  ;;  %v4598_v5 = vmul.f32 -1.442695, %v1545_v2 }
 0xeb3   :  { %5299 = vpow2.f32 %v4600_v16 }
 0xeb4   :  { %5301 = vpow2.f32 %v4598_v5 }
 0xebb   :  { %v5296_v13 = vpop.eup %5295 }
 0xebc   :  { %1676 = vrot.lane.b32.xlu1 %v5296_v13, %s5559_s0 }
 0xebf   :  { %v5298_v15 = vpop.eup %5297 }
 0xec0   :  { %1559 = vrot.lane.b32.xlu1 %v5298_v15, %s5559_s0  ;;  %v5300_v6 = vpop.eup %5299 }
 0xec1   :  { %v1666_v7 = vadd.f32 1.0, %v5300_v6  ;;  %v5302_v44 = vpop.eup %5301 }
 0xec2   :  { %v1549_v9 = vadd.f32 1.0, %v5302_v44 }
 0xec3   :  { %5303 = vrcp.f32 %v1666_v7 }
 0xec4   :  { %5305 = vrcp.f32 %v1549_v9 }
 0xed0   :  { %v5304_v8 = vpop.eup %5303 }
 0xed1   :  { %v5306_v12 = vpop.eup %5305  ;;  %v1674_v52 = vmul.f32 %v5304_v8, %v1672_v17 }
 0xed2   :  { %v1557_v21 = vmul.f32 %v5306_v12, %v1555_v20 }
 0xf2e   :  { %v1677_v57 = vpop.permute.xlu1 %1676 }
 0xf2f   :  { %v1679_v10 = vmul.f32 %v5304_v8, %v1677_v57 }
 0xf31   :  { %1681 = vrot.lane.b32.xlu1 %v1679_v10, %s5558_s26 }
 0xf32   :  { %v1560_v50 = vpop.permute.xlu1 %1559 }
 0xf33   :  { %v1562_v14 = vmul.f32 %v5306_v12, %v1560_v50 }
 0xf35   :  { %1564 = vrot.lane.b32.xlu1 %v1562_v14, %s5558_s26 }
 0xfa3   :  { %v1682_v18 = vpop.permute.xlu1 %1681 }
 0xfa4   :  { %v1684_v19 = vadd.f32 %v1682_v18, %v1674_v52  ;;  %v2176_v18 = vld [vmem:[%s6655_s5 + $0x30] sm:$0xff] }
 0xfa6   :  { %5307 = vtanh.f32 %v1684_v19 }
 0xfa7   :  { %v1565_v22 = vpop.permute.xlu1 %1564 }
 0xfa8   :  { %v1567_v23 = vadd.f32 %v1565_v22, %v1557_v21  ;;  %v2175_v21 = vld [vmem:[%s6655_s5 + $0x28] sm:$0xff]  ;;  %v2174_v22 = vld [vmem:[%s6655_s5 + $0x20] sm:$0xff] }
 0xfaa   :  { %5309 = vtanh.f32 %v1567_v23 }
 0xfb3   :  { %v5308_v26 = vpop.eup %5307 }
 0xfb4   :  { %1687 = vrot.lane.b32.xlu0 %v5308_v26, %s5559_s0  ;;  %v2172_v26 = vld [vmem:[%s6655_s5 + $0x10] sm:$0xff] }
 0xfb7   :  { %v5310_v28 = vpop.eup %5309 }
 0xfb8   :  { %1570 = vrot.lane.b32.xlu1 %v5310_v28, %s5559_s0 }
0x1026   :  { %v1688_v55 = vpop.permute.xlu0 %1687 }
0x1027   :  { %v1690_v59 = vmul.f32 %v5304_v8, %v1688_v55  ;;  %v2177_v8 = vld [vmem:[%s6655_s5 + $0x38] sm:$0xff] }
0x1029   :  { %1692 = vrot.lane.b32.xlu0 %v1690_v59, %s5558_s26  ;;  %v2171_v59 = vld [vmem:[%s6655_s5 + $0x8] sm:$0xff] }
0x102a   :  { %v1571_v63 = vpop.permute.xlu1 %1570 }
0x102b   :  { %v1573_v47 = vmul.f32 %v5306_v12, %v1571_v63  ;;  %v2170_v63 = vld [vmem:[%s6655_s5] sm:$0xff] }
0x102d   :  { %1575 = vrot.lane.b32.xlu1 %v1573_v47, %s5558_s26  ;;  %1697 = vrot.lane.b32.xlu0 %v1684_v19, %s5560_s2  ;;  %v2186_v47 = vld [vmem:[#allocation3] sm:$0xff] }
0x1031   :  { %1580 = vrot.lane.b32.xlu0 %v1567_v23, %s5560_s2  ;;  %v2173_v23 = vld [vmem:[%s6655_s5 + $0x18] sm:$0xff] }
0x109b   :  { %v1693_v37 = vpop.permute.xlu0 %1692 }
0x109c   :  { %1695 = vst.msk [vmem:[#allocation7] sm:$0xff] %vm263_vm0, %v1693_v37  ;;  %1702 = vst.msk [vmem:[#allocation4 + $0x10] sm:$0xff] %vm263_vm0, %v1693_v37 }
0x109f   :  { %v1576_v42 = vpop.permute.xlu1 %1575  ;;  %v1698_v29 = vpop.permute.xlu0 %1697 }
0x10a0   :  { %1578 = vst.msk [vmem:[#allocation5] sm:$0xff] %vm263_vm0, %v1576_v42  ;;  %1585 = vst.msk [vmem:[#allocation3 + $0x28] sm:$0xff] %vm263_vm0, %v1576_v42  ;;  %v2187_v42 = vld [vmem:[#allocation3 + $0x8] sm:$0xff] }
0x10a1   :  { %1700 = vst.msk [vmem:[#allocation8] sm:$0xff] %vm263_vm0, %v1698_v29  ;;  %v2188_v29 = vld [vmem:[#allocation3 + $0x10] sm:$0xff] }
0x10a3   :  { %v1581_v30 = vpop.permute.xlu0 %1580  ;;  %v1821_v31 = vld [vmem:[#allocation7] sm:$0xff] }
0x10a4   :  { %1583 = vst.msk [vmem:[#allocation6] sm:$0xff] %vm263_vm0, %v1581_v30  ;;  %4982 = vmatmul.mubr.msk.f32.vlgmr.msra.gmra.mxu1 %vm263_vm0, %v1821_v31  ;;  %v2189_v30 = vld [vmem:[#allocation3 + $0x18] sm:$0xff]  ;;  %v2190_v31 = vld [vmem:[#allocation3 + $0x20] sm:$0xff] }
0x10a5   :  { %4996 = vmatpush3.msra.mxu1 %v5982_v41  ;;  %5003 = vmatprep.mubr.msk.f32.mxu1 %vm5557_vm1, %v5556_v1 }
0x10a6   :  { %4997 = vmatprep.subr.mxu1 %v5556_v1 }
0x10a7   :  { %v1704_v32 = vld [vmem:[#allocation5] sm:$0xff]  ;;  %4998 = vmatpush3.msra.mxu1 %v5988_v46 }
0x10a8   :  { %v1822_v34 = vld [vmem:[#allocation8] sm:$0xff]  ;;  %4971 = vmatmul.mubr.msk.f32.vlgmr.msra.gmra.mxu0 %vm263_vm0, %v1704_v32  ;;  %4999 = vmatprep.subr.mxu1 %v5556_v1  ;;  %v2191_v32 = vld [vmem:[#allocation3 + $0x28] sm:$0xff] }
0x10a9   :  { %1905 = vrot.lane.b32.xlu0 %v1822_v34, %s5558_s26  ;;  %4985 = vmatpush3.msra.mxu0 %v5997_v48 }
0x10aa   :  { %5000 = vmatpush3.msra.mxu1 %v6000_v49  ;;  %4986 = vmatprep.subr.mxu0 %v5556_v1 }
0x10ab   :  { %v1705_v35 = vld [vmem:[#allocation6] sm:$0xff]  ;;  %5001 = vmatprep.subr.mxu1 %v5556_v1  ;;  %4987 = vmatpush3.msra.mxu0 %v6008_v53 }
0x10ac   :  { %5002 = vmatpush3.msra.mxu1 %v6012_v54  ;;  %4988 = vmatprep.subr.mxu0 %v5556_v1 }
0x10ad   :  { %1788 = vrot.lane.b32.xlu0 %v1705_v35, %s5558_s26  ;;  %4992 = vmatprep.mubr.msk.f32.mxu0 %vm5557_vm1, %v5556_v1 }
0x10ae   :  { %4989 = vmatpush3.msra.mxu0 %v6021_v56  ;;  %2387 = vmatprep.subr.mxu1 %v2177_v8  ;;  %v2182_v8 = vld [vmem:[%s6655_s5 + $0x60] sm:$0xff] }
0x10af   :  { %4990 = vmatprep.subr.mxu0 %v5556_v1 }
0x10b0   :  { %4991 = vmatpush3.msra.mxu0 %v6029_v58 }
0x111b   :  { %v1906_v2 = vpop.permute.xlu0 %1905 }
0x111f   :  { %v1789_v16 = vpop.permute.xlu0 %1788 }
0x1164   :  { %v1892_v36 = vpop.f32.mrf.mxu1 }
0x1165   :  { %v1896_v38 = vadd.f32 %v1892_v36, %v5772_v40 }
0x1166   :  { %v4983_v39 = vpop.f32.mrf.mxu1 }
0x1167   :  { %5311 = vtanh.f32 %v1896_v38  ;;  %v4604_v49 = vmul.f32 -1.442695, %v1896_v38 }
0x1168   :  { %v1775_v41 = vpop.f32.mrf.mxu0 }
0x1169   :  { %v1779_v43 = vadd.f32 %v1775_v41, %v5791_v61 }
0x116a   :  { %v4972_v45 = vpop.f32.mrf.mxu0 }
0x116b   :  { %5313 = vtanh.f32 %v1779_v43  ;;  %v4602_v51 = vmul.f32 -1.442695, %v1779_v43 }
0x116c   :  { %5315 = vpow2.f32 %v4604_v49 }
0x116d   :  { %5317 = vpow2.f32 %v4602_v51 }
0x1174   :  { %v5312_v46 = vpop.eup %5311 }
0x1175   :  { %1910 = vrot.lane.b32.xlu1 %v5312_v46, %s5559_s0 }
0x1178   :  { %v5314_v48 = vpop.eup %5313 }
0x1179   :  { %1793 = vrot.lane.b32.xlu1 %v5314_v48, %s5559_s0  ;;  %v5316_v53 = vpop.eup %5315 }
0x117a   :  { %v1900_v54 = vadd.f32 1.0, %v5316_v53  ;;  %v5318_v40 = vpop.eup %5317 }
0x117b   :  { %v1783_v56 = vadd.f32 1.0, %v5318_v40 }
0x117c   :  { %5319 = vrcp.f32 %v1900_v54 }
0x117d   :  { %5321 = vrcp.f32 %v1783_v56 }
0x1189   :  { %v5320_v58 = vpop.eup %5319 }
0x118a   :  { %v5322_v62 = vpop.eup %5321  ;;  %v1908_v4 = vmul.f32 %v5320_v58, %v1906_v2 }
0x118b   :  { %v1791_v5 = vmul.f32 %v5322_v62, %v1789_v16 }
0x11e7   :  { %v1911_v61 = vpop.permute.xlu1 %1910 }
0x11e8   :  { %v1913_v60 = vmul.f32 %v5320_v58, %v1911_v61 }
0x11ea   :  { %1915 = vrot.lane.b32.xlu1 %v1913_v60, %s5558_s26 }
0x11eb   :  { %v1794_v0 = vpop.permute.xlu1 %1793 }
0x11ec   :  { %v1796_v11 = vmul.f32 %v5322_v62, %v1794_v0 }
0x11ee   :  { %1798 = vrot.lane.b32.xlu1 %v1796_v11, %s5558_s26 }
0x125c   :  { %v1916_v13 = vpop.permute.xlu1 %1915 }
0x125d   :  { %v1918_v15 = vadd.f32 %v1916_v13, %v1908_v4 }
0x125f   :  { %5323 = vtanh.f32 %v1918_v15 }
0x1260   :  { %v1799_v6 = vpop.permute.xlu1 %1798 }
0x1261   :  { %v1801_v7 = vadd.f32 %v1799_v6, %v1791_v5  ;;  %v2185_v5 = vld [vmem:[%s6655_s5 + $0x78] sm:$0xff] }
0x1262   :  { %2250 = vmatprep.subr.mxu0 %v2185_v5 }
0x1263   :  { %5325 = vtanh.f32 %v1801_v7 }
0x126c   :  { %v5324_v44 = vpop.eup %5323 }
0x126d   :  { %1921 = vrot.lane.b32.xlu0 %v5324_v44, %s5559_s0  ;;  %v2184_v44 = vld [vmem:[%s6655_s5 + $0x70] sm:$0xff] }
0x1270   :  { %v5326_v9 = vpop.eup %5325 }
0x1271   :  { %1804 = vrot.lane.b32.xlu1 %v5326_v9, %s5559_s0  ;;  %v2183_v9 = vld [vmem:[%s6655_s5 + $0x68] sm:$0xff] }
0x12df   :  { %v1922_v57 = vpop.permute.xlu0 %1921 }
0x12e0   :  { %v1924_v10 = vmul.f32 %v5320_v58, %v1922_v57  ;;  %v2181_v57 = vld [vmem:[%s6655_s5 + $0x58] sm:$0xff] }
0x12e2   :  { %1926 = vrot.lane.b32.xlu0 %v1924_v10, %s5558_s26  ;;  %v2180_v10 = vld [vmem:[%s6655_s5 + $0x50] sm:$0xff] }
0x12e3   :  { %v1805_v12 = vpop.permute.xlu1 %1804 }
0x12e4   :  { %v1807_v50 = vmul.f32 %v5322_v62, %v1805_v12  ;;  %v2179_v12 = vld [vmem:[%s6655_s5 + $0x48] sm:$0xff] }
0x12e6   :  { %1809 = vrot.lane.b32.xlu1 %v1807_v50, %s5558_s26  ;;  %1931 = vrot.lane.b32.xlu0 %v1918_v15, %s5560_s2  ;;  %v2178_v50 = vld [vmem:[%s6655_s5 + $0x40] sm:$0xff] }
0x12ea   :  { %1814 = vrot.lane.b32.xlu0 %v1801_v7, %s5560_s2 }
0x1354   :  { %v1927_v14 = vpop.permute.xlu0 %1926 }
0x1355   :  { %1929 = vst.msk [vmem:[#allocation7] sm:$0xff] %vm263_vm0, %v1927_v14  ;;  %1936 = vst.msk [vmem:[#allocation4 + $0x8] sm:$0xff] %vm263_vm0, %v1927_v14 }
0x1358   :  { %v1810_v17 = vpop.permute.xlu1 %1809  ;;  %v1932_v52 = vpop.permute.xlu0 %1931 }
0x1359   :  { %1812 = vst.msk [vmem:[#allocation5] sm:$0xff] %vm263_vm0, %v1810_v17  ;;  %1819 = vst.msk [vmem:[#allocation3 + $0x30] sm:$0xff] %vm263_vm0, %v1810_v17 }
0x135a   :  { %1934 = vst.msk [vmem:[#allocation8] sm:$0xff] %vm263_vm0, %v1932_v52 }
0x135c   :  { %v1815_v19 = vpop.permute.xlu0 %1814  ;;  %v2055_v20 = vld [vmem:[#allocation7] sm:$0xff] }
0x135d   :  { %1817 = vst.msk [vmem:[#allocation6] sm:$0xff] %vm263_vm0, %v1815_v19  ;;  %5004 = vmatmul.mubr.msk.f32.vlgmr.msra.gmra.mxu1 %vm263_vm0, %v2055_v20  ;;  %v6175_v19 = vld [vmem:[#allocation14 + $0x18] sm:$0xff]  ;;  %v6179_v20 = vld [vmem:[#allocation14 + $0x10] sm:$0xff] }
0x135e   :  { %2388 = vmatpush1.msra.mxu1 %v2176_v18  ;;  %2427 = vmatprep.mubr.f32.mxu1 %v5556_v1 }
0x135f   :  { %2389 = vmatprep.subr.mxu1 %v2175_v21  ;;  %v6182_v21 = vld [vmem:[#allocation14 + $0x8] sm:$0xff] }
0x1360   :  { %2390 = vmatpush1.msra.mxu1 %v2174_v22  ;;  %v1938_v28 = vld [vmem:[#allocation5] sm:$0xff]  ;;  %v2192_v34 = vld [vmem:[#allocation3 + $0x30] sm:$0xff] }
0x1361   :  { %v2056_v55 = vld [vmem:[#allocation8] sm:$0xff]  ;;  %2391 = vmatprep.subr.mxu1 %v2173_v23  ;;  %4993 = vmatmul.mubr.msk.f32.vlgmr.msra.gmra.mxu0 %vm263_vm0, %v1938_v28  ;;  %v6187_v22 = vld [vmem:[#allocation14] sm:$0xff] }
0x1362   :  { %2392 = vmatpush1.msra.mxu1 %v2172_v26  ;;  %2139 = vrot.lane.b32.xlu0 %v2056_v55, %s5558_s26  ;;  %v6202_v55 = vld [vmem:[#allocation12 + $0x18] sm:$0xff] }
0x1363   :  { %2393 = vmatprep.subr.mxu1 %v2171_v59  ;;  %2290 = vmatprep.mubr.f32.mxu0 %v5556_v1 }
0x1364   :  { %2394 = vmatpush1.msra.mxu1 %v2170_v63  ;;  %v1939_v37 = vld [vmem:[#allocation6] sm:$0xff]  ;;  %2251 = vmatpush1.msra.mxu0 %v2184_v44  ;;  %v6205_v63 = vld [vmem:[#allocation12 + $0x10] sm:$0xff] }
0x1365   :  { %4617 = vmatmul.mubr.msk.f32.vlgmr.msra.gmra.mxu1 %vm263_vm0, %v2186_v47  ;;  %5017 = vmatprep.subr.mxu1 %v5556_v1  ;;  %v2195_v47 = vld [vmem:[#allocation4 + $0x8] sm:$0xff] }
0x1366   :  { %2022 = vrot.lane.b32.xlu0 %v1939_v37, %s5558_s26  ;;  %2433 = vmatprep.mubr.f32.mxu1 %v5556_v1 }
0x1367   :  { %2252 = vmatprep.subr.mxu0 %v2183_v9  ;;  %5018 = vmatpush3.msra.mxu1 %v6175_v19 }
0x1368   :  { %2253 = vmatpush1.msra.mxu0 %v2182_v8  ;;  %5019 = vmatprep.subr.mxu1 %v5556_v1 }
0x1369   :  { %4618 = vmatmul.mubr.msk.f32.gmra.mxu1 %vm263_vm0, %v2187_v42  ;;  %2254 = vmatprep.subr.mxu0 %v2181_v57  ;;  %v6211_v42 = vld [vmem:[#allocation12 + $0x8] sm:$0xff] }
0x136a   :  { %2439 = vmatprep.mubr.f32.mxu1 %v5556_v1  ;;  %2255 = vmatpush1.msra.mxu0 %v2180_v10 }
0x136b   :  { %2256 = vmatprep.subr.mxu0 %v2179_v12  ;;  %5020 = vmatpush3.msra.mxu1 %v6179_v20 }
0x136c   :  { %2257 = vmatpush1.msra.mxu0 %v2178_v50  ;;  %5021 = vmatprep.subr.mxu1 %v5556_v1 }
0x136d   :  { %4619 = vmatmul.mubr.msk.f32.gmra.mxu1 %vm263_vm0, %v2188_v29  ;;  %5006 = vmatprep.subr.mxu0 %v5556_v1 }
0x136e   :  { %2445 = vmatprep.mubr.f32.mxu1 %v5556_v1  ;;  %5022 = vmatpush3.msra.mxu1 %v6182_v21 }
0x136f   :  { %5023 = vmatprep.subr.mxu1 %v5556_v1 }
0x1370   :  { %5024 = vmatpush3.msra.mxu1 %v6187_v22 }
0x1371   :  { %4620 = vmatmul.mubr.msk.f32.gmra.mxu1 %vm263_vm0, %v2189_v30  ;;  %5039 = vmatprep.subr.mxu1 %v5556_v1 }
0x1372   :  { %2451 = vmatprep.mubr.f32.mxu1 %v5556_v1 }
0x1375   :  { %4621 = vmatmul.mubr.msk.f32.gmra.mxu1 %vm263_vm0, %v2190_v31  ;;  %v6218_v31 = vld [vmem:[#allocation12] sm:$0xff] }
0x1376   :  { %2457 = vmatprep.mubr.f32.mxu1 %v5556_v1 }
0x1379   :  { %4622 = vmatmul.mubr.msk.f32.gmra.mxu1 %vm263_vm0, %v2191_v32  ;;  %v2196_v32 = vld [vmem:[#allocation4 + $0x10] sm:$0xff] }
0x137a   :  { %2463 = vmatprep.mubr.f32.mxu1 %v5556_v1 }
0x137d   :  { %4623 = vmatmul.mubr.msk.f32.gmra.mxu1 %vm263_vm0, %v2192_v34  ;;  %v2197_v34 = vld [vmem:[#allocation4 + $0x18] sm:$0xff] }
0x137e   :  { %2469 = vmatprep.mubr.f32.mxu1 %v5556_v1 }
0x13d4   :  { %v2140_v62 = vpop.permute.xlu0 %2139 }
0x13d8   :  { %v2023_v4 = vpop.permute.xlu0 %2022 }
0x141d   :  { %v2126_v35 = vpop.f32.mrf.mxu1 }
0x141e   :  { %v2130_v36 = vadd.f32 %v2126_v35, %v5768_v33  ;;  %v2198_v35 = vld [vmem:[#allocation4 + $0x20] sm:$0xff] }
0x141f   :  { %v5005_v38 = vpop.f32.mrf.mxu1 }
0x1420   :  { %5327 = vtanh.f32 %v2130_v36  ;;  %v4608_v48 = vmul.f32 -1.442695, %v2130_v36  ;;  %v2199_v36 = vld [vmem:[#allocation4 + $0x28] sm:$0xff]  ;;  %v2200_v38 = vld [vmem:[#allocation4 + $0x30] sm:$0xff] }
0x1421   :  { %v2009_v39 = vpop.f32.mrf.mxu0 }
0x1422   :  { %v2013_v41 = vadd.f32 %v2009_v39, %v5795_v3  ;;  %v2201_v39 = vld [vmem:[#allocation4 + $0x38] sm:$0xff] }
0x1423   :  { %v4994_v43 = vpop.f32.mrf.mxu0 }
0x1424   :  { %5329 = vtanh.f32 %v2013_v41  ;;  %v4606_v49 = vmul.f32 -1.442695, %v2013_v41 }
0x1425   :  { %5331 = vpow2.f32 %v4608_v48  ;;  %v2429_v43 = vpop.f32.mrf.mxu1 }
0x1426   :  { %5333 = vpow2.f32 %v4606_v49 }
0x142d   :  { %v5328_v45 = vpop.eup %5327 }
0x142e   :  { %2144 = vrot.lane.b32.xlu1 %v5328_v45, %s5559_s0  ;;  %v2431_v45 = vpop.f32.mrf.mxu1 }
0x1431   :  { %v5330_v46 = vpop.eup %5329 }
0x1432   :  { %2027 = vrot.lane.b32.xlu1 %v5330_v46, %s5559_s0  ;;  %v5332_v51 = vpop.eup %5331  ;;  %v2435_v46 = vpop.f32.mrf.mxu1 }
0x1433   :  { %v2134_v53 = vadd.f32 1.0, %v5332_v51  ;;  %v5334_v33 = vpop.eup %5333 }
0x1434   :  { %v2017_v54 = vadd.f32 1.0, %v5334_v33  ;;  %v2437_v48 = vpop.f32.mrf.mxu1 }
0x1435   :  { %5335 = vrcp.f32 %v2134_v53 }
0x1436   :  { %5337 = vrcp.f32 %v2017_v54  ;;  %v2441_v49 = vpop.f32.mrf.mxu1 }
0x1438   :  { %v2443_v51 = vpop.f32.mrf.mxu1 }
0x143a   :  { %v2447_v53 = vpop.f32.mrf.mxu1 }
0x143c   :  { %v2449_v33 = vpop.f32.mrf.mxu1 }
0x143e   :  { %v2453_v54 = vpop.f32.mrf.mxu1 }
0x1442   :  { %v5336_v40 = vpop.eup %5335 }
0x1443   :  { %v5338_v58 = vpop.eup %5337  ;;  %v2142_v0 = vmul.f32 %v5336_v40, %v2140_v62 }
0x1444   :  { %v2025_v13 = vmul.f32 %v5338_v58, %v2023_v4 }
0x14a0   :  { %v2145_v3 = vpop.permute.xlu1 %2144 }
0x14a1   :  { %v2147_v56 = vmul.f32 %v5336_v40, %v2145_v3 }
0x14a3   :  { %2149 = vrot.lane.b32.xlu1 %v2147_v56, %s5558_s26 }
0x14a4   :  { %v2028_v61 = vpop.permute.xlu1 %2027 }
0x14a5   :  { %v2030_v60 = vmul.f32 %v5338_v58, %v2028_v61 }
0x14a7   :  { %2032 = vrot.lane.b32.xlu1 %v2030_v60, %s5558_s26  ;;  %v2476_v60 = vld [vmem:[%s6656_s6] sm:$0x3] }
0x14a8   :  { %v2485_v62 = vrot.slane %v2476_v60, %v98_v27  ;;  %v2481_v5 = vrot.slane %v2476_v60, %v94_v25 }
0x1515   :  { %v2150_v11 = vpop.permute.xlu1 %2149 }
0x1516   :  { %v6142_v2 = vadd.f32 %v2150_v11, %v2142_v0 }
0x1518   :  { %5339 = vtanh.f32 %v6142_v2 }
0x1519   :  { %v2033_v15 = vpop.permute.xlu1 %2032 }
0x151a   :  { %v2035_v16 = vadd.f32 %v2033_v15, %v2025_v13 }
0x151c   :  { %5341 = vtanh.f32 %v2035_v16 }
0x1525   :  { %v5340_v6 = vpop.eup %5339 }
0x1526   :  { %2155 = vrot.lane.b32.xlu0 %v5340_v6, %s5559_s0 }
0x1529   :  { %v5342_v7 = vpop.eup %5341 }
0x152a   :  { %2038 = vrot.lane.b32.xlu1 %v5342_v7, %s5559_s0 }
0x1598   :  { %v2156_v14 = vpop.permute.xlu0 %2155 }
0x1599   :  { %v2158_v17 = vmul.f32 %v5336_v40, %v2156_v14  ;;  %v2455_v40 = vpop.f32.mrf.mxu1 }
0x159b   :  { %2160 = vrot.lane.b32.xlu0 %v2158_v17, %s5558_s26  ;;  %v2459_v3 = vpop.f32.mrf.mxu1 }
0x159c   :  { %v2039_v52 = vpop.permute.xlu1 %2038 }
0x159d   :  { %v2041_v18 = vmul.f32 %v5338_v58, %v2039_v52  ;;  %v2461_v56 = vpop.f32.mrf.mxu1 }
0x159f   :  { %2043 = vrot.lane.b32.xlu1 %v2041_v18, %s5558_s26  ;;  %2048 = vrot.lane.b32.xlu0 %v2035_v16, %s5560_s2  ;;  %v2465_v58 = vpop.f32.mrf.mxu1 }
0x15a1   :  { %v2467_v0 = vpop.f32.mrf.mxu1 }
0x160d   :  { %v2161_v23 = vpop.permute.xlu0 %2160 }
0x160e   :  { %2163 = vst.msk [vmem:[#allocation7] sm:$0xff] %vm263_vm0, %v2161_v23  ;;  %2169 = vst.msk [vmem:[#allocation4] sm:$0xff] %vm263_vm0, %v2161_v23 }
0x160f   :  { %2522 = vst.msk [vmem:[#allocation7] sm:$0xff] %vm263_vm0, %v5556_v1 }
0x1611   :  { %v2044_v26 = vpop.permute.xlu1 %2043  ;;  %v2049_v28 = vpop.permute.xlu0 %2048 }
0x1612   :  { %2046 = vst.msk [vmem:[#allocation5] sm:$0xff] %vm263_vm0, %v2044_v26  ;;  %2053 = vst.msk [vmem:[#allocation3 + $0x38] sm:$0xff] %vm263_vm0, %v2044_v26 }
0x1613   :  { %2051 = vst.msk [vmem:[#allocation6] sm:$0xff] %vm263_vm0, %v2049_v28  ;;  %2520 = vst.msk [vmem:[#allocation5] sm:$0xff] %vm263_vm0, %v5556_v1 }
0x1614   :  { %2521 = vst.msk [vmem:[#allocation6] sm:$0xff] %vm263_vm0, %v5556_v1 }
0x1615   :  { %v2194_v59 = vld [vmem:[#allocation4] sm:$0xff] }
0x1616   :  { %4609 = vmatmul.mubr.msk.f32.vlgmr.msra.gmra.mxu0 %vm263_vm0, %v2194_v59  ;;  %v2649_v30 = vld [vmem:[#allocation7] sm:$0xff] }
0x1617   :  { %5007 = vmatpush3.msra.mxu0 %v6202_v55  ;;  %2296 = vmatprep.mubr.f32.mxu0 %v5556_v1 }
0x1618   :  { %5008 = vmatprep.subr.mxu0 %v5556_v1 }
0x1619   :  { %v2193_v37 = vld [vmem:[#allocation3 + $0x38] sm:$0xff]  ;;  %5009 = vmatpush3.msra.mxu0 %v6205_v63 }
0x161a   :  { %4610 = vmatmul.mubr.msk.f32.gmra.mxu0 %vm263_vm0, %v2195_v47  ;;  %4624 = vmatmul.mubr.msk.f32.gmra.mxu1 %vm263_vm0, %v2193_v37  ;;  %v2533_v41 = vld [vmem:[#allocation5] sm:$0xff] }
0x161b   :  { %v2534_v29 = vld [vmem:[#allocation6] sm:$0xff]  ;;  %2302 = vmatprep.mubr.f32.mxu0 %v5556_v1  ;;  %5010 = vmatprep.subr.mxu0 %v5556_v1 }
0x161c   :  { %5011 = vmatpush3.msra.mxu0 %v6211_v42  ;;  %5025 = vmatprep.mubr.msk.f32.mxu1 %vm5557_vm1, %v5556_v1 }
0x161d   :  { %5012 = vmatprep.subr.mxu0 %v5556_v1  ;;  %2617 = vrot.lane.b32.xlu0 %v2534_v29, %s5558_s26 }
0x161e   :  { %4611 = vmatmul.mubr.msk.f32.gmra.mxu0 %vm263_vm0, %v2196_v32  ;;  %5026 = vmatmul.mubr.msk.f32.vlgmr.msra.gmra.mxu1 %vm263_vm0, %v2649_v30 }
0x161f   :  { %2308 = vmatprep.mubr.f32.mxu0 %v5556_v1  ;;  %5013 = vmatpush3.msra.mxu0 %v6218_v31 }
0x1620   :  { %5028 = vmatprep.subr.mxu0 %v5556_v1  ;;  %5040 = vmatpush3.msra.mxu1 %v6175_v19 }
0x1621   :  { %5041 = vmatprep.subr.mxu1 %v5556_v1  ;;  %5047 = vmatprep.mubr.msk.f32.mxu1 %vm5557_vm1, %v5556_v1 }
0x1622   :  { %4612 = vmatmul.mubr.msk.f32.gmra.mxu0 %vm263_vm0, %v2197_v34  ;;  %5042 = vmatpush3.msra.mxu1 %v6179_v20 }
0x1623   :  { %2314 = vmatprep.mubr.f32.mxu0 %v5556_v1  ;;  %5043 = vmatprep.subr.mxu1 %v5556_v1 }
0x1624   :  { %5044 = vmatpush3.msra.mxu1 %v6182_v21 }
0x1625   :  { %5045 = vmatprep.subr.mxu1 %v5556_v1 }
0x1626   :  { %4613 = vmatmul.mubr.msk.f32.gmra.mxu0 %vm263_vm0, %v2198_v35  ;;  %5046 = vmatpush3.msra.mxu1 %v6187_v22 }
0x1627   :  { %2320 = vmatprep.mubr.f32.mxu0 %v5556_v1  ;;  %5061 = vmatprep.subr.mxu1 %v5556_v1 }
0x162a   :  { %4614 = vmatmul.mubr.msk.f32.gmra.mxu0 %vm263_vm0, %v2199_v36 }
0x162b   :  { %2326 = vmatprep.mubr.f32.mxu0 %v5556_v1 }
0x162e   :  { %4615 = vmatmul.mubr.msk.f32.gmra.mxu0 %vm263_vm0, %v2200_v38 }
0x162f   :  { %2332 = vmatprep.mubr.f32.mxu0 %v5556_v1 }
0x1632   :  { %4616 = vmatmul.mubr.msk.f32.gmra.mxu0 %vm263_vm0, %v2201_v39 }
0x1633   :  { %5014 = vmatprep.mubr.msk.f32.mxu0 %vm5557_vm1, %v5556_v1 }
0x1636   :  { %5015 = vmatmul.mubr.msk.f32.vlgmr.msra.gmra.mxu0 %vm263_vm0, %v2533_v41 }
0x1637   :  { %5029 = vmatpush3.msra.mxu0 %v6202_v55  ;;  %5036 = vmatprep.mubr.msk.f32.mxu0 %vm5557_vm1, %v5556_v1 }
0x1638   :  { %5030 = vmatprep.subr.mxu0 %v5556_v1 }
0x1639   :  { %5031 = vmatpush3.msra.mxu0 %v6205_v63 }
0x163a   :  { %5032 = vmatprep.subr.mxu0 %v5556_v1 }
0x163b   :  { %5033 = vmatpush3.msra.mxu0 %v6211_v42 }
0x163c   :  { %5034 = vmatprep.subr.mxu0 %v5556_v1 }
0x163d   :  { %5035 = vmatpush3.msra.mxu0 %v6218_v31 }
0x163e   :  { %5050 = vmatprep.subr.mxu0 %v5556_v1 }
0x16d6   :  { %v2292_v61 = vpop.f32.mrf.mxu0 }
0x16d8   :  { %v2294_v11 = vpop.f32.mrf.mxu0 }
0x16d9   :  { %v2432_v4 = vadd.f32 %v2431_v45, %v2294_v11 }
0x16da   :  { %v2298_v13 = vpop.f32.mrf.mxu0  ;;  %v2471_v15 = vpop.f32.mrf.mxu1 }
0x16db   :  { %v2436_v16 = vadd.f32 %v2435_v46, %v2298_v13  ;;  %v6268_v6 = vadd.f32 %v2485_v62, %v2432_v4 }
0x16dc   :  { %v2300_v7 = vpop.f32.mrf.mxu0  ;;  %v2473_v44 = vpop.f32.mrf.mxu1 }
0x16dd   :  { %v2438_v9 = vadd.f32 %v2437_v48, %v2300_v7  ;;  %v6270_v8 = vadd.f32 %v2481_v5, %v2436_v16 }
0x16de   :  { %v2304_v57 = vpop.f32.mrf.mxu0  ;;  %v2720_v10 = vpop.f32.mrf.mxu1 }
0x16df   :  { %v2442_v12 = vadd.f32 %v2441_v49, %v2304_v57  ;;  %v6272_v27 = vadd.f32 %v2485_v62, %v2438_v9 }
0x16e0   :  { %v2306_v50 = vpop.f32.mrf.mxu0  ;;  %v5027_v14 = vpop.f32.mrf.mxu1 }
0x16e1   :  { %v2444_v17 = vadd.f32 %v2443_v51, %v2306_v50  ;;  %v6274_v52 = vadd.f32 %v2481_v5, %v2442_v12  ;;  %v2430_v51 = vadd.f32 %v2429_v43, %v2292_v61 }
0x16e2   :  { %v2310_v18 = vpop.f32.mrf.mxu0 }
0x16e3   :  { %v2448_v24 = vadd.f32 %v2447_v53, %v2310_v18  ;;  %v6276_v25 = vadd.f32 %v2485_v62, %v2444_v17  ;;  %v2488_v4 = vadd.f32 %v2481_v5, %v2430_v51 }
0x16e4   :  { %v2312_v23 = vpop.f32.mrf.mxu0 }
0x16e5   :  { %v2450_v26 = vadd.f32 %v2449_v33, %v2312_v23  ;;  %v6278_v28 = vadd.f32 %v2481_v5, %v2448_v24 }
0x16e6   :  { %v2316_v59 = vpop.f32.mrf.mxu0 }
0x16e7   :  { %v2454_v47 = vadd.f32 %v2453_v54, %v2316_v59  ;;  %v6280_v37 = vadd.f32 %v2485_v62, %v2450_v26 }
0x16e8   :  { %v2318_v29 = vpop.f32.mrf.mxu0 }
0x16e9   :  { %v2456_v30 = vadd.f32 %v2455_v40, %v2318_v29  ;;  %v6282_v32 = vadd.f32 %v2481_v5, %v2454_v47 }
0x16ea   :  { %v2322_v34 = vpop.f32.mrf.mxu0 }
0x16eb   :  { %v2460_v35 = vadd.f32 %v2459_v3, %v2322_v34  ;;  %v6284_v36 = vadd.f32 %v2485_v62, %v2456_v30 }
0x16ec   :  { %v2324_v38 = vpop.f32.mrf.mxu0 }
0x16ed   :  { %v2462_v39 = vadd.f32 %v2461_v56, %v2324_v38  ;;  %v6286_v41 = vadd.f32 %v2481_v5, %v2460_v35 }
0x16ee   :  { %v2328_v45 = vpop.f32.mrf.mxu0 }
0x16ef   :  { %v2466_v46 = vadd.f32 %v2465_v58, %v2328_v45  ;;  %v6288_v48 = vadd.f32 %v2485_v62, %v2462_v39 }
0x16f0   :  { %v2330_v49 = vpop.f32.mrf.mxu0 }
0x16f1   :  { %v2468_v53 = vadd.f32 %v2467_v0, %v2330_v49  ;;  %v6290_v33 = vadd.f32 %v2481_v5, %v2466_v46 }
0x16f2   :  { %v2334_v54 = vpop.f32.mrf.mxu0 }
0x16f3   :  { %v2472_v40 = vadd.f32 %v2471_v15, %v2334_v54  ;;  %v6292_v60 = vadd.f32 %v2485_v62, %v2468_v53 }
0x16f4   :  { %v2336_v3 = vpop.f32.mrf.mxu0 }
0x16f5   :  { %v2474_v11 = vadd.f32 %v2473_v44, %v2336_v3  ;;  %v6294_v13 = vadd.f32 %v2481_v5, %v2472_v40  ;;  %v2618_v5 = vpop.permute.xlu0 %2617 }
0x16f6   :  { %v2604_v56 = vpop.f32.mrf.mxu0 }
0x16f7   :  { %v2608_v16 = vadd.f32 %v2604_v56, %v2488_v4  ;;  %v2503_v7 = vadd.f32 %v2485_v62, %v2474_v11 }
0x16f8   :  { %v5016_v58 = vpop.f32.mrf.mxu0 }
0x16f9   :  { %5343 = vtanh.f32 %v2608_v16  ;;  %v2724_v9 = vadd.f32 %v2720_v10, %v2503_v7  ;;  %v4626_v43 = vmul.f32 -1.442695, %v2608_v16 }
0x16fb   :  { %5345 = vpow2.f32 %v4626_v43  ;;  %v4628_v59 = vmul.f32 -1.442695, %v2724_v9 }
0x1706   :  { %v5344_v57 = vpop.eup %5343 }
0x1707   :  { %2622 = vrot.lane.b32.xlu1 %v5344_v57, %s5559_s0 }
0x1708   :  { %v5346_v61 = vpop.eup %5345 }
0x1709   :  { %v2612_v0 = vadd.f32 1.0, %v5346_v61 }
0x170b   :  { %5347 = vrcp.f32 %v2612_v0 }
0x1718   :  { %v5348_v15 = vpop.eup %5347 }
0x1719   :  { %v2620_v50 = vmul.f32 %v5348_v15, %v2618_v5 }
0x1779   :  { %v2623_v12 = vpop.permute.xlu1 %2622 }
0x177a   :  { %v2625_v44 = vmul.f32 %v5348_v15, %v2623_v12 }
0x177c   :  { %2627 = vrot.lane.b32.xlu1 %v2625_v44, %s5558_s26 }
0x17ee   :  { %v2628_v14 = vpop.permute.xlu1 %2627 }
0x17ef   :  { %v2630_v62 = vadd.f32 %v2628_v14, %v2620_v50 }
0x17f1   :  { %5349 = vtanh.f32 %v2630_v62 }
0x17f2   :  { %5351 = vtanh.f32 %v2724_v9 }
0x17f3   :  { %5353 = vpow2.f32 %v4628_v59 }
0x17fe   :  { %v5350_v17 = vpop.eup %5349 }
0x17ff   :  { %2633 = vrot.lane.b32.xlu0 %v5350_v17, %s5559_s0  ;;  %v5352_v23 = vpop.eup %5351 }
0x1803   :  { %2165 = vrot.lane.b32.xlu0 %v6142_v2, %s5560_s2  ;;  %v5354_v2 = vpop.eup %5353 }
0x1804   :  { %v2728_v47 = vadd.f32 1.0, %v5354_v2 }
0x1806   :  { %5355 = vrcp.f32 %v2728_v47 }
0x1813   :  { %v5356_v30 = vpop.eup %5355 }
0x1871   :  { %v2634_v10 = vpop.permute.xlu0 %2633 }
0x1872   :  { %v2636_v18 = vmul.f32 %v5348_v15, %v2634_v10 }
0x1874   :  { %2638 = vrot.lane.b32.xlu1 %v2636_v18, %s5558_s26 }
0x1875   :  { %v2166_v24 = vpop.permute.xlu0 %2165 }
0x1876   :  { %2168 = vst.msk [vmem:[#allocation8] sm:$0xff] %vm263_vm0, %v2166_v24 }
0x1877   :  { %2523 = vst.msk [vmem:[#allocation8] sm:$0xff] %vm263_vm0, %v5556_v1 }
0x1878   :  { %2738 = vrot.lane.b32.xlu1 %v5352_v23, %s5559_s0 }
0x187e   :  { %v2650_v26 = vld [vmem:[#allocation8] sm:$0xff] }
0x187f   :  { %2733 = vrot.lane.b32.xlu0 %v2650_v26, %s5558_s26 }
0x18e6   :  { %v2639_v29 = vpop.permute.xlu1 %2638 }
0x18e7   :  { %2641 = vst.msk [vmem:[#allocation5] sm:$0xff] %vm263_vm0, %v2639_v29  ;;  %2647 = vst.msk [vmem:[#allocation3] sm:$0xff] %vm263_vm0, %v2639_v29 }
0x18ea   :  { %v2739_v34 = vpop.permute.xlu1 %2738 }
0x18eb   :  { %v2741_v35 = vmul.f32 %v5356_v30, %v2739_v34 }
0x18ed   :  { %2743 = vrot.lane.b32.xlu1 %v2741_v35, %s5558_s26 }
0x18ee   :  { %v2765_v38 = vld [vmem:[#allocation5] sm:$0xff] }
0x18ef   :  { %5037 = vmatmul.mubr.msk.f32.vlgmr.msra.gmra.mxu0 %vm263_vm0, %v2765_v38 }
0x18f0   :  { %5051 = vmatpush3.msra.mxu0 %v6202_v55  ;;  %5058 = vmatprep.mubr.msk.f32.mxu0 %vm5557_vm1, %v5556_v1 }
0x18f1   :  { %5052 = vmatprep.subr.mxu0 %v5556_v1  ;;  %v2734_v39 = vpop.permute.xlu0 %2733 }
0x18f2   :  { %5053 = vmatpush3.msra.mxu0 %v6205_v63  ;;  %v2736_v45 = vmul.f32 %v5356_v30, %v2734_v39 }
0x18f3   :  { %5054 = vmatprep.subr.mxu0 %v5556_v1 }
0x18f4   :  { %5055 = vmatpush3.msra.mxu0 %v6211_v42 }
0x18f5   :  { %5056 = vmatprep.subr.mxu0 %v5556_v1 }
0x18f6   :  { %5057 = vmatpush3.msra.mxu0 %v6218_v31 }
0x18f7   :  { %5072 = vmatprep.subr.mxu0 %v5556_v1 }
0x195f   :  { %v2744_v46 = vpop.permute.xlu1 %2743 }
0x1960   :  { %v2746_v49 = vadd.f32 %v2744_v46, %v2736_v45 }
0x1962   :  { %5357 = vtanh.f32 %v2746_v49 }
0x196f   :  { %v5358_v51 = vpop.eup %5357 }
0x1970   :  { %2749 = vrot.lane.b32.xlu0 %v5358_v51, %s5559_s0 }
0x1974   :  { %2643 = vrot.lane.b32.xlu0 %v2630_v62, %s5560_s2 }
0x19af   :  { %v2836_v53 = vpop.f32.mrf.mxu0 }
0x19b0   :  { %v2840_v40 = vadd.f32 %v2836_v53, %v6270_v8 }
0x19b1   :  { %v5038_v54 = vpop.f32.mrf.mxu0 }
0x19b2   :  { %5359 = vtanh.f32 %v2840_v40  ;;  %v4630_v7 = vmul.f32 -1.442695, %v2840_v40 }
0x19b4   :  { %5361 = vpow2.f32 %v4630_v7 }
0x19bf   :  { %v5360_v56 = vpop.eup %5359 }
0x19c1   :  { %v5362_v58 = vpop.eup %5361 }
0x19c2   :  { %v2844_v9 = vadd.f32 1.0, %v5362_v58 }
0x19c4   :  { %5363 = vrcp.f32 %v2844_v9 }
0x19d1   :  { %v5364_v57 = vpop.eup %5363 }
0x19e2   :  { %v2750_v3 = vpop.permute.xlu0 %2749 }
0x19e3   :  { %v2752_v11 = vmul.f32 %v5356_v30, %v2750_v3 }
0x19e5   :  { %2754 = vrot.lane.b32.xlu1 %v2752_v11, %s5558_s26 }
0x19e6   :  { %v2644_v4 = vpop.permute.xlu0 %2643 }
0x19e7   :  { %2646 = vst.msk [vmem:[#allocation6] sm:$0xff] %vm263_vm0, %v2644_v4 }
0x19e9   :  { %2854 = vrot.lane.b32.xlu1 %v5360_v56, %s5559_s0 }
0x19ee   :  { %v2766_v16 = vld [vmem:[#allocation6] sm:$0xff] }
0x19ef   :  { %2849 = vrot.lane.b32.xlu0 %v2766_v16, %s5558_s26 }
0x1a57   :  { %v2755_v8 = vpop.permute.xlu1 %2754 }
0x1a58   :  { %2757 = vst.msk [vmem:[#allocation7] sm:$0xff] %vm263_vm0, %v2755_v8  ;;  %2763 = vst.msk [vmem:[#allocation4 + $0x38] sm:$0xff] %vm263_vm0, %v2755_v8 }
0x1a5b   :  { %v2855_v43 = vpop.permute.xlu1 %2854 }
0x1a5c   :  { %v2857_v61 = vmul.f32 %v5364_v57, %v2855_v43 }
0x1a5e   :  { %2859 = vrot.lane.b32.xlu1 %v2857_v61, %s5558_s26 }
0x1a5f   :  { %v2881_v0 = vld [vmem:[#allocation7] sm:$0xff] }
0x1a60   :  { %5048 = vmatmul.mubr.msk.f32.vlgmr.msra.gmra.mxu1 %vm263_vm0, %v2881_v0 }
0x1a61   :  { %5062 = vmatpush3.msra.mxu1 %v6175_v19  ;;  %5069 = vmatprep.mubr.msk.f32.mxu1 %vm5557_vm1, %v5556_v1  ;;  %v2850_v15 = vpop.permute.xlu0 %2849 }
0x1a62   :  { %5063 = vmatprep.subr.mxu1 %v5556_v1  ;;  %v2852_v12 = vmul.f32 %v5364_v57, %v2850_v15 }
0x1a63   :  { %5064 = vmatpush3.msra.mxu1 %v6179_v20 }
0x1a64   :  { %5065 = vmatprep.subr.mxu1 %v5556_v1 }
0x1a65   :  { %5066 = vmatpush3.msra.mxu1 %v6182_v21 }
0x1a66   :  { %5067 = vmatprep.subr.mxu1 %v5556_v1 }
0x1a67   :  { %5068 = vmatpush3.msra.mxu1 %v6187_v22 }
0x1a68   :  { %5083 = vmatprep.subr.mxu1 %v5556_v1 }
0x1ad0   :  { %v2860_v44 = vpop.permute.xlu1 %2859 }
0x1ad1   :  { %v2862_v5 = vadd.f32 %v2860_v44, %v2852_v12 }
0x1ad3   :  { %5365 = vtanh.f32 %v2862_v5 }
0x1ae0   :  { %v5366_v50 = vpop.eup %5365 }
0x1ae1   :  { %2865 = vrot.lane.b32.xlu0 %v5366_v50, %s5559_s0 }
0x1ae5   :  { %2759 = vrot.lane.b32.xlu0 %v2746_v49, %s5560_s2 }
0x1b20   :  { %v2952_v14 = vpop.f32.mrf.mxu1 }
0x1b21   :  { %v2956_v17 = vadd.f32 %v2952_v14, %v6292_v60 }
0x1b22   :  { %v5049_v62 = vpop.f32.mrf.mxu1 }
0x1b23   :  { %5367 = vtanh.f32 %v2956_v17  ;;  %v4632_v59 = vmul.f32 -1.442695, %v2956_v17 }
0x1b25   :  { %5369 = vpow2.f32 %v4632_v59 }
0x1b30   :  { %v5368_v23 = vpop.eup %5367 }
0x1b32   :  { %v5370_v2 = vpop.eup %5369 }
0x1b33   :  { %v2960_v47 = vadd.f32 1.0, %v5370_v2 }
0x1b35   :  { %5371 = vrcp.f32 %v2960_v47 }
0x1b42   :  { %v5372_v29 = vpop.eup %5371 }
0x1b53   :  { %v2866_v10 = vpop.permute.xlu0 %2865 }
0x1b54   :  { %v2868_v18 = vmul.f32 %v5364_v57, %v2866_v10 }
0x1b56   :  { %2870 = vrot.lane.b32.xlu1 %v2868_v18, %s5558_s26 }
0x1b57   :  { %v2760_v24 = vpop.permute.xlu0 %2759 }
0x1b58   :  { %2762 = vst.msk [vmem:[#allocation8] sm:$0xff] %vm263_vm0, %v2760_v24 }
0x1b5a   :  { %2970 = vrot.lane.b32.xlu1 %v5368_v23, %s5559_s0 }
0x1b5f   :  { %v2882_v26 = vld [vmem:[#allocation8] sm:$0xff] }
0x1b60   :  { %2965 = vrot.lane.b32.xlu0 %v2882_v26, %s5558_s26 }
0x1bc8   :  { %v2871_v60 = vpop.permute.xlu1 %2870 }
0x1bc9   :  { %2873 = vst.msk [vmem:[#allocation5] sm:$0xff] %vm263_vm0, %v2871_v60  ;;  %2879 = vst.msk [vmem:[#allocation3 + $0x8] sm:$0xff] %vm263_vm0, %v2871_v60 }
0x1bcc   :  { %v2971_v30 = vpop.permute.xlu1 %2970 }
0x1bcd   :  { %v2973_v34 = vmul.f32 %v5372_v29, %v2971_v30 }
0x1bcf   :  { %2975 = vrot.lane.b32.xlu1 %v2973_v34, %s5558_s26 }
0x1bd0   :  { %v2997_v35 = vld [vmem:[#allocation5] sm:$0xff] }
0x1bd1   :  { %5059 = vmatmul.mubr.msk.f32.vlgmr.msra.gmra.mxu0 %vm263_vm0, %v2997_v35 }
0x1bd2   :  { %5073 = vmatpush3.msra.mxu0 %v6202_v55  ;;  %5080 = vmatprep.mubr.msk.f32.mxu0 %vm5557_vm1, %v5556_v1  ;;  %v2966_v38 = vpop.permute.xlu0 %2965 }
0x1bd3   :  { %5074 = vmatprep.subr.mxu0 %v5556_v1  ;;  %v2968_v39 = vmul.f32 %v5372_v29, %v2966_v38 }
0x1bd4   :  { %5075 = vmatpush3.msra.mxu0 %v6205_v63 }
0x1bd5   :  { %5076 = vmatprep.subr.mxu0 %v5556_v1 }
0x1bd6   :  { %5077 = vmatpush3.msra.mxu0 %v6211_v42 }
0x1bd7   :  { %5078 = vmatprep.subr.mxu0 %v5556_v1 }
0x1bd8   :  { %5079 = vmatpush3.msra.mxu0 %v6218_v31 }
0x1bd9   :  { %5094 = vmatprep.subr.mxu0 %v5556_v1 }
0x1c41   :  { %v2976_v45 = vpop.permute.xlu1 %2975 }
0x1c42   :  { %v2978_v46 = vadd.f32 %v2976_v45, %v2968_v39 }
0x1c44   :  { %5373 = vtanh.f32 %v2978_v46 }
0x1c51   :  { %v5374_v49 = vpop.eup %5373 }
0x1c52   :  { %2981 = vrot.lane.b32.xlu0 %v5374_v49, %s5559_s0 }
0x1c56   :  { %2875 = vrot.lane.b32.xlu0 %v2862_v5, %s5560_s2 }
0x1c91   :  { %v3068_v51 = vpop.f32.mrf.mxu0 }
0x1c92   :  { %v3072_v54 = vadd.f32 %v3068_v51, %v6274_v52 }
0x1c93   :  { %v5060_v53 = vpop.f32.mrf.mxu0 }
0x1c94   :  { %5375 = vtanh.f32 %v3072_v54  ;;  %v4634_v16 = vmul.f32 -1.442695, %v3072_v54 }
0x1c96   :  { %5377 = vpow2.f32 %v4634_v16 }
0x1ca1   :  { %v5376_v4 = vpop.eup %5375 }
0x1ca3   :  { %v5378_v7 = vpop.eup %5377 }
0x1ca4   :  { %v3076_v58 = vadd.f32 1.0, %v5378_v7 }
0x1ca6   :  { %5379 = vrcp.f32 %v3076_v58 }
0x1cb3   :  { %v5380_v9 = vpop.eup %5379 }
0x1cc4   :  { %v2982_v40 = vpop.permute.xlu0 %2981 }
0x1cc5   :  { %v2984_v3 = vmul.f32 %v5372_v29, %v2982_v40 }
0x1cc7   :  { %2986 = vrot.lane.b32.xlu1 %v2984_v3, %s5558_s26 }
0x1cc8   :  { %v2876_v11 = vpop.permute.xlu0 %2875 }
0x1cc9   :  { %2878 = vst.msk [vmem:[#allocation6] sm:$0xff] %vm263_vm0, %v2876_v11 }
0x1ccb   :  { %3086 = vrot.lane.b32.xlu1 %v5376_v4, %s5559_s0 }
0x1cd0   :  { %v2998_v56 = vld [vmem:[#allocation6] sm:$0xff] }
0x1cd1   :  { %3081 = vrot.lane.b32.xlu0 %v2998_v56, %s5558_s26 }
0x1d39   :  { %v2987_v52 = vpop.permute.xlu1 %2986 }
0x1d3a   :  { %2989 = vst.msk [vmem:[#allocation7] sm:$0xff] %vm263_vm0, %v2987_v52  ;;  %2995 = vst.msk [vmem:[#allocation4 + $0x30] sm:$0xff] %vm263_vm0, %v2987_v52 }
0x1d3d   :  { %v3087_v8 = vpop.permute.xlu1 %3086 }
0x1d3e   :  { %v3089_v57 = vmul.f32 %v5380_v9, %v3087_v8 }
0x1d40   :  { %3091 = vrot.lane.b32.xlu1 %v3089_v57, %s5558_s26 }
0x1d41   :  { %v3113_v43 = vld [vmem:[#allocation7] sm:$0xff] }
0x1d42   :  { %5070 = vmatmul.mubr.msk.f32.vlgmr.msra.gmra.mxu1 %vm263_vm0, %v3113_v43 }
0x1d43   :  { %5084 = vmatpush3.msra.mxu1 %v6175_v19  ;;  %5091 = vmatprep.mubr.msk.f32.mxu1 %vm5557_vm1, %v5556_v1  ;;  %v3082_v61 = vpop.permute.xlu0 %3081 }
0x1d44   :  { %5085 = vmatprep.subr.mxu1 %v5556_v1  ;;  %v3084_v0 = vmul.f32 %v5380_v9, %v3082_v61 }
0x1d45   :  { %5086 = vmatpush3.msra.mxu1 %v6179_v20 }
0x1d46   :  { %5087 = vmatprep.subr.mxu1 %v5556_v1 }
0x1d47   :  { %5088 = vmatpush3.msra.mxu1 %v6182_v21 }
0x1d48   :  { %5089 = vmatprep.subr.mxu1 %v5556_v1 }
0x1d49   :  { %5090 = vmatpush3.msra.mxu1 %v6187_v22 }
0x1d4a   :  { %5105 = vmatprep.subr.mxu1 %v5556_v1 }
0x1db2   :  { %v3092_v15 = vpop.permute.xlu1 %3091 }
0x1db3   :  { %v3094_v12 = vadd.f32 %v3092_v15, %v3084_v0 }
0x1db5   :  { %5381 = vtanh.f32 %v3094_v12 }
0x1dc2   :  { %v5382_v44 = vpop.eup %5381 }
0x1dc3   :  { %3097 = vrot.lane.b32.xlu0 %v5382_v44, %s5559_s0 }
0x1dc7   :  { %2991 = vrot.lane.b32.xlu0 %v2978_v46, %s5560_s2 }
0x1e02   :  { %v3184_v5 = vpop.f32.mrf.mxu1 }
0x1e03   :  { %v3188_v14 = vadd.f32 %v3184_v5, %v6288_v48 }
0x1e04   :  { %v5071_v50 = vpop.f32.mrf.mxu1 }
0x1e05   :  { %5383 = vtanh.f32 %v3188_v14  ;;  %v4636_v23 = vmul.f32 -1.442695, %v3188_v14 }
0x1e07   :  { %5385 = vpow2.f32 %v4636_v23 }
0x1e12   :  { %v5384_v18 = vpop.eup %5383 }
0x1e14   :  { %v5386_v26 = vpop.eup %5385 }
0x1e15   :  { %v3192_v59 = vadd.f32 1.0, %v5386_v26 }
0x1e17   :  { %5387 = vrcp.f32 %v3192_v59 }
0x1e24   :  { %v5388_v2 = vpop.eup %5387 }
0x1e35   :  { %v3098_v62 = vpop.permute.xlu0 %3097 }
0x1e36   :  { %v3100_v17 = vmul.f32 %v5380_v9, %v3098_v62 }
0x1e38   :  { %3102 = vrot.lane.b32.xlu1 %v3100_v17, %s5558_s26 }
0x1e39   :  { %v2992_v10 = vpop.permute.xlu0 %2991 }
0x1e3a   :  { %2994 = vst.msk [vmem:[#allocation8] sm:$0xff] %vm263_vm0, %v2992_v10 }
0x1e3c   :  { %3202 = vrot.lane.b32.xlu1 %v5384_v18, %s5559_s0 }
0x1e41   :  { %v3114_v24 = vld [vmem:[#allocation8] sm:$0xff] }
0x1e42   :  { %3197 = vrot.lane.b32.xlu0 %v3114_v24, %s5558_s26 }
0x1eaa   :  { %v3103_v48 = vpop.permute.xlu1 %3102 }
0x1eab   :  { %3105 = vst.msk [vmem:[#allocation5] sm:$0xff] %vm263_vm0, %v3103_v48  ;;  %3111 = vst.msk [vmem:[#allocation3 + $0x10] sm:$0xff] %vm263_vm0, %v3103_v48 }
0x1eae   :  { %v3203_v47 = vpop.permute.xlu1 %3202 }
0x1eaf   :  { %v3205_v60 = vmul.f32 %v5388_v2, %v3203_v47 }
0x1eb1   :  { %3207 = vrot.lane.b32.xlu1 %v3205_v60, %s5558_s26 }
0x1eb2   :  { %v3229_v29 = vld [vmem:[#allocation5] sm:$0xff] }
0x1eb3   :  { %5081 = vmatmul.mubr.msk.f32.vlgmr.msra.gmra.mxu0 %vm263_vm0, %v3229_v29 }
0x1eb4   :  { %5095 = vmatpush3.msra.mxu0 %v6202_v55  ;;  %5102 = vmatprep.mubr.msk.f32.mxu0 %vm5557_vm1, %v5556_v1  ;;  %v3198_v30 = vpop.permute.xlu0 %3197 }
0x1eb5   :  { %5096 = vmatprep.subr.mxu0 %v5556_v1  ;;  %v3200_v34 = vmul.f32 %v5388_v2, %v3198_v30 }
0x1eb6   :  { %5097 = vmatpush3.msra.mxu0 %v6205_v63 }
0x1eb7   :  { %5098 = vmatprep.subr.mxu0 %v5556_v1 }
0x1eb8   :  { %5099 = vmatpush3.msra.mxu0 %v6211_v42 }
0x1eb9   :  { %5100 = vmatprep.subr.mxu0 %v5556_v1 }
0x1eba   :  { %5101 = vmatpush3.msra.mxu0 %v6218_v31 }
0x1ebb   :  { %5116 = vmatprep.subr.mxu0 %v5556_v1 }
0x1f23   :  { %v3208_v35 = vpop.permute.xlu1 %3207 }
0x1f24   :  { %v3210_v38 = vadd.f32 %v3208_v35, %v3200_v34 }
0x1f26   :  { %5389 = vtanh.f32 %v3210_v38 }
0x1f33   :  { %v5390_v39 = vpop.eup %5389 }
0x1f34   :  { %3213 = vrot.lane.b32.xlu0 %v5390_v39, %s5559_s0 }
0x1f38   :  { %3107 = vrot.lane.b32.xlu0 %v3094_v12, %s5560_s2 }
0x1f73   :  { %v3300_v45 = vpop.f32.mrf.mxu0 }
0x1f74   :  { %v3304_v49 = vadd.f32 %v3300_v45, %v6278_v28 }
0x1f75   :  { %v5082_v46 = vpop.f32.mrf.mxu0 }
0x1f76   :  { %5391 = vtanh.f32 %v3304_v49  ;;  %v4638_v11 = vmul.f32 -1.442695, %v3304_v49 }
0x1f78   :  { %5393 = vpow2.f32 %v4638_v11 }
0x1f83   :  { %v5392_v40 = vpop.eup %5391 }
0x1f85   :  { %v5394_v4 = vpop.eup %5393 }
0x1f86   :  { %v3308_v56 = vadd.f32 1.0, %v5394_v4 }
0x1f88   :  { %5395 = vrcp.f32 %v3308_v56 }
0x1f95   :  { %v5396_v16 = vpop.eup %5395 }
0x1fa6   :  { %v3214_v51 = vpop.permute.xlu0 %3213 }
0x1fa7   :  { %v3216_v53 = vmul.f32 %v5388_v2, %v3214_v51  ;;  %v6458_v51 = vld [vmem:[#allocation14 + $0x18] sm:$0xff] }
0x1fa9   :  { %3218 = vrot.lane.b32.xlu1 %v3216_v53, %s5558_s26  ;;  %v6464_v53 = vld [vmem:[#allocation14 + $0x10] sm:$0xff] }
0x1faa   :  { %v3108_v54 = vpop.permute.xlu0 %3107 }
0x1fab   :  { %3110 = vst.msk [vmem:[#allocation6] sm:$0xff] %vm263_vm0, %v3108_v54  ;;  %v6468_v54 = vld [vmem:[#allocation14 + $0x8] sm:$0xff] }
0x1fad   :  { %3318 = vrot.lane.b32.xlu1 %v5392_v40, %s5559_s0 }
0x1fb2   :  { %v3230_v3 = vld [vmem:[#allocation6] sm:$0xff] }
0x1fb3   :  { %3313 = vrot.lane.b32.xlu0 %v3230_v3, %s5558_s26 }
0x201b   :  { %v3219_v28 = vpop.permute.xlu1 %3218 }
0x201c   :  { %3221 = vst.msk [vmem:[#allocation7] sm:$0xff] %vm263_vm0, %v3219_v28  ;;  %3227 = vst.msk [vmem:[#allocation4 + $0x28] sm:$0xff] %vm263_vm0, %v3219_v28 }
0x201f   :  { %v3319_v7 = vpop.permute.xlu1 %3318 }
0x2020   :  { %v3321_v58 = vmul.f32 %v5396_v16, %v3319_v7 }
0x2022   :  { %3323 = vrot.lane.b32.xlu1 %v3321_v58, %s5558_s26 }
0x2023   :  { %v3345_v52 = vld [vmem:[#allocation7] sm:$0xff] }
0x2024   :  { %5092 = vmatmul.mubr.msk.f32.vlgmr.msra.gmra.mxu1 %vm263_vm0, %v3345_v52 }
0x2025   :  { %5106 = vmatpush3.msra.mxu1 %v6175_v19  ;;  %5113 = vmatprep.mubr.msk.f32.mxu1 %vm5557_vm1, %v5556_v1  ;;  %v3314_v9 = vpop.permute.xlu0 %3313 }
0x2026   :  { %5107 = vmatprep.subr.mxu1 %v5556_v1  ;;  %v3316_v8 = vmul.f32 %v5396_v16, %v3314_v9 }
0x2027   :  { %5108 = vmatpush3.msra.mxu1 %v6179_v20 }
0x2028   :  { %5109 = vmatprep.subr.mxu1 %v5556_v1 }
0x2029   :  { %5110 = vmatpush3.msra.mxu1 %v6182_v21 }
0x202a   :  { %5111 = vmatprep.subr.mxu1 %v5556_v1 }
0x202b   :  { %5112 = vmatpush3.msra.mxu1 %v6187_v22 }
0x202c   :  { %5127 = vmatprep.subr.mxu1 %v5556_v1 }
0x2094   :  { %v3324_v19 = vpop.permute.xlu1 %3323 }
0x2095   :  { %v3326_v57 = vadd.f32 %v3324_v19, %v3316_v8 }
0x2097   :  { %5397 = vtanh.f32 %v3326_v57 }
0x20a4   :  { %v5398_v43 = vpop.eup %5397 }
0x20a5   :  { %3329 = vrot.lane.b32.xlu0 %v5398_v43, %s5559_s0 }
0x20a9   :  { %3223 = vrot.lane.b32.xlu0 %v3210_v38, %s5560_s2 }
0x20e4   :  { %v3416_v20 = vpop.f32.mrf.mxu1 }
0x20e5   :  { %v3420_v21 = vadd.f32 %v3416_v20, %v6284_v36 }
0x20e6   :  { %v5093_v61 = vpop.f32.mrf.mxu1 }
0x20e7   :  { %5399 = vtanh.f32 %v3420_v21  ;;  %v4640_v50 = vmul.f32 -1.442695, %v3420_v21 }
0x20e9   :  { %5401 = vpow2.f32 %v4640_v50 }
0x20f4   :  { %v5400_v44 = vpop.eup %5399 }
0x20f6   :  { %v5402_v14 = vpop.eup %5401 }
0x20f7   :  { %v3424_v62 = vadd.f32 1.0, %v5402_v14 }
0x20f9   :  { %5403 = vrcp.f32 %v3424_v62 }
0x2106   :  { %v5404_v17 = vpop.eup %5403 }
0x2117   :  { %v3330_v0 = vpop.permute.xlu0 %3329 }
0x2118   :  { %v3332_v15 = vmul.f32 %v5396_v16, %v3330_v0 }
0x211a   :  { %3334 = vrot.lane.b32.xlu1 %v3332_v15, %s5558_s26  ;;  %v6485_v15 = vld [vmem:[#allocation12 + $0x18] sm:$0xff] }
0x211b   :  { %v3224_v12 = vpop.permute.xlu0 %3223 }
0x211c   :  { %3226 = vst.msk [vmem:[#allocation8] sm:$0xff] %vm263_vm0, %v3224_v12  ;;  %v6491_v12 = vld [vmem:[#allocation12 + $0x10] sm:$0xff] }
0x211e   :  { %3434 = vrot.lane.b32.xlu1 %v5400_v44, %s5559_s0  ;;  %v6495_v44 = vld [vmem:[#allocation12 + $0x8] sm:$0xff] }
0x2123   :  { %v3346_v5 = vld [vmem:[#allocation8] sm:$0xff] }
0x2124   :  { %3429 = vrot.lane.b32.xlu0 %v3346_v5, %s5558_s26  ;;  %v6499_v5 = vld [vmem:[#allocation12] sm:$0xff] }
0x218c   :  { %v3335_v36 = vpop.permute.xlu1 %3334 }
0x218d   :  { %3337 = vst.msk [vmem:[#allocation5] sm:$0xff] %vm263_vm0, %v3335_v36  ;;  %3343 = vst.msk [vmem:[#allocation3 + $0x18] sm:$0xff] %vm263_vm0, %v3335_v36 }
0x2190   :  { %v3435_v10 = vpop.permute.xlu1 %3434 }
0x2191   :  { %v3437_v18 = vmul.f32 %v5404_v17, %v3435_v10 }
0x2193   :  { %3439 = vrot.lane.b32.xlu1 %v3437_v18, %s5558_s26 }
0x2194   :  { %v3461_v24 = vld [vmem:[#allocation5] sm:$0xff] }
0x2195   :  { %5103 = vmatmul.mubr.msk.f32.vlgmr.msra.gmra.mxu0 %vm263_vm0, %v3461_v24 }
0x2196   :  { %5117 = vmatpush3.msra.mxu0 %v6202_v55  ;;  %5124 = vmatprep.mubr.msk.f32.mxu0 %vm5557_vm1, %v5556_v1  ;;  %v3430_v23 = vpop.permute.xlu0 %3429 }
0x2197   :  { %5118 = vmatprep.subr.mxu0 %v5556_v1  ;;  %v3432_v26 = vmul.f32 %v5404_v17, %v3430_v23 }
0x2198   :  { %5119 = vmatpush3.msra.mxu0 %v6205_v63 }
0x2199   :  { %5120 = vmatprep.subr.mxu0 %v5556_v1 }
0x219a   :  { %5121 = vmatpush3.msra.mxu0 %v6211_v42 }
0x219b   :  { %5122 = vmatprep.subr.mxu0 %v5556_v1 }
0x219c   :  { %5123 = vmatpush3.msra.mxu0 %v6218_v31 }
0x219d   :  { %5138 = vmatprep.subr.mxu0 %v5556_v1 }
0x2205   :  { %v3440_v55 = vpop.permute.xlu1 %3439 }
0x2206   :  { %v3442_v59 = vadd.f32 %v3440_v55, %v3432_v26 }
0x2208   :  { %5405 = vtanh.f32 %v3442_v59 }
0x2215   :  { %v5406_v48 = vpop.eup %5405 }
0x2216   :  { %3445 = vrot.lane.b32.xlu0 %v5406_v48, %s5559_s0 }
0x221a   :  { %3339 = vrot.lane.b32.xlu0 %v3326_v57, %s5560_s2 }
0x2255   :  { %v3532_v63 = vpop.f32.mrf.mxu0 }
0x2256   :  { %v3536_v42 = vadd.f32 %v3532_v63, %v6282_v32 }
0x2257   :  { %v5104_v2 = vpop.f32.mrf.mxu0 }
0x2258   :  { %5407 = vtanh.f32 %v3536_v42  ;;  %v4642_v34 = vmul.f32 -1.442695, %v3536_v42 }
0x225a   :  { %5409 = vpow2.f32 %v4642_v34 }
0x2265   :  { %v5408_v29 = vpop.eup %5407 }
0x2267   :  { %v5410_v35 = vpop.eup %5409 }
0x2268   :  { %v3540_v38 = vadd.f32 1.0, %v5410_v35 }
0x226a   :  { %5411 = vrcp.f32 %v3540_v38 }
0x2277   :  { %v5412_v39 = vpop.eup %5411 }
0x2288   :  { %v3446_v47 = vpop.permute.xlu0 %3445 }
0x2289   :  { %v3448_v60 = vmul.f32 %v5404_v17, %v3446_v47 }
0x228b   :  { %3450 = vrot.lane.b32.xlu1 %v3448_v60, %s5558_s26 }
0x228c   :  { %v3340_v31 = vpop.permute.xlu0 %3339 }
0x228d   :  { %3342 = vst.msk [vmem:[#allocation6] sm:$0xff] %vm263_vm0, %v3340_v31 }
0x228f   :  { %3550 = vrot.lane.b32.xlu1 %v5408_v29, %s5559_s0 }
0x2294   :  { %v3462_v30 = vld [vmem:[#allocation6] sm:$0xff] }
0x2295   :  { %3545 = vrot.lane.b32.xlu0 %v3462_v30, %s5558_s26  ;;  %v6522_v30 = vld [vmem:[#allocation14] sm:$0xff] }
0x22fd   :  { %v3451_v32 = vpop.permute.xlu1 %3450 }
0x22fe   :  { %3453 = vst.msk [vmem:[#allocation7] sm:$0xff] %vm263_vm0, %v3451_v32  ;;  %3459 = vst.msk [vmem:[#allocation4 + $0x20] sm:$0xff] %vm263_vm0, %v3451_v32 }
0x2301   :  { %v3551_v45 = vpop.permute.xlu1 %3550 }
0x2302   :  { %v3553_v46 = vmul.f32 %v5412_v39, %v3551_v45 }
0x2304   :  { %3555 = vrot.lane.b32.xlu1 %v3553_v46, %s5558_s26 }
0x2305   :  { %v3577_v49 = vld [vmem:[#allocation7] sm:$0xff] }
0x2306   :  { %5114 = vmatmul.mubr.msk.f32.vlgmr.msra.gmra.mxu1 %vm263_vm0, %v3577_v49 }
0x2307   :  { %5128 = vmatpush3.msra.mxu1 %v6458_v51  ;;  %5135 = vmatprep.mubr.msk.f32.mxu1 %vm5557_vm1, %v5556_v1  ;;  %v3546_v40 = vpop.permute.xlu0 %3545 }
0x2308   :  { %5129 = vmatprep.subr.mxu1 %v5556_v1  ;;  %v3548_v3 = vmul.f32 %v5412_v39, %v3546_v40 }
0x2309   :  { %5130 = vmatpush3.msra.mxu1 %v6464_v53 }
0x230a   :  { %5131 = vmatprep.subr.mxu1 %v5556_v1 }
0x230b   :  { %5132 = vmatpush3.msra.mxu1 %v6468_v54 }
0x230c   :  { %5133 = vmatprep.subr.mxu1 %v5556_v1 }
0x230d   :  { %5134 = vmatpush3.msra.mxu1 %v6187_v22 }
0x230e   :  { %5149 = vmatprep.subr.mxu1 %v5556_v1 }
0x2376   :  { %v3556_v11 = vpop.permute.xlu1 %3555 }
0x2377   :  { %v3558_v4 = vadd.f32 %v3556_v11, %v3548_v3 }
0x2379   :  { %5413 = vtanh.f32 %v3558_v4 }
0x2386   :  { %v5414_v56 = vpop.eup %5413 }
0x2387   :  { %3561 = vrot.lane.b32.xlu0 %v5414_v56, %s5559_s0 }
0x238b   :  { %3455 = vrot.lane.b32.xlu0 %v3442_v59, %s5560_s2 }
0x23c6   :  { %v3648_v28 = vpop.f32.mrf.mxu1 }
0x23c7   :  { %v3652_v7 = vadd.f32 %v3648_v28, %v6280_v37 }
0x23c8   :  { %v5115_v16 = vpop.f32.mrf.mxu1 }
0x23c9   :  { %5415 = vtanh.f32 %v3652_v7  ;;  %v4644_v19 = vmul.f32 -1.442695, %v3652_v7 }
0x23cb   :  { %5417 = vpow2.f32 %v4644_v19 }
0x23d6   :  { %v5416_v9 = vpop.eup %5415 }
0x23d8   :  { %v5418_v57 = vpop.eup %5417 }
0x23d9   :  { %v3656_v43 = vadd.f32 1.0, %v5418_v57 }
0x23db   :  { %5419 = vrcp.f32 %v3656_v43 }
0x23e8   :  { %v5420_v20 = vpop.eup %5419 }
0x23f9   :  { %v3562_v58 = vpop.permute.xlu0 %3561 }
0x23fa   :  { %v3564_v52 = vmul.f32 %v5412_v39, %v3562_v58 }
0x23fc   :  { %3566 = vrot.lane.b32.xlu1 %v3564_v52, %s5558_s26 }
0x23fd   :  { %v3456_v22 = vpop.permute.xlu0 %3455 }
0x23fe   :  { %3458 = vst.msk [vmem:[#allocation8] sm:$0xff] %vm263_vm0, %v3456_v22 }
0x2400   :  { %3666 = vrot.lane.b32.xlu1 %v5416_v9, %s5559_s0 }
0x2405   :  { %v3578_v8 = vld [vmem:[#allocation8] sm:$0xff] }
0x2406   :  { %3661 = vrot.lane.b32.xlu0 %v3578_v8, %s5558_s26 }
0x246e   :  { %v3567_v37 = vpop.permute.xlu1 %3566 }
0x246f   :  { %3569 = vst.msk [vmem:[#allocation5] sm:$0xff] %vm263_vm0, %v3567_v37  ;;  %3575 = vst.msk [vmem:[#allocation3 + $0x20] sm:$0xff] %vm263_vm0, %v3567_v37 }
0x2472   :  { %v3667_v61 = vpop.permute.xlu1 %3666 }
0x2473   :  { %v3669_v21 = vmul.f32 %v5420_v20, %v3667_v61 }
0x2475   :  { %3671 = vrot.lane.b32.xlu1 %v3669_v21, %s5558_s26 }
0x2476   :  { %v3693_v0 = vld [vmem:[#allocation5] sm:$0xff] }
0x2477   :  { %5125 = vmatmul.mubr.msk.f32.vlgmr.msra.gmra.mxu0 %vm263_vm0, %v3693_v0 }
0x2478   :  { %5139 = vmatpush3.msra.mxu0 %v6485_v15  ;;  %5146 = vmatprep.mubr.msk.f32.mxu0 %vm5557_vm1, %v5556_v1  ;;  %v3662_v50 = vpop.permute.xlu0 %3661 }
0x2479   :  { %5140 = vmatprep.subr.mxu0 %v5556_v1  ;;  %v3664_v14 = vmul.f32 %v5420_v20, %v3662_v50 }
0x247a   :  { %5141 = vmatpush3.msra.mxu0 %v6491_v12 }
0x247b   :  { %5142 = vmatprep.subr.mxu0 %v5556_v1 }
0x247c   :  { %5143 = vmatpush3.msra.mxu0 %v6495_v44 }
0x247d   :  { %5144 = vmatprep.subr.mxu0 %v5556_v1 }
0x247e   :  { %5145 = vmatpush3.msra.mxu0 %v6499_v5 }
0x247f   :  { %5160 = vmatprep.subr.mxu0 %v5556_v1 }
0x24e7   :  { %v3672_v62 = vpop.permute.xlu1 %3671 }
0x24e8   :  { %v3674_v36 = vadd.f32 %v3672_v62, %v3664_v14 }
0x24ea   :  { %5421 = vtanh.f32 %v3674_v36 }
0x24f7   :  { %v5422_v17 = vpop.eup %5421 }
0x24f8   :  { %3677 = vrot.lane.b32.xlu0 %v5422_v17, %s5559_s0 }
0x24fc   :  { %3571 = vrot.lane.b32.xlu0 %v3558_v4, %s5560_s2 }
0x2537   :  { %v3764_v10 = vpop.f32.mrf.mxu0 }
0x2538   :  { %v3768_v24 = vadd.f32 %v3764_v10, %v6286_v41 }
0x2539   :  { %v5126_v18 = vpop.f32.mrf.mxu0 }
0x253a   :  { %5423 = vtanh.f32 %v3768_v24  ;;  %v4646_v63 = vmul.f32 -1.442695, %v3768_v24 }
0x253c   :  { %5425 = vpow2.f32 %v4646_v63 }
0x2547   :  { %v5424_v59 = vpop.eup %5423 }
0x2549   :  { %v5426_v2 = vpop.eup %5425 }
0x254a   :  { %v3772_v42 = vadd.f32 1.0, %v5426_v2 }
0x254c   :  { %5427 = vrcp.f32 %v3772_v42 }
0x2559   :  { %v5428_v47 = vpop.eup %5427 }
0x256a   :  { %v3678_v23 = vpop.permute.xlu0 %3677 }
0x256b   :  { %v3680_v26 = vmul.f32 %v5420_v20, %v3678_v23 }
0x256d   :  { %3682 = vrot.lane.b32.xlu1 %v3680_v26, %s5558_s26 }
0x256e   :  { %v3572_v55 = vpop.permute.xlu0 %3571 }
0x256f   :  { %3574 = vst.msk [vmem:[#allocation6] sm:$0xff] %vm263_vm0, %v3572_v55 }
0x2571   :  { %3782 = vrot.lane.b32.xlu1 %v5424_v59, %s5559_s0 }
0x2576   :  { %v3694_v48 = vld [vmem:[#allocation6] sm:$0xff] }
0x2577   :  { %3777 = vrot.lane.b32.xlu0 %v3694_v48, %s5558_s26 }
0x25df   :  { %v3683_v41 = vpop.permute.xlu1 %3682 }
0x25e0   :  { %3685 = vst.msk [vmem:[#allocation7] sm:$0xff] %vm263_vm0, %v3683_v41  ;;  %3691 = vst.msk [vmem:[#allocation4 + $0x18] sm:$0xff] %vm263_vm0, %v3683_v41 }
0x25e3   :  { %v3783_v60 = vpop.permute.xlu1 %3782 }
0x25e4   :  { %v3785_v31 = vmul.f32 %v5428_v47, %v3783_v60 }
0x25e6   :  { %3787 = vrot.lane.b32.xlu1 %v3785_v31, %s5558_s26 }
0x25e7   :  { %v3809_v29 = vld [vmem:[#allocation7] sm:$0xff] }
0x25e8   :  { %5136 = vmatmul.mubr.msk.f32.vlgmr.msra.gmra.mxu1 %vm263_vm0, %v3809_v29 }
0x25e9   :  { %5150 = vmatpush3.msra.mxu1 %v6458_v51  ;;  %5157 = vmatprep.mubr.msk.f32.mxu1 %vm5557_vm1, %v5556_v1  ;;  %v3778_v34 = vpop.permute.xlu0 %3777 }
0x25ea   :  { %5151 = vmatprep.subr.mxu1 %v5556_v1  ;;  %v3780_v35 = vmul.f32 %v5428_v47, %v3778_v34 }
0x25eb   :  { %5152 = vmatpush3.msra.mxu1 %v6464_v53 }
0x25ec   :  { %5153 = vmatprep.subr.mxu1 %v5556_v1 }
0x25ed   :  { %5154 = vmatpush3.msra.mxu1 %v6468_v54 }
0x25ee   :  { %5155 = vmatprep.subr.mxu1 %v5556_v1 }
0x25ef   :  { %5156 = vmatpush3.msra.mxu1 %v6522_v30 }
0x25f0   :  { %5171 = vmatprep.subr.mxu1 %v5556_v1 }
0x2658   :  { %v3788_v38 = vpop.permute.xlu1 %3787 }
0x2659   :  { %v3790_v32 = vadd.f32 %v3788_v38, %v3780_v35  ;;  %v4397_v35 = vld [vmem:[%s6659_s9 + $0x38] sm:$0xff] }
0x265b   :  { %5429 = vtanh.f32 %v3790_v32 }
0x2668   :  { %v5430_v39 = vpop.eup %5429 }
0x2669   :  { %3793 = vrot.lane.b32.xlu0 %v5430_v39, %s5559_s0  ;;  %v4395_v39 = vld [vmem:[%s6659_s9 + $0x28] sm:$0xff] }
0x266d   :  { %3687 = vrot.lane.b32.xlu0 %v3674_v36, %s5560_s2 }
0x26a8   :  { %v3880_v45 = vpop.f32.mrf.mxu1 }
0x26a9   :  { %v3884_v49 = vadd.f32 %v3880_v45, %v6276_v25  ;;  %v4394_v45 = vld [vmem:[%s6659_s9 + $0x20] sm:$0xff] }
0x26aa   :  { %v5137_v46 = vpop.f32.mrf.mxu1 }
0x26ab   :  { %5431 = vtanh.f32 %v3884_v49  ;;  %v4648_v28 = vmul.f32 -1.442695, %v3884_v49  ;;  %v4389_v46 = vld [vmem:[#allocation4 + $0x38] sm:$0xff] }
0x26ad   :  { %5433 = vpow2.f32 %v4648_v28 }
0x26b8   :  { %v5432_v4 = vpop.eup %5431 }
0x26ba   :  { %v5434_v16 = vpop.eup %5433 }
0x26bb   :  { %v3888_v7 = vadd.f32 1.0, %v5434_v16 }
0x26bd   :  { %5435 = vrcp.f32 %v3888_v7 }
0x26ca   :  { %v5436_v58 = vpop.eup %5435 }
0x26db   :  { %v3794_v40 = vpop.permute.xlu0 %3793 }
0x26dc   :  { %v3796_v3 = vmul.f32 %v5428_v47, %v3794_v40 }
0x26de   :  { %3798 = vrot.lane.b32.xlu1 %v3796_v3, %s5558_s26 }
0x26df   :  { %v3688_v11 = vpop.permute.xlu0 %3687 }
0x26e0   :  { %3690 = vst.msk [vmem:[#allocation8] sm:$0xff] %vm263_vm0, %v3688_v11 }
0x26e2   :  { %3898 = vrot.lane.b32.xlu1 %v5432_v4, %s5559_s0 }
0x26e7   :  { %v3810_v56 = vld [vmem:[#allocation8] sm:$0xff] }
0x26e8   :  { %3893 = vrot.lane.b32.xlu0 %v3810_v56, %s5558_s26 }
0x2750   :  { %v3799_v25 = vpop.permute.xlu1 %3798 }
0x2751   :  { %3801 = vst.msk [vmem:[#allocation5] sm:$0xff] %vm263_vm0, %v3799_v25  ;;  %3807 = vst.msk [vmem:[#allocation3 + $0x28] sm:$0xff] %vm263_vm0, %v3799_v25 }
0x2754   :  { %v3899_v52 = vpop.permute.xlu1 %3898 }
0x2755   :  { %v3901_v22 = vmul.f32 %v5436_v58, %v3899_v52 }
0x2757   :  { %3903 = vrot.lane.b32.xlu1 %v3901_v22, %s5558_s26 }
0x2758   :  { %v3925_v9 = vld [vmem:[#allocation5] sm:$0xff] }
0x2759   :  { %5147 = vmatmul.mubr.msk.f32.vlgmr.msra.gmra.mxu0 %vm263_vm0, %v3925_v9 }
0x275a   :  { %5161 = vmatpush3.msra.mxu0 %v6485_v15  ;;  %5168 = vmatprep.mubr.msk.f32.mxu0 %vm5557_vm1, %v5556_v1  ;;  %v3894_v8 = vpop.permute.xlu0 %3893 }
0x275b   :  { %5162 = vmatprep.subr.mxu0 %v5556_v1  ;;  %v3896_v19 = vmul.f32 %v5436_v58, %v3894_v8 }
0x275c   :  { %5163 = vmatpush3.msra.mxu0 %v6491_v12 }
0x275d   :  { %5164 = vmatprep.subr.mxu0 %v5556_v1 }
0x275e   :  { %5165 = vmatpush3.msra.mxu0 %v6495_v44 }
0x275f   :  { %5166 = vmatprep.subr.mxu0 %v5556_v1 }
0x2760   :  { %5167 = vmatpush3.msra.mxu0 %v6499_v5 }
0x2761   :  { %5182 = vmatprep.subr.mxu0 %v5556_v1 }
0x27c9   :  { %v3904_v57 = vpop.permute.xlu1 %3903 }
0x27ca   :  { %v3906_v43 = vadd.f32 %v3904_v57, %v3896_v19 }
0x27cc   :  { %5437 = vtanh.f32 %v3906_v43 }
0x27d9   :  { %v5438_v37 = vpop.eup %5437 }
0x27da   :  { %3909 = vrot.lane.b32.xlu0 %v5438_v37, %s5559_s0 }
0x27de   :  { %3803 = vrot.lane.b32.xlu0 %v3790_v32, %s5560_s2  ;;  %v4396_v32 = vld [vmem:[%s6659_s9 + $0x30] sm:$0xff] }
0x2819   :  { %v3996_v20 = vpop.f32.mrf.mxu0 }
0x281a   :  { %v4000_v21 = vadd.f32 %v3996_v20, %v6290_v33 }
0x281b   :  { %v5148_v61 = vpop.f32.mrf.mxu0 }
0x281c   :  { %5439 = vtanh.f32 %v4000_v21  ;;  %v4650_v50 = vmul.f32 -1.442695, %v4000_v21 }
0x281e   :  { %5441 = vpow2.f32 %v4650_v50 }
0x2829   :  { %v5440_v44 = vpop.eup %5439 }
0x282b   :  { %v5442_v14 = vpop.eup %5441 }
0x282c   :  { %v4004_v62 = vadd.f32 1.0, %v5442_v14 }
0x282e   :  { %5443 = vrcp.f32 %v4004_v62 }
0x283b   :  { %v5444_v36 = vpop.eup %5443 }
0x284c   :  { %v3910_v0 = vpop.permute.xlu0 %3909 }
0x284d   :  { %v3912_v15 = vmul.f32 %v5436_v58, %v3910_v0 }
0x284f   :  { %3914 = vrot.lane.b32.xlu1 %v3912_v15, %s5558_s26 }
0x2850   :  { %v3804_v12 = vpop.permute.xlu0 %3803 }
0x2851   :  { %3806 = vst.msk [vmem:[#allocation6] sm:$0xff] %vm263_vm0, %v3804_v12 }
0x2853   :  { %4014 = vrot.lane.b32.xlu1 %v5440_v44, %s5559_s0 }
0x2858   :  { %v3926_v5 = vld [vmem:[#allocation6] sm:$0xff] }
0x2859   :  { %4009 = vrot.lane.b32.xlu0 %v3926_v5, %s5558_s26 }
0x28c1   :  { %v3915_v33 = vpop.permute.xlu1 %3914 }
0x28c2   :  { %3917 = vst.msk [vmem:[#allocation7] sm:$0xff] %vm263_vm0, %v3915_v33  ;;  %3923 = vst.msk [vmem:[#allocation4 + $0x10] sm:$0xff] %vm263_vm0, %v3915_v33  ;;  %v4393_v33 = vld [vmem:[%s6659_s9 + $0x18] sm:$0xff] }
0x28c5   :  { %v4015_v17 = vpop.permute.xlu1 %4014 }
0x28c6   :  { %v4017_v10 = vmul.f32 %v5444_v36, %v4015_v17  ;;  %v4391_v17 = vld [vmem:[%s6659_s9 + $0x8] sm:$0xff] }
0x28c8   :  { %4019 = vrot.lane.b32.xlu1 %v4017_v10, %s5558_s26 }
0x28c9   :  { %v4041_v18 = vld [vmem:[#allocation7] sm:$0xff] }
0x28ca   :  { %5158 = vmatmul.mubr.msk.f32.vlgmr.msra.gmra.mxu1 %vm263_vm0, %v4041_v18 }
0x28cb   :  { %5172 = vmatpush3.msra.mxu1 %v6458_v51  ;;  %5179 = vmatprep.mubr.msk.f32.mxu1 %vm5557_vm1, %v5556_v1  ;;  %v4010_v24 = vpop.permute.xlu0 %4009 }
0x28cc   :  { %5173 = vmatprep.subr.mxu1 %v5556_v1  ;;  %v4012_v23 = vmul.f32 %v5444_v36, %v4010_v24 }
0x28cd   :  { %5174 = vmatpush3.msra.mxu1 %v6464_v53 }
0x28ce   :  { %5175 = vmatprep.subr.mxu1 %v5556_v1 }
0x28cf   :  { %5176 = vmatpush3.msra.mxu1 %v6468_v54 }
0x28d0   :  { %5177 = vmatprep.subr.mxu1 %v5556_v1 }
0x28d1   :  { %5178 = vmatpush3.msra.mxu1 %v6522_v30 }
0x28d2   :  { %5193 = vmatprep.subr.mxu1 %v5556_v1 }
0x293a   :  { %v4020_v51 = vpop.permute.xlu1 %4019 }
0x293b   :  { %v4022_v26 = vadd.f32 %v4020_v51, %v4012_v23 }
0x293d   :  { %5445 = vtanh.f32 %v4022_v26 }
0x294a   :  { %v5446_v55 = vpop.eup %5445 }
0x294b   :  { %4025 = vrot.lane.b32.xlu0 %v5446_v55, %s5559_s0 }
0x294f   :  { %3919 = vrot.lane.b32.xlu0 %v3906_v43, %s5560_s2 }
0x298a   :  { %v4112_v53 = vpop.f32.mrf.mxu1 }
0x298b   :  { %v4116_v54 = vadd.f32 %v4112_v53, %v6272_v27 }
0x298c   :  { %v5159_v59 = vpop.f32.mrf.mxu1 }
0x298d   :  { %5447 = vtanh.f32 %v4116_v54  ;;  %v4652_v47 = vmul.f32 -1.442695, %v4116_v54 }
0x298f   :  { %5449 = vpow2.f32 %v4652_v47 }
0x299a   :  { %v5448_v42 = vpop.eup %5447 }
0x299c   :  { %v5450_v60 = vpop.eup %5449 }
0x299d   :  { %v4120_v31 = vadd.f32 1.0, %v5450_v60 }
0x299f   :  { %5451 = vrcp.f32 %v4120_v31 }
0x29ac   :  { %v5452_v29 = vpop.eup %5451 }
0x29bd   :  { %v4026_v48 = vpop.permute.xlu0 %4025 }
0x29be   :  { %v4028_v63 = vmul.f32 %v5444_v36, %v4026_v48  ;;  %v4392_v36 = vld [vmem:[%s6659_s9 + $0x10] sm:$0xff] }
0x29c0   :  { %4030 = vrot.lane.b32.xlu1 %v4028_v63, %s5558_s26 }
0x29c1   :  { %v3920_v2 = vpop.permute.xlu0 %3919 }
0x29c2   :  { %3922 = vst.msk [vmem:[#allocation8] sm:$0xff] %vm263_vm0, %v3920_v2 }
0x29c4   :  { %4130 = vrot.lane.b32.xlu1 %v5448_v42, %s5559_s0 }
0x29c9   :  { %v4042_v41 = vld [vmem:[#allocation8] sm:$0xff] }
0x29ca   :  { %4125 = vrot.lane.b32.xlu0 %v4042_v41, %s5558_s26 }
0x2a32   :  { %v4031_v27 = vpop.permute.xlu1 %4030 }
0x2a33   :  { %4033 = vst.msk [vmem:[#allocation5] sm:$0xff] %vm263_vm0, %v4031_v27  ;;  %4039 = vst.msk [vmem:[#allocation3 + $0x30] sm:$0xff] %vm263_vm0, %v4031_v27 }
0x2a36   :  { %v4131_v30 = vpop.permute.xlu1 %4130 }
0x2a37   :  { %v4133_v34 = vmul.f32 %v5452_v29, %v4131_v30 }
0x2a39   :  { %4135 = vrot.lane.b32.xlu1 %v4133_v34, %s5558_s26 }
0x2a3a   :  { %v4157_v38 = vld [vmem:[#allocation5] sm:$0xff] }
0x2a3b   :  { %5169 = vmatmul.mubr.msk.f32.vlgmr.msra.gmra.mxu0 %vm263_vm0, %v4157_v38 }
0x2a3c   :  { %5183 = vmatpush3.msra.mxu0 %v4397_v35  ;;  %5190 = vmatprep.mubr.msk.f32.mxu0 %vm5557_vm1, %v5556_v1  ;;  %v4126_v49 = vpop.permute.xlu0 %4125 }
0x2a3d   :  { %5184 = vmatprep.subr.mxu0 %v5556_v1  ;;  %v4128_v40 = vmul.f32 %v5452_v29, %v4126_v49 }
0x2a3e   :  { %5185 = vmatpush3.msra.mxu0 %v4396_v32 }
0x2a3f   :  { %5186 = vmatprep.subr.mxu0 %v5556_v1 }
0x2a40   :  { %5187 = vmatpush3.msra.mxu0 %v4395_v39 }
0x2a41   :  { %5188 = vmatprep.subr.mxu0 %v5556_v1 }
0x2a42   :  { %5189 = vmatpush3.msra.mxu0 %v4394_v45 }
0x2a43   :  { %5191 = vmatmul.mubr.msk.f32.vlgmr.msra.gmra.mxu0 %vm263_vm0, %v4389_v46 }
0x2aab   :  { %v4136_v3 = vpop.permute.xlu1 %4135 }
0x2aac   :  { %v4138_v11 = vadd.f32 %v4136_v3, %v4128_v40 }
0x2aae   :  { %5453 = vtanh.f32 %v4138_v11 }
0x2abb   :  { %v5454_v4 = vpop.eup %5453 }
0x2abc   :  { %4141 = vrot.lane.b32.xlu0 %v5454_v4, %s5559_s0 }
0x2ac0   :  { %4035 = vrot.lane.b32.xlu0 %v4022_v26, %s5560_s2 }
0x2afb   :  { %v4228_v56 = vpop.f32.mrf.mxu0 }
0x2afc   :  { %v4232_v25 = vadd.f32 %v4228_v56, %v6294_v13 }
0x2afd   :  { %v5170_v28 = vpop.f32.mrf.mxu0 }
0x2afe   :  { %5455 = vtanh.f32 %v4232_v25  ;;  %v4654_v19 = vmul.f32 -1.442695, %v4232_v25 }
0x2b00   :  { %5457 = vpow2.f32 %v4654_v19 }
0x2b03   :  { %v6599_v16 = vpop.f32.mrf.mxu0 }
0x2b05   :  { %v5192_v7 = vpop.f32.mrf.mxu0 }
0x2b0b   :  { %v5456_v9 = vpop.eup %5455 }
0x2b0d   :  { %v5458_v57 = vpop.eup %5457 }
0x2b0e   :  { %v4236_v43 = vadd.f32 1.0, %v5458_v57 }
0x2b10   :  { %5459 = vrcp.f32 %v4236_v43 }
0x2b1d   :  { %v5460_v37 = vpop.eup %5459 }
0x2b2e   :  { %v4142_v58 = vpop.permute.xlu0 %4141 }
0x2b2f   :  { %v4144_v52 = vmul.f32 %v5452_v29, %v4142_v58  ;;  %v4659_v29 = vld [vmem:[#allocation9] ss:$0 sm:$0xff] }
0x2b31   :  { %4146 = vrot.lane.b32.xlu1 %v4144_v52, %s5558_s26 }
0x2b32   :  { %v4036_v22 = vpop.permute.xlu0 %4035 }
0x2b33   :  { %4038 = vst.msk [vmem:[#allocation6] sm:$0xff] %vm263_vm0, %v4036_v22 }
0x2b35   :  { %4246 = vrot.lane.b32.xlu1 %v5456_v9, %s5559_s0 }
0x2b3a   :  { %v4158_v8 = vld [vmem:[#allocation6] sm:$0xff] }
0x2b3b   :  { %4241 = vrot.lane.b32.xlu0 %v4158_v8, %s5558_s26 }
0x2ba3   :  { %v4147_v13 = vpop.permute.xlu1 %4146 }
0x2ba4   :  { %4149 = vst.msk [vmem:[#allocation7] sm:$0xff] %vm263_vm0, %v4147_v13  ;;  %4155 = vst.msk [vmem:[#allocation4 + $0x8] sm:$0xff] %vm263_vm0, %v4147_v13 }
0x2ba7   :  { %v4247_v20 = vpop.permute.xlu1 %4246 }
0x2ba8   :  { %v4249_v61 = vmul.f32 %v5460_v37, %v4247_v20 }
0x2baa   :  { %4251 = vrot.lane.b32.xlu1 %v4249_v61, %s5558_s26 }
0x2bab   :  { %v4273_v21 = vld [vmem:[#allocation7] sm:$0xff] }
0x2bac   :  { %5180 = vmatmul.mubr.msk.f32.vlgmr.msra.gmra.mxu1 %vm263_vm0, %v4273_v21 }
0x2bad   :  { %5201 = vmatprep.mubr.msk.f32.mxu1 %vm5557_vm1, %v5556_v1  ;;  %v4242_v0 = vpop.permute.xlu0 %4241  ;;  %5194 = vmatpush3.msra.mxu1 %v4393_v33 }
0x2bae   :  { %v4244_v15 = vmul.f32 %v5460_v37, %v4242_v0  ;;  %5195 = vmatprep.subr.mxu1 %v5556_v1 }
0x2baf   :  { %5196 = vmatpush3.msra.mxu1 %v4392_v36 }
0x2bb0   :  { %5197 = vmatprep.subr.mxu1 %v5556_v1 }
0x2bb1   :  { %5198 = vmatpush3.msra.mxu1 %v4391_v17 }
0x2bb2   :  { %5199 = vmatprep.subr.mxu1 %v5556_v1 }
0x2c1c   :  { %v4252_v12 = vpop.permute.xlu1 %4251 }
0x2c1d   :  { %v4254_v44 = vadd.f32 %v4252_v12, %v4244_v15 }
0x2c1f   :  { %5461 = vtanh.f32 %v4254_v44 }
0x2c2c   :  { %v5462_v5 = vpop.eup %5461 }
0x2c2d   :  { %4257 = vrot.lane.b32.xlu0 %v5462_v5, %s5559_s0 }
0x2c31   :  { %4151 = vrot.lane.b32.xlu0 %v4138_v11, %s5560_s2 }
0x2c6c   :  { %v4344_v50 = vpop.f32.mrf.mxu1 }
0x2c6d   :  { %v4348_v62 = vadd.f32 %v4344_v50, %v6268_v6  ;;  %v4390_v6 = vld [vmem:[%s6659_s9] sm:$0xff] }
0x2c6e   :  { %v5181_v14 = vpop.f32.mrf.mxu1  ;;  %5200 = vmatpush3.msra.mxu1 %v4390_v6 }
0x2c6f   :  { %5463 = vtanh.f32 %v4348_v62  ;;  %v4656_v26 = vmul.f32 -1.442695, %v4348_v62 }
0x2c71   :  { %5465 = vpow2.f32 %v4656_v26 }
0x2c7c   :  { %v5464_v23 = vpop.eup %5463 }
0x2c7e   :  { %v5466_v1 = vpop.eup %5465 }
0x2c7f   :  { %v4352_v55 = vadd.f32 1.0, %v5466_v1 }
0x2c81   :  { %5467 = vrcp.f32 %v4352_v55 }
0x2c8e   :  { %v5468_v59 = vpop.eup %5467 }
0x2c9f   :  { %v4258_v10 = vpop.permute.xlu0 %4257 }
0x2ca0   :  { %v4260_v18 = vmul.f32 %v5460_v37, %v4258_v10 }
0x2ca2   :  { %4262 = vrot.lane.b32.xlu1 %v4260_v18, %s5558_s26 }
0x2ca3   :  { %v4152_v24 = vpop.permute.xlu0 %4151 }
0x2ca4   :  { %4154 = vst.msk [vmem:[#allocation8] sm:$0xff] %vm263_vm0, %v4152_v24 }
0x2ca6   :  { %4362 = vrot.lane.b32.xlu1 %v5464_v23, %s5559_s0 }
0x2cab   :  { %v4274_v51 = vld [vmem:[#allocation8] sm:$0xff] }
0x2cac   :  { %4357 = vrot.lane.b32.xlu0 %v4274_v51, %s5558_s26 }
0x2d14   :  { %v4263_v53 = vpop.permute.xlu1 %4262 }
0x2d15   :  { %4265 = vst.msk [vmem:[#allocation5] sm:$0xff] %vm263_vm0, %v4263_v53  ;;  %4271 = vst.msk [vmem:[#allocation3 + $0x38] sm:$0xff] %vm263_vm0, %v4263_v53 }
0x2d18   :  { %v4363_v54 = vpop.permute.xlu1 %4362 }
0x2d19   :  { %v4365_v48 = vmul.f32 %v5468_v59, %v4363_v54 }
0x2d1b   :  { %4367 = vrot.lane.b32.xlu1 %v4365_v48, %s5558_s26 }
0x2d1c   :  { %v4388_v63 = vld [vmem:[#allocation5] sm:$0xff] }
0x2d1d   :  { %5202 = vmatmul.mubr.msk.f32.vlgmr.msra.gmra.mxu1 %vm263_vm0, %v4388_v63 }
0x2d1e   :  { %v4358_v2 = vpop.permute.xlu0 %4357 }
0x2d1f   :  { %4267 = vrot.lane.b32.xlu1 %v4254_v44, %s5560_s2  ;;  %v4360_v42 = vmul.f32 %v5468_v59, %v4358_v2 }
0x2d8d   :  { %v4368_v41 = vpop.permute.xlu1 %4367 }
0x2d8e   :  { %v4370_v47 = vadd.f32 %v4368_v41, %v4360_v42 }
0x2d90   :  { %5469 = vtanh.f32 %v4370_v47  ;;  %4383 = vrot.lane.b32.xlu1 %v4370_v47, %s5560_s2 }
0x2d91   :  { %v4268_v60 = vpop.permute.xlu1 %4267 }
0x2d92   :  { %4270 = vst.msk [vmem:[#allocation6] sm:$0xff] %vm263_vm0, %v4268_v60 }
0x2d9d   :  { %v5470_v31 = vpop.eup %5469 }
0x2d9e   :  { %4373 = vrot.lane.b32.xlu0 %v5470_v31, %s5559_s0 }
0x2ddd   :  { %v4540_v27 = vpop.f32.mrf.mxu1 }
0x2dde   :  { %v4541_v30 = vadd.f32 %v4540_v27, %v6599_v16 }
0x2ddf   :  { %v5203_v34 = vpop.f32.mrf.mxu1 }
0x2de0   :  { %v4551_v35 = vadd.f32 %v4659_v29, %v4541_v30 }
0x2de2   :  { %4553 = vst.msk [vmem:[%s6661_s11] sm:$0xff] %vm4552_vm4, %v4551_v35 }
0x2e02   :  { %v4384_v38 = vpop.permute.xlu1 %4383 }
0x2e03   :  { %4386 = vst.msk [vmem:[#allocation8] sm:$0xff] %vm263_vm0, %v4384_v38 }
0x2e10   :  { %v4374_v32 = vpop.permute.xlu0 %4373 }
0x2e11   :  { %v4376_v39 = vmul.f32 %v5468_v59, %v4374_v32 }
0x2e13   :  { %4378 = vrot.lane.b32.xlu0 %v4376_v39, %s5558_s26 }
0x2e85   :  { %v4379_v45 = vpop.permute.xlu0 %4378 }
0x2e86   :  { %4381 = vst.msk [vmem:[#allocation7] sm:$0xff] %vm263_vm0, %v4379_v45  ;;  %4387 = vst.msk [vmem:[#allocation4] sm:$0xff] %vm263_vm0, %v4379_v45 }
0x2e87   :  { %4558 = vsyncpa [#allocation11], 1 }
0x2e88   :  { %4559 = vsyncpa [#allocation13], 1 }

</bundles_post_ra>
